<compile_context>
chip_gen: v5e
topology: v5e:2x2
jax: 0.10.0
libtpu: 0.0.40
codegen_flags: <defaults>
</compile_context>

<pallas_src>
import numpy as np
import jax
import jax.numpy as jnp
from jax import lax
from jax.experimental import pallas as pl
from jax.experimental.pallas import tpu as pltpu


def _make_kernel(KH, KW, dh, dw, OH, Wpp, Cin, Cout):
    rows = OH * Wpp

    def kernel(plane_tbl_ref, kd_tbl_ref, x_ref, w_ref, b_ref, o_ref, acc_ref):
        # The scalar-prefetch tables are only consumed by the index maps.
        del plane_tbl_ref, kd_tbl_ref
        t = pl.program_id(2)

        @pl.when(t == 0)
        def _():
            acc_ref[...] = jnp.zeros_like(acc_ref)

        # H/W kernel taps: each tap is a contiguous window of the flattened
        # (Hp+1)*Wpp x Cin plane -> one (rows, Cin) x (Cin, Cout) MXU matmul.
        for kh in range(KH):
            for kw in range(KW):
                start = kh * dh * Wpp + kw * dw
                slab = x_ref[pl.ds(start, rows), :]              # (rows, Cin) bf16
                wt = w_ref[kh * KW + kw]                          # (Cin, Cout) bf16
                acc_ref[...] += jnp.dot(slab, wt,
                                        preferred_element_type=jnp.float32)

        @pl.when(t == pl.num_programs(2) - 1)
        def _():
            v1 = acc_ref[...] + b_ref[...]                        # f32
            v2 = v1 * 0.5
            v5 = v1 + (v1 * v1 * v1) * 0.044715
            v7 = jnp.tanh(v5 * 0.7978845608028654)
            o_ref[...] = (v2 * (v7 + 1.0)).astype(o_ref.dtype)    # bf16 store

    return kernel


def conv_transpose3d_gelu(x, w, b, *, stride, padding, dilation):
    """x: (N, Cin, D, H, W); w: PyTorch layout (Cin, Cout, KD, KH, KW); b: (Cout,).
    Returns bf16 (N, Cout, OD, OH, OW)."""
    N, Cin, D, H, W = x.shape
    _, Cout, KD, KH, KW = w.shape
    sd, sh, sw = stride
    pd, ph, pw = padding
    dd, dh, dw = dilation

    OD = (D - 1) * sd - 2 * pd + dd * (KD - 1) + 1
    OH = (H - 1) * sh - 2 * ph + dh * (KH - 1) + 1
    OW = (W - 1) * sw - 2 * pw + dw * (KW - 1) + 1

    # Effective "stride-1 conv over dilated input" padding per axis.
    Pd = dd * (KD - 1) - pd
    Ph = dh * (KH - 1) - ph
    Pw = dw * (KW - 1) - pw
    assert min(Pd, Ph, Pw) >= 0, "negative effective padding not supported"

    # ---- input planes: H/W stride-dilated + padded, D kept as raw planes ------
    Hd = (H - 1) * sh + 1
    Wd = (W - 1) * sw + 1
    Hp = Hd + 2 * Ph                       # == OH + dh*(KH-1)   (exact)
    Wpp = Wd + 2 * Pw                      # == OW + dw*(KW-1)   (exact)
    x_ndhwc = jnp.transpose(x, (0, 2, 3, 4, 1)).astype(jnp.bfloat16)
    x_dil = jnp.zeros((N, D, Hd, Wd, Cin), jnp.bfloat16)
    x_dil = x_dil.at[:, :, ::sh, ::sw, :].set(x_ndhwc)
    # +1 zero plane along D (target of padded table entries);
    # +1 zero row along H so the last tap window's flat overrun stays in-bounds.
    x_planes = jnp.pad(x_dil, ((0, 0), (0, 1), (Ph, Ph + 1), (Pw, Pw), (0, 0)))
    flat = (Hp + 1) * Wpp
    x_planes = x_planes.reshape(N, D + 1, flat, Cin)

    # ---- D-axis sub-pixel phase tables (scalar prefetch, built in numpy) -------
    # Tap kd contributes to output depth od iff dilated-plane od + kd*dd lands
    # on a real (non-zero-stuffed, in-range) raw input plane.
    entries = []
    for od in range(OD):
        e = []
        for kd in range(KD):
            num = od + kd * dd - Pd
            if num >= 0 and num % sd == 0 and num // sd < D:
                e.append((num // sd, kd))
        entries.append(e)
    Tmax = max(1, max(len(e) for e in entries))
    plane_np = np.full((OD, Tmax), D, dtype=np.int32)     # default -> zero plane
    kd_np = np.zeros((OD, Tmax), dtype=np.int32)
    for od, e in enumerate(entries):
        for t, (jd, kd) in enumerate(e):
            plane_np[od, t] = jd
            kd_np[od, t] = kd
    plane_tbl = jnp.asarray(plane_np.reshape(-1))          # (OD*Tmax,) int32
    kd_tbl = jnp.asarray(kd_np.reshape(-1))                # (OD*Tmax,) int32

    # ---- spatially flipped weights grouped by depth tap, f32 bias --------------
    w_taps = jnp.transpose(jnp.flip(w, axis=(2, 3, 4)), (2, 3, 4, 0, 1))
    w_taps = w_taps.reshape(KD, KH * KW, Cin, Cout).astype(jnp.bfloat16)
    b2 = b.astype(jnp.float32).reshape(1, Cout)

    rows = OH * Wpp
    kernel = _make_kernel(KH, KW, dh, dw, OH, Wpp, Cin, Cout)

    out = pl.pallas_call(
        kernel,
        out_shape=jax.ShapeDtypeStruct((N, OD, rows, Cout), jnp.bfloat16),
        grid_spec=pltpu.PrefetchScalarGridSpec(
            num_scalar_prefetch=2,
            grid=(N, OD, Tmax),
            in_specs=[
                # One flattened input plane per step, selected by the phase table.
                pl.BlockSpec((None, None, flat, Cin),
                             lambda n, od, t, ptbl, ktbl:
                             (n, ptbl[od * Tmax + t], 0, 0)),
                # The matching depth-tap weight slice (streamed; not resident).
                pl.BlockSpec((None, KH * KW, Cin, Cout),
                             lambda n, od, t, ptbl, ktbl:
                             (ktbl[od * Tmax + t], 0, 0, 0)),
                pl.BlockSpec((1, Cout),
                             lambda n, od, t, ptbl, ktbl: (0, 0)),
            ],
            out_specs=pl.BlockSpec((None, None, rows, Cout),
                                   lambda n, od, t, ptbl, ktbl: (n, od, 0, 0)),
            scratch_shapes=[pltpu.VMEM((rows, Cout), jnp.float32)],
        ),
        compiler_params=pltpu.CompilerParams(
            dimension_semantics=("parallel", "parallel", "arbitrary"),
            vmem_limit_bytes=32 * 1024 * 1024,   # safe on v5e/v6e/v7x for these blocks
        ),
    )(plane_tbl, kd_tbl, x_planes, w_taps, b2)

    # Single fused epilogue pass: drop the padded W columns and go to NCDHW.
    out = out.reshape(N, OD, OH, Wpp, Cout)[:, :, :, :OW, :]
    return jnp.transpose(out, (0, 4, 1, 2, 3))


def _reference(x, w, b, stride, padding, dilation):
    """Pure-JAX f32 reference (XLA conv, HIGHEST precision)."""
    _, Cout, KD, KH, KW = w.shape
    dd, dh, dw = dilation
    pd, ph, pw = padding
    w_conv = jnp.transpose(jnp.flip(w, axis=(2, 3, 4)), (1, 0, 2, 3, 4))  # OIDHW
    dn = lax.conv_dimension_numbers(x.shape, w_conv.shape, ('NCDHW', 'OIDHW', 'NCDHW'))
    pads = [(dd * (KD - 1) - pd,) * 2, (dh * (KH - 1) - ph,) * 2, (dw * (KW - 1) - pw,) * 2]
    y = lax.conv_general_dilated(x, w_conv, window_strides=(1, 1, 1), padding=pads,
                                 lhs_dilation=stride, rhs_dilation=dilation,
                                 dimension_numbers=dn, precision=lax.Precision.HIGHEST)
    y = y + b[None, :, None, None, None]
    return (y * 0.5) * (1.0 + jnp.tanh(0.7978845608028654 * (y + 0.044715 * y * y * y)))


if __name__ == "__main__":
    # Hyperparameters scaled down from the original module
    #   ConvTranspose3d(16, 384, (29,31,31), stride=(3,1,3), padding=(1,7,4), dilation=(2,4,2))
    # keeping the stride/padding/dilation structure and the tanh-GELU epilogue.
    Cin, Cout = 16, 32
    K = (3, 3, 3)
    stride = (3, 1, 3)
    padding = (1, 2, 1)
    dilation = (2, 4, 2)
    N, D, H, W = 2, 4, 6, 5

    key = jax.random.PRNGKey(0)
    kx, kw_, kb = jax.random.split(key, 3)
    x = jax.random.normal(kx, (N, Cin, D, H, W), dtype=jnp.float32)
    fan_in = Cin * K[0] * K[1] * K[2]
    bound = 1.0 / np.sqrt(fan_in)
    w = jax.random.uniform(kw_, (Cin, Cout, *K), jnp.float32, -bound, bound)
    b = jax.random.uniform(kb, (Cout,), jnp.float32, -bound, bound)

    fn = jax.jit(conv_transpose3d_gelu, static_argnames=("stride", "padding", "dilation"))
    out = jax.block_until_ready(fn(x, w, b, stride=stride, padding=padding, dilation=dilation))
    ref = jax.block_until_ready(_reference(x, w, b, stride, padding, dilation))
    assert out.shape == ref.shape, (out.shape, ref.shape)
    # bf16 matmul inputs + bf16 output vs full-f32 reference -> bf16-level tolerance.
    np.testing.assert_allclose(np.asarray(out).astype(np.float32), np.asarray(ref),
                               rtol=2e-2, atol=2e-2)
    print("KERNEL_OK")
</pallas_src>

<mosaic_0001>
module attributes {stable_mosaic.version = 11 : i64} {
  func.func @kernel(%arg0: i32, %arg1: i32, %arg2: i32, %arg3: memref<12xi32, #tpu.memory_space<smem>>, %arg4: memref<12xi32, #tpu.memory_space<smem>>, %arg5: memref<1x1x361x16xbf16, #tpu.memory_space<vmem>>, %arg6: memref<1x9x16x32xbf16, #tpu.memory_space<vmem>>, %arg7: memref<1x32xf32, #tpu.memory_space<vmem>>, %arg8: memref<1x1x190x32xbf16, #tpu.memory_space<vmem>>, %arg9: memref<190x32xf32, #tpu.memory_space<vmem>>) attributes {dimension_semantics = [#tpu.dimension_semantics<parallel>, #tpu.dimension_semantics<parallel>, #tpu.dimension_semantics<arbitrary>], iteration_bounds = array<i64: 2, 12, 1>, scalar_prefetch = 2 : i64, scratch_operands = 1 : i64, tpu.core_type = #tpu.core_type<tc>, window_params = [{transform_indices = @transform_0, window_bounds = array<i64: 1, 1, 361, 16>}, {transform_indices = @transform_1, window_bounds = array<i64: 1, 9, 16, 32>}, {pipeline_mode = #tpu.pipeline_mode<synchronous>, transform_indices = @transform_2, window_bounds = array<i64: 1, 32>}, {transform_indices = @transform_3, window_bounds = array<i64: 1, 1, 190, 32>}]} {
    %c0_i32 = arith.constant 0 : i32
    %0 = arith.cmpi eq, %arg2, %c0_i32 : i32
    %1 = arith.extui %0 : i1 to i32
    %c0_i32_0 = arith.constant 0 : i32
    %2 = arith.cmpi ne, %1, %c0_i32_0 : i32
    scf.if %2 {
      %cst_104 = arith.constant 0.000000e+00 : f32
      %78 = vector.broadcast %cst_104 : f32 to vector<190x32xf32>
      %c0_105 = arith.constant 0 : index
      %c0_106 = arith.constant 0 : index
      %79 = vector.load %arg9[%c0_105, %c0_106] : memref<190x32xf32, #tpu.memory_space<vmem>>, vector<190x32xf32>
      tpu.vector_store %arg9[%c0_105, %c0_106], %78 {strides = array<i32>} : memref<190x32xf32, #tpu.memory_space<vmem>>, vector<190x32xf32>,
    } else {
    }
    %c0 = arith.constant 0 : index
    %c0_1 = arith.constant 0 : index
    %c0_2 = arith.constant 0 : index
    %c0_3 = arith.constant 0 : index
    %3 = vector.load %arg5[%c0, %c0_1, %c0_2, %c0_3] : memref<1x1x361x16xbf16, #tpu.memory_space<vmem>>, vector<1x1x190x16xbf16>
    %4 = vector.shape_cast %3 : vector<1x1x190x16xbf16> to vector<190x16xbf16>
    %c0_4 = arith.constant 0 : index
    %c0_5 = arith.constant 0 : index
    %c0_6 = arith.constant 0 : index
    %c0_7 = arith.constant 0 : index
    %5 = vector.load %arg6[%c0_4, %c0_5, %c0_6, %c0_7] : memref<1x9x16x32xbf16, #tpu.memory_space<vmem>>, vector<1x1x16x32xbf16>
    %6 = vector.shape_cast %5 : vector<1x1x16x32xbf16> to vector<16x32xbf16>
    %c0_8 = arith.constant 0 : index
    %c0_9 = arith.constant 0 : index
    %7 = vector.load %arg9[%c0_8, %c0_9] : memref<190x32xf32, #tpu.memory_space<vmem>>, vector<190x32xf32>
    %cst = arith.constant dense<0.000000e+00> : vector<190x32xf32>
    %8 = tpu.matmul %4, %6, %cst {dimension_numbers = #tpu.dot_dimension_numbers<[1], [0], [0], [1], [0, 0, 1, 1], [], []>} : vector<190x16xbf16>, vector<16x32xbf16>, vector<190x32xf32> -> vector<190x32xf32>
    %9 = arith.addf %7, %8 : vector<190x32xf32>
    %c0_10 = arith.constant 0 : index
    %c0_11 = arith.constant 0 : index
    %10 = vector.load %arg9[%c0_10, %c0_11] : memref<190x32xf32, #tpu.memory_space<vmem>>, vector<190x32xf32>
    tpu.vector_store %arg9[%c0_10, %c0_11], %9 {strides = array<i32>} : memref<190x32xf32, #tpu.memory_space<vmem>>, vector<190x32xf32>,
    %c0_12 = arith.constant 0 : index
    %c0_13 = arith.constant 0 : index
    %c2 = arith.constant 2 : index
    %c0_14 = arith.constant 0 : index
    %11 = vector.load %arg5[%c0_12, %c0_13, %c2, %c0_14] : memref<1x1x361x16xbf16, #tpu.memory_space<vmem>>, vector<1x1x190x16xbf16>
    %12 = vector.shape_cast %11 : vector<1x1x190x16xbf16> to vector<190x16xbf16>
    %c0_15 = arith.constant 0 : index
    %c1 = arith.constant 1 : index
    %c0_16 = arith.constant 0 : index
    %c0_17 = arith.constant 0 : index
    %13 = vector.load %arg6[%c0_15, %c1, %c0_16, %c0_17] : memref<1x9x16x32xbf16, #tpu.memory_space<vmem>>, vector<1x1x16x32xbf16>
    %14 = vector.shape_cast %13 : vector<1x1x16x32xbf16> to vector<16x32xbf16>
    %c0_18 = arith.constant 0 : index
    %c0_19 = arith.constant 0 : index
    %15 = vector.load %arg9[%c0_18, %c0_19] : memref<190x32xf32, #tpu.memory_space<vmem>>, vector<190x32xf32>
    %cst_20 = arith.constant dense<0.000000e+00> : vector<190x32xf32>
    %16 = tpu.matmul %12, %14, %cst_20 {dimension_numbers = #tpu.dot_dimension_numbers<[1], [0], [0], [1], [0, 0, 1, 1], [], []>} : vector<190x16xbf16>, vector<16x32xbf16>, vector<190x32xf32> -> vector<190x32xf32>
    %17 = arith.addf %15, %16 : vector<190x32xf32>
    %c0_21 = arith.constant 0 : index
    %c0_22 = arith.constant 0 : index
    %18 = vector.load %arg9[%c0_21, %c0_22] : memref<190x32xf32, #tpu.memory_space<vmem>>, vector<190x32xf32>
    tpu.vector_store %arg9[%c0_21, %c0_22], %17 {strides = array<i32>} : memref<190x32xf32, #tpu.memory_space<vmem>>, vector<190x32xf32>,
    %c0_23 = arith.constant 0 : index
    %c0_24 = arith.constant 0 : index
    %c4 = arith.constant 4 : index
    %c0_25 = arith.constant 0 : index
    %19 = vector.load %arg5[%c0_23, %c0_24, %c4, %c0_25] : memref<1x1x361x16xbf16, #tpu.memory_space<vmem>>, vector<1x1x190x16xbf16>
    %20 = vector.shape_cast %19 : vector<1x1x190x16xbf16> to vector<190x16xbf16>
    %c0_26 = arith.constant 0 : index
    %c2_27 = arith.constant 2 : index
    %c0_28 = arith.constant 0 : index
    %c0_29 = arith.constant 0 : index
    %21 = vector.load %arg6[%c0_26, %c2_27, %c0_28, %c0_29] : memref<1x9x16x32xbf16, #tpu.memory_space<vmem>>, vector<1x1x16x32xbf16>
    %22 = vector.shape_cast %21 : vector<1x1x16x32xbf16> to vector<16x32xbf16>
    %c0_30 = arith.constant 0 : index
    %c0_31 = arith.constant 0 : index
    %23 = vector.load %arg9[%c0_30, %c0_31] : memref<190x32xf32, #tpu.memory_space<vmem>>, vector<190x32xf32>
    %cst_32 = arith.constant dense<0.000000e+00> : vector<190x32xf32>
    %24 = tpu.matmul %20, %22, %cst_32 {dimension_numbers = #tpu.dot_dimension_numbers<[1], [0], [0], [1], [0, 0, 1, 1], [], []>} : vector<190x16xbf16>, vector<16x32xbf16>, vector<190x32xf32> -> vector<190x32xf32>
    %25 = arith.addf %23, %24 : vector<190x32xf32>
    %c0_33 = arith.constant 0 : index
    %c0_34 = arith.constant 0 : index
    %26 = vector.load %arg9[%c0_33, %c0_34] : memref<190x32xf32, #tpu.memory_space<vmem>>, vector<190x32xf32>
    tpu.vector_store %arg9[%c0_33, %c0_34], %25 {strides = array<i32>} : memref<190x32xf32, #tpu.memory_space<vmem>>, vector<190x32xf32>,
    %c0_35 = arith.constant 0 : index
    %c0_36 = arith.constant 0 : index
    %c76 = arith.constant 76 : index
    %c0_37 = arith.constant 0 : index
    %27 = vector.load %arg5[%c0_35, %c0_36, %c76, %c0_37] : memref<1x1x361x16xbf16, #tpu.memory_space<vmem>>, vector<1x1x190x16xbf16>
    %28 = vector.shape_cast %27 : vector<1x1x190x16xbf16> to vector<190x16xbf16>
    %c0_38 = arith.constant 0 : index
    %c3 = arith.constant 3 : index
    %c0_39 = arith.constant 0 : index
    %c0_40 = arith.constant 0 : index
    %29 = vector.load %arg6[%c0_38, %c3, %c0_39, %c0_40] : memref<1x9x16x32xbf16, #tpu.memory_space<vmem>>, vector<1x1x16x32xbf16>
    %30 = vector.shape_cast %29 : vector<1x1x16x32xbf16> to vector<16x32xbf16>
    %c0_41 = arith.constant 0 : index
    %c0_42 = arith.constant 0 : index
    %31 = vector.load %arg9[%c0_41, %c0_42] : memref<190x32xf32, #tpu.memory_space<vmem>>, vector<190x32xf32>
    %cst_43 = arith.constant dense<0.000000e+00> : vector<190x32xf32>
    %32 = tpu.matmul %28, %30, %cst_43 {dimension_numbers = #tpu.dot_dimension_numbers<[1], [0], [0], [1], [0, 0, 1, 1], [], []>} : vector<190x16xbf16>, vector<16x32xbf16>, vector<190x32xf32> -> vector<190x32xf32>
    %33 = arith.addf %31, %32 : vector<190x32xf32>
    %c0_44 = arith.constant 0 : index
    %c0_45 = arith.constant 0 : index
    %34 = vector.load %arg9[%c0_44, %c0_45] : memref<190x32xf32, #tpu.memory_space<vmem>>, vector<190x32xf32>
    tpu.vector_store %arg9[%c0_44, %c0_45], %33 {strides = array<i32>} : memref<190x32xf32, #tpu.memory_space<vmem>>, vector<190x32xf32>,
    %c0_46 = arith.constant 0 : index
    %c0_47 = arith.constant 0 : index
    %c78 = arith.constant 78 : index
    %c0_48 = arith.constant 0 : index
    %35 = vector.load %arg5[%c0_46, %c0_47, %c78, %c0_48] : memref<1x1x361x16xbf16, #tpu.memory_space<vmem>>, vector<1x1x190x16xbf16>
    %36 = vector.shape_cast %35 : vector<1x1x190x16xbf16> to vector<190x16xbf16>
    %c0_49 = arith.constant 0 : index
    %c4_50 = arith.constant 4 : index
    %c0_51 = arith.constant 0 : index
    %c0_52 = arith.constant 0 : index
    %37 = vector.load %arg6[%c0_49, %c4_50, %c0_51, %c0_52] : memref<1x9x16x32xbf16, #tpu.memory_space<vmem>>, vector<1x1x16x32xbf16>
    %38 = vector.shape_cast %37 : vector<1x1x16x32xbf16> to vector<16x32xbf16>
    %c0_53 = arith.constant 0 : index
    %c0_54 = arith.constant 0 : index
    %39 = vector.load %arg9[%c0_53, %c0_54] : memref<190x32xf32, #tpu.memory_space<vmem>>, vector<190x32xf32>
    %cst_55 = arith.constant dense<0.000000e+00> : vector<190x32xf32>
    %40 = tpu.matmul %36, %38, %cst_55 {dimension_numbers = #tpu.dot_dimension_numbers<[1], [0], [0], [1], [0, 0, 1, 1], [], []>} : vector<190x16xbf16>, vector<16x32xbf16>, vector<190x32xf32> -> vector<190x32xf32>
    %41 = arith.addf %39, %40 : vector<190x32xf32>
    %c0_56 = arith.constant 0 : index
    %c0_57 = arith.constant 0 : index
    %42 = vector.load %arg9[%c0_56, %c0_57] : memref<190x32xf32, #tpu.memory_space<vmem>>, vector<190x32xf32>
    tpu.vector_store %arg9[%c0_56, %c0_57], %41 {strides = array<i32>} : memref<190x32xf32, #tpu.memory_space<vmem>>, vector<190x32xf32>,
    %c0_58 = arith.constant 0 : index
    %c0_59 = arith.constant 0 : index
    %c80 = arith.constant 80 : index
    %c0_60 = arith.constant 0 : index
    %43 = vector.load %arg5[%c0_58, %c0_59, %c80, %c0_60] : memref<1x1x361x16xbf16, #tpu.memory_space<vmem>>, vector<1x1x190x16xbf16>
    %44 = vector.shape_cast %43 : vector<1x1x190x16xbf16> to vector<190x16xbf16>
    %c0_61 = arith.constant 0 : index
    %c5 = arith.constant 5 : index
    %c0_62 = arith.constant 0 : index
    %c0_63 = arith.constant 0 : index
    %45 = vector.load %arg6[%c0_61, %c5, %c0_62, %c0_63] : memref<1x9x16x32xbf16, #tpu.memory_space<vmem>>, vector<1x1x16x32xbf16>
    %46 = vector.shape_cast %45 : vector<1x1x16x32xbf16> to vector<16x32xbf16>
    %c0_64 = arith.constant 0 : index
    %c0_65 = arith.constant 0 : index
    %47 = vector.load %arg9[%c0_64, %c0_65] : memref<190x32xf32, #tpu.memory_space<vmem>>, vector<190x32xf32>
    %cst_66 = arith.constant dense<0.000000e+00> : vector<190x32xf32>
    %48 = tpu.matmul %44, %46, %cst_66 {dimension_numbers = #tpu.dot_dimension_numbers<[1], [0], [0], [1], [0, 0, 1, 1], [], []>} : vector<190x16xbf16>, vector<16x32xbf16>, vector<190x32xf32> -> vector<190x32xf32>
    %49 = arith.addf %47, %48 : vector<190x32xf32>
    %c0_67 = arith.constant 0 : index
    %c0_68 = arith.constant 0 : index
    %50 = vector.load %arg9[%c0_67, %c0_68] : memref<190x32xf32, #tpu.memory_space<vmem>>, vector<190x32xf32>
    tpu.vector_store %arg9[%c0_67, %c0_68], %49 {strides = array<i32>} : memref<190x32xf32, #tpu.memory_space<vmem>>, vector<190x32xf32>,
    %c0_69 = arith.constant 0 : index
    %c0_70 = arith.constant 0 : index
    %c152 = arith.constant 152 : index
    %c0_71 = arith.constant 0 : index
    %51 = vector.load %arg5[%c0_69, %c0_70, %c152, %c0_71] : memref<1x1x361x16xbf16, #tpu.memory_space<vmem>>, vector<1x1x190x16xbf16>
    %52 = vector.shape_cast %51 : vector<1x1x190x16xbf16> to vector<190x16xbf16>
    %c0_72 = arith.constant 0 : index
    %c6 = arith.constant 6 : index
    %c0_73 = arith.constant 0 : index
    %c0_74 = arith.constant 0 : index
    %53 = vector.load %arg6[%c0_72, %c6, %c0_73, %c0_74] : memref<1x9x16x32xbf16, #tpu.memory_space<vmem>>, vector<1x1x16x32xbf16>
    %54 = vector.shape_cast %53 : vector<1x1x16x32xbf16> to vector<16x32xbf16>
    %c0_75 = arith.constant 0 : index
    %c0_76 = arith.constant 0 : index
    %55 = vector.load %arg9[%c0_75, %c0_76] : memref<190x32xf32, #tpu.memory_space<vmem>>, vector<190x32xf32>
    %cst_77 = arith.constant dense<0.000000e+00> : vector<190x32xf32>
    %56 = tpu.matmul %52, %54, %cst_77 {dimension_numbers = #tpu.dot_dimension_numbers<[1], [0], [0], [1], [0, 0, 1, 1], [], []>} : vector<190x16xbf16>, vector<16x32xbf16>, vector<190x32xf32> -> vector<190x32xf32>
    %57 = arith.addf %55, %56 : vector<190x32xf32>
    %c0_78 = arith.constant 0 : index
    %c0_79 = arith.constant 0 : index
    %58 = vector.load %arg9[%c0_78, %c0_79] : memref<190x32xf32, #tpu.memory_space<vmem>>, vector<190x32xf32>
    tpu.vector_store %arg9[%c0_78, %c0_79], %57 {strides = array<i32>} : memref<190x32xf32, #tpu.memory_space<vmem>>, vector<190x32xf32>,
    %c0_80 = arith.constant 0 : index
    %c0_81 = arith.constant 0 : index
    %c154 = arith.constant 154 : index
    %c0_82 = arith.constant 0 : index
    %59 = vector.load %arg5[%c0_80, %c0_81, %c154, %c0_82] : memref<1x1x361x16xbf16, #tpu.memory_space<vmem>>, vector<1x1x190x16xbf16>
    %60 = vector.shape_cast %59 : vector<1x1x190x16xbf16> to vector<190x16xbf16>
    %c0_83 = arith.constant 0 : index
    %c7 = arith.constant 7 : index
    %c0_84 = arith.constant 0 : index
    %c0_85 = arith.constant 0 : index
    %61 = vector.load %arg6[%c0_83, %c7, %c0_84, %c0_85] : memref<1x9x16x32xbf16, #tpu.memory_space<vmem>>, vector<1x1x16x32xbf16>
    %62 = vector.shape_cast %61 : vector<1x1x16x32xbf16> to vector<16x32xbf16>
    %c0_86 = arith.constant 0 : index
    %c0_87 = arith.constant 0 : index
    %63 = vector.load %arg9[%c0_86, %c0_87] : memref<190x32xf32, #tpu.memory_space<vmem>>, vector<190x32xf32>
    %cst_88 = arith.constant dense<0.000000e+00> : vector<190x32xf32>
    %64 = tpu.matmul %60, %62, %cst_88 {dimension_numbers = #tpu.dot_dimension_numbers<[1], [0], [0], [1], [0, 0, 1, 1], [], []>} : vector<190x16xbf16>, vector<16x32xbf16>, vector<190x32xf32> -> vector<190x32xf32>
    %65 = arith.addf %63, %64 : vector<190x32xf32>
    %c0_89 = arith.constant 0 : index
    %c0_90 = arith.constant 0 : index
    %66 = vector.load %arg9[%c0_89, %c0_90] : memref<190x32xf32, #tpu.memory_space<vmem>>, vector<190x32xf32>
    tpu.vector_store %arg9[%c0_89, %c0_90], %65 {strides = array<i32>} : memref<190x32xf32, #tpu.memory_space<vmem>>, vector<190x32xf32>,
    %c0_91 = arith.constant 0 : index
    %c0_92 = arith.constant 0 : index
    %c156 = arith.constant 156 : index
    %c0_93 = arith.constant 0 : index
    %67 = vector.load %arg5[%c0_91, %c0_92, %c156, %c0_93] : memref<1x1x361x16xbf16, #tpu.memory_space<vmem>>, vector<1x1x190x16xbf16>
    %68 = vector.shape_cast %67 : vector<1x1x190x16xbf16> to vector<190x16xbf16>
    %c0_94 = arith.constant 0 : index
    %c8 = arith.constant 8 : index
    %c0_95 = arith.constant 0 : index
    %c0_96 = arith.constant 0 : index
    %69 = vector.load %arg6[%c0_94, %c8, %c0_95, %c0_96] : memref<1x9x16x32xbf16, #tpu.memory_space<vmem>>, vector<1x1x16x32xbf16>
    %70 = vector.shape_cast %69 : vector<1x1x16x32xbf16> to vector<16x32xbf16>
    %c0_97 = arith.constant 0 : index
    %c0_98 = arith.constant 0 : index
    %71 = vector.load %arg9[%c0_97, %c0_98] : memref<190x32xf32, #tpu.memory_space<vmem>>, vector<190x32xf32>
    %cst_99 = arith.constant dense<0.000000e+00> : vector<190x32xf32>
    %72 = tpu.matmul %68, %70, %cst_99 {dimension_numbers = #tpu.dot_dimension_numbers<[1], [0], [0], [1], [0, 0, 1, 1], [], []>} : vector<190x16xbf16>, vector<16x32xbf16>, vector<190x32xf32> -> vector<190x32xf32>
    %73 = arith.addf %71, %72 : vector<190x32xf32>
    %c0_100 = arith.constant 0 : index
    %c0_101 = arith.constant 0 : index
    %74 = vector.load %arg9[%c0_100, %c0_101] : memref<190x32xf32, #tpu.memory_space<vmem>>, vector<190x32xf32>
    tpu.vector_store %arg9[%c0_100, %c0_101], %73 {strides = array<i32>} : memref<190x32xf32, #tpu.memory_space<vmem>>, vector<190x32xf32>,
    %c0_i32_102 = arith.constant 0 : i32
    %75 = arith.cmpi eq, %arg2, %c0_i32_102 : i32
    %76 = arith.extui %75 : i1 to i32
    %c0_i32_103 = arith.constant 0 : i32
    %77 = arith.cmpi ne, %76, %c0_i32_103 : i32
    scf.if %77 {
      %c0_104 = arith.constant 0 : index
      %c0_105 = arith.constant 0 : index
      %78 = vector.load %arg9[%c0_104, %c0_105] : memref<190x32xf32, #tpu.memory_space<vmem>>, vector<190x32xf32>
      %c0_106 = arith.constant 0 : index
      %c0_107 = arith.constant 0 : index
      %79 = vector.load %arg7[%c0_106, %c0_107] : memref<1x32xf32, #tpu.memory_space<vmem>>, vector<1x32xf32>
      %80 = vector.broadcast %79 : vector<1x32xf32> to vector<190x32xf32>
      %81 = arith.addf %78, %80 : vector<190x32xf32>
      %cst_108 = arith.constant 5.000000e-01 : f32
      %82 = vector.broadcast %cst_108 : f32 to vector<190x32xf32>
      %83 = arith.mulf %81, %82 : vector<190x32xf32>
      %84 = arith.mulf %81, %81 : vector<190x32xf32>
      %85 = arith.mulf %84, %81 : vector<190x32xf32>
      %cst_109 = arith.constant 4.471500e-02 : f32
      %86 = vector.broadcast %cst_109 : f32 to vector<190x32xf32>
      %87 = arith.mulf %85, %86 : vector<190x32xf32>
      %88 = arith.addf %81, %87 : vector<190x32xf32>
      %cst_110 = arith.constant 0.797884583 : f32
      %89 = vector.broadcast %cst_110 : f32 to vector<190x32xf32>
      %90 = arith.mulf %88, %89 : vector<190x32xf32>
      %91 = math.tanh %90 : vector<190x32xf32>
      %cst_111 = arith.constant 1.000000e+00 : f32
      %92 = vector.broadcast %cst_111 : f32 to vector<190x32xf32>
      %93 = arith.addf %91, %92 : vector<190x32xf32>
      %94 = arith.mulf %83, %93 : vector<190x32xf32>
      %95 = arith.truncf %94 : vector<190x32xf32> to vector<190x32xbf16>
      %c0_112 = arith.constant 0 : index
      %c0_113 = arith.constant 0 : index
      %c0_114 = arith.constant 0 : index
      %c0_115 = arith.constant 0 : index
      %96 = vector.load %arg8[%c0_112, %c0_113, %c0_114, %c0_115] : memref<1x1x190x32xbf16, #tpu.memory_space<vmem>>, vector<1x1x190x32xbf16>
      %97 = vector.shape_cast %96 : vector<1x1x190x32xbf16> to vector<190x32xbf16>
      %98 = vector.shape_cast %95 : vector<190x32xbf16> to vector<1x1x190x32xbf16>
      tpu.vector_store %arg8[%c0_112, %c0_113, %c0_114, %c0_115], %98 {strides = array<i32>} : memref<1x1x190x32xbf16, #tpu.memory_space<vmem>>, vector<1x1x190x32xbf16>,
    } else {
    }
    return
  }
  func.func @transform_0(%arg0: i32, %arg1: i32, %arg2: i32, %arg3: memref<12xi32, #tpu.memory_space<smem>>, %arg4: memref<12xi32, #tpu.memory_space<smem>>) -> (i32, i32, i32, i32) {
    %c1_i32 = arith.constant 1 : i32
    %0 = arith.muli %arg1, %c1_i32 : i32
    %1 = arith.addi %0, %arg2 : i32
    %2 = arith.index_cast %1 : i32 to index
    %3 = memref.load %arg3[%2] : memref<12xi32, #tpu.memory_space<smem>>
    %c0_i32 = arith.constant 0 : i32
    %c0_i32_0 = arith.constant 0 : i32
    %c0_i32_1 = arith.constant 0 : i32
    return %arg0, %3, %c0_i32, %c0_i32_0 : i32, i32, i32, i32
  }
  func.func @transform_1(%arg0: i32, %arg1: i32, %arg2: i32, %arg3: memref<12xi32, #tpu.memory_space<smem>>, %arg4: memref<12xi32, #tpu.memory_space<smem>>) -> (i32, i32, i32, i32) {
    %c1_i32 = arith.constant 1 : i32
    %0 = arith.muli %arg1, %c1_i32 : i32
    %1 = arith.addi %0, %arg2 : i32
    %2 = arith.index_cast %1 : i32 to index
    %3 = memref.load %arg4[%2] : memref<12xi32, #tpu.memory_space<smem>>
    %c0_i32 = arith.constant 0 : i32
    %c0_i32_0 = arith.constant 0 : i32
    %c0_i32_1 = arith.constant 0 : i32
    %c0_i32_2 = arith.constant 0 : i32
    return %3, %c0_i32, %c0_i32_0, %c0_i32_1 : i32, i32, i32, i32
  }
  func.func @transform_2(%arg0: i32, %arg1: i32, %arg2: i32, %arg3: memref<12xi32, #tpu.memory_space<smem>>, %arg4: memref<12xi32, #tpu.memory_space<smem>>) -> (i32, i32) {
    %c0_i32 = arith.constant 0 : i32
    %c0_i32_0 = arith.constant 0 : i32
    %c0_i32_1 = arith.constant 0 : i32
    return %c0_i32, %c0_i32_0 : i32, i32
  }
  func.func @transform_3(%arg0: i32, %arg1: i32, %arg2: i32, %arg3: memref<12xi32, #tpu.memory_space<smem>>, %arg4: memref<12xi32, #tpu.memory_space<smem>>) -> (i32, i32, i32, i32) {
    %c0_i32 = arith.constant 0 : i32
    %c0_i32_0 = arith.constant 0 : i32
    %c0_i32_1 = arith.constant 0 : i32
    return %arg0, %arg1, %c0_i32, %c0_i32_0 : i32, i32, i32, i32
  }
}

</mosaic_0001>

<bundles_post_ra>
// kernel: conv_transpose3d_gelu.1
= control target key start
LH: loop header
LB: loop body
LE: loop exit
PB: predicated region body
PF: predicated region fallthrough
CT: control target
= control target key end

     0   :  { %s4222_s24 = smov [#allocation4]   ;;  %s4223_s25 = smov [#allocation5]   ;;  %s5392_s0 = inlined_call_operand.vmem [shape: s32[12], index: 0, kind: input, shape index: {}]   ;;  %s5393_s2 = inlined_call_operand.vmem [shape: bf16[2,5,361,16], index: 2, kind: input, shape index: {}]   ;;  %s5394_s3 = inlined_call_operand.vmem [shape: bf16[3,9,16,32], index: 3, kind: input, shape index: {}]   ;;  %s5395_s4 = inlined_call_operand.vmem [shape: f32[1,32], index: 4, kind: input, shape index: {}]   ;;  %s5396_s5 = inlined_call_operand.vmem [shape: bf16[2,12,190,32], index: 5, kind: output, shape index: {}]   ;;  %s5397_s1 = inlined_call_operand.vmem [shape: s32[12], index: 1, kind: input, shape index: {}]  }
   0x1   :  { %s11_s20 = sshll.u32 %s5392_s0, 4  ;;  %s16_s23 = sshll.u32 %s5397_s1, 4  ;;  %s12_s20 = int_to_ptr.vmem [resolvable:$true] %s11_s20  ;;  %s17_s23 = int_to_ptr.vmem [resolvable:$true] %s16_s23 }
   0x2   :  { %14 = dma.vmem_to_smem %s12_s20, 16, %s4222_s24, [#allocation3] }
   0x3   :  { %19 = dma.vmem_to_smem %s17_s23, 16, %s4223_s25, [#allocation3] }
   0x4   :  { %4200 = dma.done.wait [#allocation3], 32 }
   0x5   :  { %4201 = vsyncadd [#allocation3], 4294967264 }
   0x6   :  { %22 = sfence }
   0x7   :  { %s4261_s26 = smov 0   ;;  %s4263_s27 = smov 0  }
   0x8   :  { %s4265_s28 = smov 0   ;;  %s4267_s0 = smov 0  }
   0x9   :  { %s4269_s29 = smov 0  }
   0xa LB: > { %s43_s1 = sadd.s32 1, %s4212_s28  ;;  %s47_s30 = sadd.s32 1, %s4216_s0  ;;  %s4220_s29 = sphi %s4269_s29, %s28_s29   ;;  %s4216_s0 = sphi %s4267_s0, %s5401_s0   ;;  %s4212_s28 = sphi %s4265_s28, %s5400_s28   ;;  %s4208_s27 = sphi %s4263_s27, %s5399_s27   ;;  %s4204_s26 = sphi %s4261_s26, %s5398_s26  }
   0xb   : > { %p45_p0 = scmp.ge.s32.totalorder %s43_s1, 12  ;;  %p3340_p1 = scmp.ge.s32.totalorder %s4220_s29, 1 }
   0xc   : > { %p205_p2 = scmp.lt.s32.totalorder %s4220_s29, 25 }
   0xd   : > { %s5403_s1 = smov (%p45_p0, %s43_s1), 0  ;;  %s5405_s30 = smov (!%p45_p0, %s47_s30), %s4216_s0 }
   0xe   : > { %p206_p3 = pnand %p3340_p1, %p205_p2  ;;  %p49_p4 = scmp.ge.s32.totalorder %s5405_s30, 2 }
   0xf   : > { %s260_s6 = sld [smem:[#allocation5 + %s4204_s26]] (!%p206_p3)  ;;  %p248_p5 = scmp.lt.s32.totalorder (!%p206_p3), %s4208_s27, 1 }
  0x10   : > { %s5407_s30 = smov (%p49_p4, %s5405_s30), 0  ;;  %209 = sbr.rel (%p206_p3) target bundleno = 649 (0x289), region = 32 }
  0x11   : > { %s247_s7 = sld [smem:[#allocation4 + %s4204_s26]] (!%p206_p3)  ;;  %p270_p8 = scmp.lt.s32.totalorder (!%p206_p3), %s4204_s26, 11 }
  0x15   : > { %s5409_s27 = smov (!%p248_p5, %s4208_s27), 1  ;;  %p261_p6 = scmp.lt.s32.totalorder %s260_s6, 2  ;;  %vm424_vm0 = vcmask 130048   ;;  %vm691_vm1 = vcmask 1046528   ;;  %vm989_vm2 = vcmask 1045504   ;;  %vm1588_vm3 = vcmask 1044480  }
  0x16   : > { %s4059_s8 = smul.u32 230, %s5409_s27  ;;  %vm282_vm4 = vcmask 261120   ;;  %vm306_vm5 = vcmask 259072   ;;  %s5415_s26 = smov (!%p270_p8, %s4204_s26), 11  ;;  %vm3200_vm6 = vcmask 257024   ;;  %vm3224_vm7 = vcmask 256000  }
  0x17   : > { %p250_p7 = scmp.lt.s32.totalorder %s247_s7, 4  ;;  %s5411_s6 = smov (!%p261_p6, %s260_s6), 2 }
  0x18   : > { %s4060_s9 = smul.u32 72, %s5411_s6 }
  0x19   : > { %s5413_s7 = smov (!%p250_p7, %s247_s7), 4  ;;  %s4062_s21 = smul.u32 288, %s5409_s27 }
  0x1a   : > { %s4058_s10 = smul.u32 46, %s5413_s7  ;;  %s4301_s13 = scalar_lea.vmem %s5394_s3, %s4060_s9 }
  0x1b   : > { %v3950_v0 = vld [vmem:[%s4301_s13] sm:$0xff]  ;;  %v3963_v1 = vld [vmem:[%s4301_s13 + $0x8] sm:$0xff]  ;;  %v3976_v2 = vld [vmem:[%s4301_s13 + $0x10] sm:$0xff]  ;;  %s4061_s22 = smul.u32 24, %s5415_s26 }
  0x1c   : > { %s254_s14 = sadd.s32 %s4059_s8, %s4058_s10  ;;  %v3989_v3 = vld [vmem:[%s4301_s13 + $0x18] sm:$0xff]  ;;  %4055 = vmatpush.bf16.msra.mxu1 %v3950_v0  ;;  %4056 = vmatpush.bf16.msra.mxu2 %v3950_v0  ;;  %v4002_v4 = vld [vmem:[%s4301_s13 + $0x20] sm:$0xff]  ;;  %v4015_v13 = vld [vmem:[%s4301_s13 + $0x28] sm:$0xff] }
  0x1d   : > { %s3341_s15 = sshll.u32 %s254_s14, 2  ;;  %4057 = vmatpush.bf16.msra.mxu3 %v3950_v0  ;;  %468 = vmatpush.bf16.msra.mxu0 %v3950_v0  ;;  %v4028_v14 = vld [vmem:[%s4301_s13 + $0x30] sm:$0xff]  ;;  %v4041_v15 = vld [vmem:[%s4301_s13 + $0x38] sm:$0xff]  ;;  %v4054_v23 = vld [vmem:[%s4301_s13 + $0x40] sm:$0xff]  ;;  %s274_s23 = sadd.s32 %s4062_s21, %s4061_s22 }
  0x1e   : > { %s4310_s18 = scalar_lea.vmem %s5393_s2, %s3341_s15  ;;  %s3343_s24 = sshll.u32 %s274_s23, 2 }
  0x1f   : > { %v3941_v5 = vld [vmem:[%s4310_s18 + $0x18] sm:$0xff]  ;;  %v3944_v6 = vld [vmem:[%s4310_s18 + $0x30] sm:$0xff]  ;;  %v3947_v7 = vld [vmem:[%s4310_s18 + $0x48] sm:$0xff]  ;;  %s5094_s27 = scalar_lea.vmem %s5396_s5, %s3343_s24 }
  0x20   : > { %764 = vmatpush.bf16.msrb.mxu1 %v3963_v1  ;;  %1064 = vmatpush.bf16.msrb.mxu2 %v3976_v2  ;;  %v3938_v8 = vld [vmem:[%s4310_s18] sm:$0xff]  ;;  %v3945_v10 = vld [vmem:[%s4310_s18 + $0x38] sm:$0xff]  ;;  %v3948_v11 = vld [vmem:[%s4310_s18 + $0x50] sm:$0xff] }
  0x21   : > { %1363 = vmatpush.bf16.msrb.mxu3 %v3989_v3  ;;  %3399 = vmatmul.msk.bf16.vlgmr.msra.gmra.mxu1 %vm424_vm0, %v3941_v5  ;;  %v3942_v9 = vld [vmem:[%s4310_s18 + $0x20] sm:$0xff]  ;;  %v3939_v12 = vld [vmem:[%s4310_s18 + $0x8] sm:$0xff]  ;;  %v3390_v16 = vld [vmem:[%s4310_s18 + $0x58] sm:$0xf] }
  0x22   : > { %3402 = vmatmul.msk.bf16.vlgmr.msra.gmra.mxu2 %vm424_vm0, %v3944_v6  ;;  %3405 = vmatmul.msk.bf16.vlgmr.msra.gmra.mxu3 %vm424_vm0, %v3947_v7  ;;  %v3949_v17 = vld [vmem:[%s4310_s18 + $0x58] sm:$0x70]  ;;  %v3943_v18 = vld [vmem:[%s4310_s18 + $0x28] sm:$0xff]  ;;  %v3946_v19 = vld [vmem:[%s4310_s18 + $0x40] sm:$0xff] }
  0x23   : > { %1663 = vmatpush.bf16.msrb.mxu0 %v4002_v4  ;;  %v3391_v20 = vor.u32 %v3949_v17, %v3390_v16  ;;  %v3940_v21 = vld [vmem:[%s4310_s18 + $0x10] sm:$0xff]  ;;  %v3412_v22 = vld [vmem:[%s4310_s18] sm:$0xe]  ;;  %v3951_v24 = vld [vmem:[%s4310_s18] sm:$0xf0] }
  0x24   : > { %3396 = vmatmul.msk.bf16.vlgmr.msra.gmra.mxu0 %vm424_vm0, %v3938_v8  ;;  %1933 = vmatpush.bf16.msra.mxu1 %v4015_v13  ;;  %v3478_v25 = vld [vmem:[%s4310_s18] sm:$0xc]  ;;  %v3964_v26 = vld [vmem:[%s4310_s18] sm:$0xf0]  ;;  %v3977_v28 = vld [vmem:[%s4310_s18 + $0x24] sm:$0xf0]  ;;  %v3413_v30 = vor.u32 %v3951_v24, %v3412_v22 }
  0x25   : > { %2203 = vmatpush.bf16.msra.mxu2 %v4028_v14  ;;  %2496 = vmatpush.bf16.msra.mxu3 %v4041_v15  ;;  %v3544_v27 = vld [vmem:[%s4310_s18 + $0x24] sm:$0xc]  ;;  %v3952_v29 = vld [vmem:[%s4310_s18 + $0x8] sm:$0xff]  ;;  %v3479_v32 = vor.u32 %v3964_v26, %v3478_v25  ;;  %v3953_v51 = vld [vmem:[%s4310_s18 + $0x10] sm:$0xff] }
  0x26   : > { %v3965_v31 = vld [vmem:[%s4310_s18 + $0x8] sm:$0xff]  ;;  %v3545_v34 = vor.u32 %v3977_v28, %v3544_v27  ;;  %v3610_v35 = vld [vmem:[%s4310_s18 + $0x24] sm:$0x8]  ;;  %v693_v37 = vrot.slane %v3952_v29, 1  ;;  %v692_v38 = vrot.slane %v3413_v30, 1  ;;  %v3966_v52 = vld [vmem:[%s4310_s18 + $0x10] sm:$0xff] }
  0x27   : > { %2795 = vmatpush.bf16.msra.mxu0 %v4054_v23  ;;  %v3978_v33 = vld [vmem:[%s4310_s18 + $0x2c] sm:$0xff]  ;;  %v3990_v36 = vld [vmem:[%s4310_s18 + $0x24] sm:$0xf0]  ;;  %v990_v39 = vrot.slane %v3479_v32, 2  ;;  %v991_v40 = vrot.slane %v3965_v31, 2  ;;  %v3979_v53 = vld [vmem:[%s4310_s18 + $0x34] sm:$0xff] }
  0x28   : > { %v3991_v41 = vld [vmem:[%s4310_s18 + $0x2c] sm:$0xff]  ;;  %v3611_v42 = vor.u32 %v3990_v36, %v3610_v35  ;;  %v1289_v43 = vrot.slane %v3545_v34, 2  ;;  %v1290_v44 = vrot.slane %v3978_v33, 2  ;;  %v694_v45 = vsel %vm691_vm1, %v692_v38, %v693_v37  ;;  %v3992_v56 = vld [vmem:[%s4310_s18 + $0x34] sm:$0xff]  ;;  %v3980_v1 = vld [vmem:[%s4310_s18 + $0x3c] sm:$0xff] }
  0x29   : > { %v992_v46 = vsel %vm989_vm2, %v990_v39, %v991_v40  ;;  %v1590_v48 = vrot.slane %v3991_v41, 3  ;;  %v695_v54 = vrot.slane %v3953_v51, 1  ;;  %v993_v55 = vrot.slane %v3966_v52, 2  ;;  %v3954_v63 = vld [vmem:[%s4310_s18 + $0x18] sm:$0xff]  ;;  %v3968_v13 = vld [vmem:[%s4310_s18 + $0x20] sm:$0xff]  ;;  %v3956_v24 = vld [vmem:[%s4310_s18 + $0x28] sm:$0xff] }
  0x2a   : > { %v1589_v47 = vrot.slane %v3611_v42, 3  ;;  %v1291_v49 = vsel %vm989_vm2, %v1289_v43, %v1290_v44  ;;  %v1292_v57 = vrot.slane %v3979_v53, 2  ;;  %v1592_v60 = vrot.slane %v3992_v56, 3  ;;  %v3967_v0 = vld [vmem:[%s4310_s18 + $0x18] sm:$0xff]  ;;  %v3981_v14 = vld [vmem:[%s4310_s18 + $0x44] sm:$0xff]  ;;  %v3982_v26 = vld [vmem:[%s4310_s18 + $0x4c] sm:$0xff] }
  0x2b   : > { %v696_v58 = vsel %vm691_vm1, %v693_v37, %v695_v54  ;;  %v994_v59 = vsel %vm989_vm2, %v991_v40, %v993_v55  ;;  %v697_v2 = vrot.slane %v3954_v63, 1  ;;  %v995_v3 = vrot.slane %v3967_v0, 2  ;;  %v3993_v4 = vld [vmem:[%s4310_s18 + $0x3c] sm:$0xff]  ;;  %v3994_v17 = vld [vmem:[%s4310_s18 + $0x44] sm:$0xff]  ;;  %v3995_v29 = vld [vmem:[%s4310_s18 + $0x4c] sm:$0xff] }
  0x2c   : > { %v1591_v50 = vsel %vm1588_vm3, %v1589_v47, %v1590_v48  ;;  %v1293_v61 = vsel %vm989_vm2, %v1290_v44, %v1292_v57  ;;  %v1593_v62 = vsel %vm1588_vm3, %v1590_v48, %v1592_v60  ;;  %v1294_v5 = vrot.slane %v3980_v1, 2  ;;  %v3969_v25 = vld [vmem:[%s4310_s18 + $0x28] sm:$0xff]  ;;  %v3957_v36 = vld [vmem:[%s4310_s18 + $0x30] sm:$0xff]  ;;  %v4477_v63 = vld [vmem:[%s4310_s18 + $0x38] sm:$0xff] }
  0x2d   : > { %v698_v6 = vsel %vm691_vm1, %v695_v54, %v697_v2  ;;  %v996_v7 = vsel %vm989_vm2, %v993_v55, %v995_v3  ;;  %v1594_v8 = vrot.slane %v3993_v4, 3  ;;  %v997_v16 = vrot.slane %v3968_v13, 2  ;;  %v3970_v37 = vld [vmem:[%s4310_s18 + $0x30] sm:$0xff]  ;;  %v4481_v1 = vld [vmem:[%s4310_s18 + $0x5c] sm:$0xff] }
  0x2e   : > { %v701_v27 = vrot.slane %v3956_v24, 1  ;;  %v999_v28 = vrot.slane %v3969_v25, 2  ;;  %v1298_v30 = vrot.slane %v3982_v26, 2  ;;  %v1598_v33 = vrot.slane %v3995_v29, 3  ;;  %v3983_v38 = vld [vmem:[%s4310_s18 + $0x54] sm:$0xff] }
  0x2f   : > { %v703_v39 = vrot.slane %v3957_v36, 1  ;;  %v1001_v40 = vrot.slane %v3970_v37, 2  ;;  %v4460_v41 = vld [vmem:[%s4310_s18 + $0x54] sm:$0xff]  ;;  %v1300_v42 = vrot.slane %v3983_v38, 2  ;;  %v4521_v37 = vld [vmem:[%s4310_s18 + $0x64] sm:$0xff] }
  0x30   : > { %v1000_v32 = vsel %vm989_vm2, %v997_v16, %v999_v28  ;;  %v1600_v47 = vrot.slane %v4460_v41, 3 }
  0x31   : > { %3400 = vmatmul.msk.bf16.gmra.mxu1 %vm424_vm0, %v3942_v9  ;;  %v1295_v9 = vsel %vm989_vm2, %v1292_v57, %v1294_v5 }
  0x32   : > { %3403 = vmatmul.msk.bf16.gmra.mxu2 %vm424_vm0, %v3945_v10  ;;  %3406 = vmatmul.msk.bf16.gmra.mxu3 %vm424_vm0, %v3948_v11  ;;  %v1595_v10 = vsel %vm1588_vm3, %v1592_v60, %v1594_v8  ;;  %v4224_v11 = vmov 0.0   ;;  %v1601_v53 = vsel %vm1588_vm3, %v1598_v33, %v1600_v47 }
  0x33   : > { %289 = vst.msk [vmem:[#allocation2 + $0x30] sm:$0xff] %vm282_vm4, %v4224_v11 }
  0x34   : > { %3397 = vmatmul.msk.bf16.gmra.mxu0 %vm424_vm0, %v3939_v12  ;;  %283 = vst.msk [vmem:[#allocation2] sm:$0xff] %vm282_vm4, %v4224_v11  ;;  %v3955_v12 = vld [vmem:[%s4310_s18 + $0x20] sm:$0xff] }
  0x35   : > { %284 = vst.msk [vmem:[#allocation2 + $0x8] sm:$0xff] %vm282_vm4, %v4224_v11  ;;  %v699_v15 = vrot.slane %v3955_v12, 1 }
  0x36   : > { %285 = vst.msk [vmem:[#allocation2 + $0x10] sm:$0xff] %vm282_vm4, %v4224_v11 }
  0x37   : > { %286 = vst.msk [vmem:[#allocation2 + $0x18] sm:$0xff] %vm282_vm4, %v4224_v11  ;;  %v702_v31 = vsel %vm691_vm1, %v699_v15, %v701_v27 }
  0x38   : > { %287 = vst.msk [vmem:[#allocation2 + $0x20] sm:$0xff] %vm282_vm4, %v4224_v11 }
  0x39   : > { %288 = vst.msk [vmem:[#allocation2 + $0x28] sm:$0xff] %vm282_vm4, %v4224_v11 }
  0x3a   : > { %290 = vst.msk [vmem:[#allocation2 + $0x38] sm:$0xff] %vm282_vm4, %v4224_v11  ;;  %v340_v43 = vld [vmem:[#allocation2 + $0x30] sm:$0xff] }
  0x3b   : > { %291 = vst.msk [vmem:[#allocation2 + $0x40] sm:$0xff] %vm282_vm4, %v4224_v11 }
  0x3c   : > { %292 = vst.msk [vmem:[#allocation2 + $0x48] sm:$0xff] %vm282_vm4, %v4224_v11 }
  0x3d   : > { %293 = vst.msk [vmem:[#allocation2 + $0x50] sm:$0xff] %vm282_vm4, %v4224_v11 }
  0x3e   : > { %294 = vst.msk [vmem:[#allocation2 + $0x58] sm:$0xff] %vm282_vm4, %v4224_v11  ;;  %v337_v38 = vld [vmem:[#allocation2 + $0x18] sm:$0xff] }
  0x3f   : > { %295 = vst.msk [vmem:[#allocation2 + $0x60] sm:$0xff] %vm282_vm4, %v4224_v11 }
  0x40   : > { %296 = vst.msk [vmem:[#allocation2 + $0x68] sm:$0xff] %vm282_vm4, %v4224_v11 }
  0x41   : > { %3401 = vmatmul.msk.bf16.gmra.mxu1 %vm424_vm0, %v3943_v18  ;;  %v1296_v18 = vrot.slane %v3981_v14, 2  ;;  %297 = vst.msk [vmem:[#allocation2 + $0x70] sm:$0xff] %vm282_vm4, %v4224_v11  ;;  %v341_v57 = vld [vmem:[#allocation2 + $0x38] sm:$0xff] }
  0x42   : > { %3404 = vmatmul.msk.bf16.gmra.mxu2 %vm424_vm0, %v3946_v19  ;;  %3407 = vmatmul.msk.bf16.gmra.mxu3 %vm424_vm0, %v3391_v20  ;;  %v700_v19 = vsel %vm691_vm1, %v697_v2, %v699_v15  ;;  %v998_v20 = vsel %vm989_vm2, %v995_v3, %v997_v16  ;;  %298 = vst.msk [vmem:[#allocation2 + $0x78] sm:$0xff] %vm282_vm4, %v4224_v11  ;;  %v335_v2 = vld [vmem:[#allocation2 + $0x8] sm:$0xff]  ;;  %v342_v13 = vld [vmem:[#allocation2 + $0x40] sm:$0xff] }
  0x43   : > { %v1297_v22 = vsel %vm989_vm2, %v1294_v5, %v1296_v18  ;;  %299 = vst.msk [vmem:[#allocation2 + $0x80] sm:$0xff] %vm282_vm4, %v4224_v11  ;;  %v1299_v34 = vsel %vm989_vm2, %v1296_v18, %v1298_v30  ;;  %v1003_v5 = vrot.slane %v4477_v63, 2  ;;  %v343_v29 = vld [vmem:[#allocation2 + $0x48] sm:$0xff] }
  0x44   : > { %3398 = vmatmul.msk.bf16.gmra.mxu0 %vm424_vm0, %v3940_v21  ;;  %v1596_v21 = vrot.slane %v3994_v17, 3  ;;  %300 = vst.msk [vmem:[#allocation2 + $0x88] sm:$0xff] %vm282_vm4, %v4224_v11 }
  0x45   : > { %301 = vst.msk [vmem:[#allocation2 + $0x90] sm:$0xff] %vm282_vm4, %v4224_v11  ;;  %v1004_v18 = vsel %vm989_vm2, %v1001_v40, %v1003_v5 }
  0x46   : > { %v1597_v23 = vsel %vm1588_vm3, %v1594_v8, %v1596_v21  ;;  %302 = vst.msk [vmem:[#allocation2 + $0x98] sm:$0xff] %vm282_vm4, %v4224_v11  ;;  %v1599_v35 = vsel %vm1588_vm3, %v1596_v21, %v1598_v33  ;;  %v346_v51 = vld [vmem:[#allocation2 + $0x60] sm:$0xff] }
  0x47   : > { %303 = vst.msk [vmem:[#allocation2 + $0xa0] sm:$0xff] %vm282_vm4, %v4224_v11  ;;  %v347_v3 = vld [vmem:[#allocation2 + $0x68] sm:$0xff] }
  0x48   : > { %304 = vst.msk [vmem:[#allocation2 + $0xa8] sm:$0xff] %vm282_vm4, %v4224_v11 }
  0x49   : > { %305 = vst.msk [vmem:[#allocation2 + $0xb0] sm:$0xff] %vm282_vm4, %v4224_v11 }
  0x4a   : > { %307 = vst.msk [vmem:[#allocation2 + $0xb8] sm:$0x3f] %vm306_vm5, %v4224_v11 }
  0x4c   : > { %v352_v54 = vld [vmem:[#allocation2 + $0x90] sm:$0xff] }
  0x4d   : > { %v353_v8 = vld [vmem:[#allocation2 + $0x98] sm:$0xff] }
  0x4e   : > { %v354_v26 = vld [vmem:[#allocation2 + $0xa0] sm:$0xff] }
  0x51   : > { %3462 = vmatmul.msk.bf16.vlgmr.msrb.gmra.mxu1 %vm424_vm0, %v694_v45  ;;  %v704_v45 = vsel %vm691_vm1, %v701_v27, %v703_v39 }
  0x52   : > { %3528 = vmatmul.msk.bf16.vlgmr.msrb.gmra.mxu2 %vm424_vm0, %v992_v46  ;;  %3594 = vmatmul.msk.bf16.vlgmr.msrb.gmra.mxu3 %vm424_vm0, %v1291_v49  ;;  %v1002_v46 = vsel %vm989_vm2, %v999_v28, %v1001_v40  ;;  %v1301_v49 = vsel %vm989_vm2, %v1298_v30, %v1300_v42 }
  0x54   : > { %3660 = vmatmul.msk.bf16.vlgmr.msrb.gmra.mxu0 %vm424_vm0, %v1591_v50  ;;  %v334_v50 = vld [vmem:[#allocation2] sm:$0xff] }
  0x61   : > { %3463 = vmatmul.msk.bf16.gmra.mxu1 %vm424_vm0, %v696_v58 }
  0x62   : > { %3529 = vmatmul.msk.bf16.gmra.mxu2 %vm424_vm0, %v994_v59  ;;  %3595 = vmatmul.msk.bf16.gmra.mxu3 %vm424_vm0, %v1293_v61 }
  0x64   : > { %3661 = vmatmul.msk.bf16.gmra.mxu0 %vm424_vm0, %v1593_v62  ;;  %v4474_v62 = vld [vmem:[%s4310_s18 + $0x38] sm:$0xff] }
  0x65   : > { %v705_v4 = vrot.slane %v4474_v62, 1  ;;  %v356_v62 = vld [vmem:[#allocation2 + $0xb0] sm:$0xff] }
  0x67   : > { %v706_v17 = vsel %vm691_vm1, %v703_v39, %v705_v4  ;;  %v349_v39 = vld [vmem:[#allocation2 + $0x78] sm:$0xff] }
  0x71   : > { %3464 = vmatmul.msk.bf16.gmra.mxu1 %vm424_vm0, %v698_v6 }
  0x72   : > { %3530 = vmatmul.msk.bf16.gmra.mxu2 %vm424_vm0, %v996_v7  ;;  %3596 = vmatmul.msk.bf16.gmra.mxu3 %vm424_vm0, %v1295_v9  ;;  %v4488_v7 = vld [vmem:[%s4310_s18 + $0x5c] sm:$0xff]  ;;  %v1302_v9 = vrot.slane %v4481_v1, 2 }
  0x73   : > { %v345_v1 = vld [vmem:[#allocation2 + $0x58] sm:$0xff] }
  0x74   : > { %3662 = vmatmul.msk.bf16.gmra.mxu0 %vm424_vm0, %v1595_v10  ;;  %v1303_v21 = vsel %vm989_vm2, %v1300_v42, %v1302_v9 }
  0x81   : > { %3465 = vmatmul.msk.bf16.gmra.mxu1 %vm424_vm0, %v700_v19 }
  0x82   : > { %3531 = vmatmul.msk.bf16.gmra.mxu2 %vm424_vm0, %v998_v20  ;;  %3597 = vmatmul.msk.bf16.gmra.mxu3 %vm424_vm0, %v1297_v22  ;;  %v1602_v20 = vrot.slane %v4488_v7, 3  ;;  %v336_v22 = vld [vmem:[#allocation2 + $0x10] sm:$0xff]  ;;  %v3973_v7 = vld [vmem:[%s4310_s18 + $0x48] sm:$0xff] }
  0x84   : > { %3663 = vmatmul.msk.bf16.gmra.mxu0 %vm424_vm0, %v1597_v23  ;;  %v348_v23 = vld [vmem:[#allocation2 + $0x70] sm:$0xff]  ;;  %v1603_v25 = vsel %vm1588_vm3, %v1600_v47, %v1602_v20 }
  0x91   : > { %3466 = vmatmul.msk.bf16.gmra.mxu1 %vm424_vm0, %v702_v31 }
  0x92   : > { %3532 = vmatmul.msk.bf16.gmra.mxu2 %vm424_vm0, %v1000_v32  ;;  %3598 = vmatmul.msk.bf16.gmra.mxu3 %vm424_vm0, %v1299_v34  ;;  %v4514_v34 = vld [vmem:[%s4310_s18 + $0x40] sm:$0xff] }
  0x93   : > { %v707_v40 = vrot.slane %v4514_v34, 1 }
  0x94   : > { %3664 = vmatmul.msk.bf16.gmra.mxu0 %vm424_vm0, %v1599_v35  ;;  %v4517_v35 = vld [vmem:[%s4310_s18 + $0x40] sm:$0xff] }
  0x95   : > { %v1005_v41 = vrot.slane %v4517_v35, 2 }
  0x9e   : > { %v485_v44 = vpop.f32.mrf.mxu1 }
  0x9f   : > { %v536_v48 = vadd.f32 %v485_v44, %v340_v43  ;;  %v4528_v43 = vld [vmem:[%s4310_s18 + $0x64] sm:$0xff] }
  0xa0   : > { %v355_v44 = vld [vmem:[#allocation2 + $0xa8] sm:$0xff] }
  0xa1   : > { %561 = vst.msk [vmem:[#allocation2 + $0x30] sm:$0xff] %vm282_vm4, %v536_v48  ;;  %3467 = vmatmul.msk.bf16.gmra.mxu1 %vm424_vm0, %v704_v45  ;;  %v470_v52 = vpop.f32.mrf.mxu0  ;;  %v1304_v45 = vrot.slane %v4521_v37, 2  ;;  %v344_v48 = vld [vmem:[#allocation2 + $0x50] sm:$0xff] }
  0xa2   : > { %3533 = vmatmul.msk.bf16.gmra.mxu2 %vm424_vm0, %v1002_v46  ;;  %3599 = vmatmul.msk.bf16.gmra.mxu3 %vm424_vm0, %v1301_v49  ;;  %v530_v55 = vadd.f32 %v470_v52, %v334_v50  ;;  %v708_v52 = vsel %vm691_vm1, %v705_v4, %v707_v40  ;;  %v4580_v37 = vld [vmem:[%s4310_s18 + $0x50] sm:$0xff] }
  0xa4   : > { %555 = vst.msk [vmem:[#allocation2] sm:$0xff] %vm282_vm4, %v530_v55  ;;  %3665 = vmatmul.msk.bf16.gmra.mxu0 %vm424_vm0, %v1601_v53  ;;  %v1006_v53 = vsel %vm989_vm2, %v1003_v5, %v1005_v41  ;;  %v1604_v55 = vrot.slane %v4528_v43, 3  ;;  %v1009_v43 = vrot.slane %v4580_v37, 2 }
  0xa5   : > { %v500_v56 = vpop.f32.mrf.mxu2  ;;  %v515_v59 = vpop.f32.mrf.mxu3 }
  0xa6   : > { %v542_v58 = vadd.f32 %v500_v56, %v346_v51  ;;  %v487_v60 = vpop.f32.mrf.mxu1  ;;  %v548_v61 = vadd.f32 %v515_v59, %v352_v54  ;;  %v350_v59 = vld [vmem:[#allocation2 + $0x80] sm:$0xff] }
  0xa7   : > { %v537_v0 = vadd.f32 %v487_v60, %v341_v57  ;;  %v1305_v57 = vsel %vm989_vm2, %v1302_v9, %v1304_v45  ;;  %v3986_v9 = vld [vmem:[%s4310_s18 + $0x6c] sm:$0xff] }
  0xa8   : > { %567 = vst.msk [vmem:[#allocation2 + $0x60] sm:$0xff] %vm282_vm4, %v542_v58  ;;  %v338_v58 = vld [vmem:[#allocation2 + $0x20] sm:$0xff] }
  0xa9   : > { %573 = vst.msk [vmem:[#allocation2 + $0x90] sm:$0xff] %vm282_vm4, %v548_v61  ;;  %v472_v6 = vpop.f32.mrf.mxu0  ;;  %v1605_v61 = vsel %vm1588_vm3, %v1602_v20, %v1604_v55 }
  0xaa   : > { %562 = vst.msk [vmem:[#allocation2 + $0x38] sm:$0xff] %vm282_vm4, %v537_v0  ;;  %v531_v10 = vadd.f32 %v472_v6, %v335_v2  ;;  %v3960_v6 = vld [vmem:[%s4310_s18 + $0x48] sm:$0xff] }
  0xac   : > { %556 = vst.msk [vmem:[#allocation2 + $0x8] sm:$0xff] %vm282_vm4, %v531_v10  ;;  %v339_v10 = vld [vmem:[#allocation2 + $0x28] sm:$0xff] }
  0xad   : > { %v502_v12 = vpop.f32.mrf.mxu2  ;;  %v517_v15 = vpop.f32.mrf.mxu3 }
  0xae   : > { %v543_v14 = vadd.f32 %v502_v12, %v347_v3  ;;  %v490_v16 = vpop.f32.mrf.mxu1  ;;  %v549_v19 = vadd.f32 %v517_v15, %v353_v8  ;;  %v351_v12 = vld [vmem:[#allocation2 + $0x88] sm:$0xff] }
  0xaf   : > { %v538_v11 = vadd.f32 %v490_v16, %v342_v13  ;;  %v709_v13 = vrot.slane %v3960_v6, 1  ;;  %v3999_v16 = vld [vmem:[%s4310_s18 + $0x6c] sm:$0xff] }
  0xb0   : > { %568 = vst.msk [vmem:[#allocation2 + $0x68] sm:$0xff] %vm282_vm4, %v543_v14  ;;  %v1007_v14 = vrot.slane %v3973_v7, 2 }
  0xb1   : > { %574 = vst.msk [vmem:[#allocation2 + $0x98] sm:$0xff] %vm282_vm4, %v549_v19  ;;  %3468 = vmatmul.msk.bf16.gmra.mxu1 %vm424_vm0, %v706_v17  ;;  %v475_v24 = vpop.f32.mrf.mxu0  ;;  %v357_v17 = vld [vmem:[#allocation2 + $0xb8] sm:$0x3f] }
  0xb2   : > { %563 = vst.msk [vmem:[#allocation2 + $0x40] sm:$0xff] %vm282_vm4, %v538_v11  ;;  %3534 = vmatmul.msk.bf16.gmra.mxu2 %vm424_vm0, %v1004_v18  ;;  %3600 = vmatmul.msk.bf16.gmra.mxu3 %vm424_vm0, %v1303_v21  ;;  %v532_v27 = vadd.f32 %v475_v24, %v336_v22  ;;  %v1306_v18 = vrot.slane %v3986_v9, 2  ;;  %v607_v22 = vld [vmem:[#allocation2] sm:$0xff]  ;;  %v710_v24 = vsel %vm691_vm1, %v707_v40, %v709_v13 }
  0xb3   : > { %v608_v34 = vld [vmem:[#allocation2 + $0x8] sm:$0xff] }
  0xb4   : > { %557 = vst.msk [vmem:[#allocation2 + $0x10] sm:$0xff] %vm282_vm4, %v532_v27  ;;  %3666 = vmatmul.msk.bf16.gmra.mxu0 %vm424_vm0, %v1603_v25  ;;  %v1008_v25 = vsel %vm989_vm2, %v1005_v41, %v1007_v14  ;;  %v1606_v27 = vrot.slane %v3999_v16, 3 }
  0xb5   : > { %v505_v28 = vpop.f32.mrf.mxu2  ;;  %v520_v31 = vpop.f32.mrf.mxu3 }
  0xb6   : > { %v544_v30 = vadd.f32 %v505_v28, %v348_v23  ;;  %v492_v32 = vpop.f32.mrf.mxu1  ;;  %v550_v33 = vadd.f32 %v520_v31, %v354_v26  ;;  %v1607_v31 = vsel %vm1588_vm3, %v1604_v55, %v1606_v27 }
  0xb7   : > { %v539_v36 = vadd.f32 %v492_v32, %v343_v29  ;;  %v1307_v29 = vsel %vm989_vm2, %v1304_v45, %v1306_v18  ;;  %v4591_v45 = vld [vmem:[%s4310_s18 + $0x74] sm:$0xff] }
  0xb8   : > { %569 = vst.msk [vmem:[#allocation2 + $0x70] sm:$0xff] %vm282_vm4, %v544_v30 }
  0xb9   : > { %575 = vst.msk [vmem:[#allocation2 + $0xa0] sm:$0xff] %vm282_vm4, %v550_v33  ;;  %v477_v42 = vpop.f32.mrf.mxu0 }
  0xba   : > { %564 = vst.msk [vmem:[#allocation2 + $0x48] sm:$0xff] %vm282_vm4, %v539_v36  ;;  %v533_v46 = vadd.f32 %v477_v42, %v337_v38  ;;  %v4577_v36 = vld [vmem:[%s4310_s18 + $0x50] sm:$0xff] }
  0xbb   : > { %v711_v42 = vrot.slane %v4577_v36, 1  ;;  %v1497_v36 = vld [vmem:[%s4310_s18 + $0x84] sm:$0x3] }
  0xbc   : > { %558 = vst.msk [vmem:[#allocation2 + $0x18] sm:$0xff] %vm282_vm4, %v533_v46 }
  0xbd   : > { %v507_v47 = vpop.f32.mrf.mxu2  ;;  %v522_v50 = vpop.f32.mrf.mxu3 }
  0xbe   : > { %v545_v49 = vadd.f32 %v507_v47, %v349_v39  ;;  %v495_v51 = vpop.f32.mrf.mxu1  ;;  %v551_v54 = vadd.f32 %v522_v50, %v355_v44  ;;  %v4583_v39 = vld [vmem:[%s4310_s18 + $0x74] sm:$0xff] }
  0xbf   : > { %v540_v56 = vadd.f32 %v495_v51, %v344_v48  ;;  %v1308_v46 = vrot.slane %v4583_v39, 2  ;;  %v712_v51 = vsel %vm691_vm1, %v709_v13, %v711_v42  ;;  %v4624_v13 = vld [vmem:[%s4310_s18 + $0x7c] sm:$0xff] }
  0xc0   : > { %570 = vst.msk [vmem:[#allocation2 + $0x78] sm:$0xff] %vm282_vm4, %v545_v49  ;;  %v609_v49 = vld [vmem:[#allocation2 + $0x10] sm:$0xff] }
  0xc1   : > { %576 = vst.msk [vmem:[#allocation2 + $0xa8] sm:$0xff] %vm282_vm4, %v551_v54  ;;  %3469 = vmatmul.msk.bf16.gmra.mxu1 %vm424_vm0, %v708_v52  ;;  %v480_v60 = vpop.f32.mrf.mxu0  ;;  %v1010_v52 = vsel %vm989_vm2, %v1007_v14, %v1009_v43  ;;  %v1309_v55 = vsel %vm989_vm2, %v1306_v18, %v1308_v46 }
  0xc2   : > { %565 = vst.msk [vmem:[#allocation2 + $0x50] sm:$0xff] %vm282_vm4, %v540_v56  ;;  %3535 = vmatmul.msk.bf16.gmra.mxu2 %vm424_vm0, %v1006_v53  ;;  %3601 = vmatmul.msk.bf16.gmra.mxu3 %vm424_vm0, %v1305_v57  ;;  %v534_v63 = vadd.f32 %v480_v60, %v338_v58  ;;  %v1608_v53 = vrot.slane %v4591_v45, 3  ;;  %v1574_v45 = vunpack.c.l.b16 %v1497_v36  ;;  %v615_v36 = vld [vmem:[#allocation2 + $0x40] sm:$0xff] }
  0xc4   : > { %559 = vst.msk [vmem:[#allocation2 + $0x20] sm:$0xff] %vm282_vm4, %v534_v63  ;;  %3667 = vmatmul.msk.bf16.gmra.mxu0 %vm424_vm0, %v1605_v61  ;;  %v1609_v60 = vsel %vm1588_vm3, %v1606_v27, %v1608_v53 }
  0xc5   : > { %v510_v0 = vpop.f32.mrf.mxu2  ;;  %v525_v3 = vpop.f32.mrf.mxu3 }
  0xc6   : > { %v546_v2 = vadd.f32 %v510_v0, %v350_v59  ;;  %v497_v4 = vpop.f32.mrf.mxu1  ;;  %v552_v5 = vadd.f32 %v525_v3, %v356_v62  ;;  %v610_v0 = vld [vmem:[#allocation2 + $0x18] sm:$0xff] }
  0xc7   : > { %v541_v8 = vadd.f32 %v497_v4, %v345_v1  ;;  %v4613_v3 = vld [vmem:[%s4310_s18 + $0x58] sm:$0xff] }
  0xc8   : > { %571 = vst.msk [vmem:[#allocation2 + $0x80] sm:$0xff] %vm282_vm4, %v546_v2  ;;  %v4610_v2 = vld [vmem:[%s4310_s18 + $0x58] sm:$0xff] }
  0xc9   : > { %577 = vst.msk [vmem:[#allocation2 + $0xb0] sm:$0xff] %vm282_vm4, %v552_v5  ;;  %v482_v15 = vpop.f32.mrf.mxu0  ;;  %v4616_v5 = vld [vmem:[%s4310_s18 + $0x7c] sm:$0xff]  ;;  %v713_v9 = vrot.slane %v4610_v2, 1 }
  0xca   : > { %566 = vst.msk [vmem:[#allocation2 + $0x58] sm:$0xff] %vm282_vm4, %v541_v8  ;;  %v535_v19 = vadd.f32 %v482_v15, %v339_v10  ;;  %v1011_v10 = vrot.slane %v4613_v3, 2  ;;  %v1310_v15 = vrot.slane %v4616_v5, 2 }
  0xcc   : > { %560 = vst.msk [vmem:[#allocation2 + $0x28] sm:$0xff] %vm282_vm4, %v535_v19 }
  0xcd   : > { %v512_v20 = vpop.f32.mrf.mxu2  ;;  %v527_v21 = vpop.f32.mrf.mxu3 }
  0xce   : > { %v547_v11 = vadd.f32 %v512_v20, %v351_v12  ;;  %v766_v23 = vpop.f32.mrf.mxu1  ;;  %v553_v26 = vadd.f32 %v527_v21, %v357_v17  ;;  %v611_v20 = vld [vmem:[#allocation2 + $0x20] sm:$0xff]  ;;  %v714_v21 = vsel %vm691_vm1, %v711_v42, %v713_v9 }
  0xcf   : > { %v826_v28 = vadd.f32 %v766_v23, %v607_v22  ;;  %v1012_v22 = vsel %vm989_vm2, %v1009_v43, %v1011_v10  ;;  %v1610_v23 = vrot.slane %v4624_v13, 3  ;;  %v614_v13 = vld [vmem:[#allocation2 + $0x38] sm:$0xff] }
  0xd0   : > { %572 = vst.msk [vmem:[#allocation2 + $0x88] sm:$0xff] %vm282_vm4, %v547_v11 }
  0xd1   : > { %579 = vst.msk [vmem:[#allocation2 + $0xb8] sm:$0x3f] %vm306_vm5, %v553_v26  ;;  %3470 = vmatmul.msk.bf16.gmra.mxu1 %vm424_vm0, %v710_v24  ;;  %v4572_v30 = vpop.f32.mrf.mxu0  ;;  %v898_v26 = vld [vmem:[%s4310_s18 + $0x60] sm:$0x1] }
  0xd2   : > { %850 = vst.msk [vmem:[#allocation2] sm:$0xff] %vm282_vm4, %v826_v28  ;;  %3536 = vmatmul.msk.bf16.gmra.mxu2 %vm424_vm0, %v1008_v25  ;;  %3602 = vmatmul.msk.bf16.gmra.mxu3 %vm424_vm0, %v1307_v29  ;;  %v1311_v25 = vsel %vm989_vm2, %v1308_v46, %v1310_v15  ;;  %v1198_v28 = vld [vmem:[%s4310_s18 + $0x84] sm:$0x1] }
  0xd4   : > { %3668 = vmatmul.msk.bf16.gmra.mxu0 %vm424_vm0, %v1607_v31  ;;  %v975_v31 = vunpack.c.l.b16 %v898_v26 }
  0xd5   : > { %v1066_v32 = vpop.f32.mrf.mxu2  ;;  %v1365_v33 = vpop.f32.mrf.mxu3 }
  0xd6   : > { %v768_v35 = vpop.f32.mrf.mxu1  ;;  %v988_v43 = vpack.c.b16 %v975_v31, %v975_v31 }
  0xd7   : > { %v827_v38 = vadd.f32 %v768_v35, %v608_v34  ;;  %v1275_v35 = vunpack.c.l.b16 %v1198_v28 }
  0xd9   : > { %v902_v40 = vld [vmem:[#allocation2] sm:$0xff]  ;;  %851 = vst.msk [vmem:[#allocation2 + $0x8] sm:$0xff] %vm282_vm4, %v827_v38  ;;  %v4588_v44 = vpop.f32.mrf.mxu0 }
  0xda   : > { %v1126_v41 = vadd.f32 %v1066_v32, %v902_v40 }
  0xdc   : > { %1150 = vst.msk [vmem:[#allocation2] sm:$0xff] %vm282_vm4, %v1126_v41  ;;  %v612_v41 = vld [vmem:[#allocation2 + $0x28] sm:$0xff] }
  0xdd   : > { %v1068_v47 = vpop.f32.mrf.mxu2  ;;  %v1367_v48 = vpop.f32.mrf.mxu3 }
  0xde   : > { %v771_v50 = vpop.f32.mrf.mxu1 }
  0xdf   : > { %v828_v54 = vadd.f32 %v771_v50, %v609_v49 }
  0xe0   : > { %v903_v56 = vld [vmem:[#allocation2 + $0x8] sm:$0xff] }
  0xe1   : > { %v1127_v57 = vadd.f32 %v1068_v47, %v903_v56  ;;  %852 = vst.msk [vmem:[#allocation2 + $0x10] sm:$0xff] %vm282_vm4, %v828_v54  ;;  %3471 = vmatmul.msk.bf16.gmra.mxu1 %vm424_vm0, %v712_v51  ;;  %v4603_v59 = vpop.f32.mrf.mxu0  ;;  %v1288_v47 = vpack.c.b16 %v1275_v35, %v1275_v35  ;;  %v1013_v51 = vrot.slane %v988_v43, 2 }
  0xe2   : > { %3537 = vmatmul.msk.bf16.gmra.mxu2 %vm424_vm0, %v1010_v52  ;;  %3603 = vmatmul.msk.bf16.gmra.mxu3 %vm424_vm0, %v1309_v55 }
  0xe3   : > { %v1202_v58 = vld [vmem:[#allocation2] sm:$0xff]  ;;  %1151 = vst.msk [vmem:[#allocation2 + $0x8] sm:$0xff] %vm282_vm4, %v1127_v57  ;;  %v1312_v54 = vrot.slane %v1288_v47, 2 }
  0xe4   : > { %v1425_v61 = vadd.f32 %v1365_v33, %v1202_v58  ;;  %3669 = vmatmul.msk.bf16.gmra.mxu0 %vm424_vm0, %v1609_v60  ;;  %v1611_v33 = vsel %vm1588_vm3, %v1608_v53, %v1610_v23  ;;  %v613_v60 = vld [vmem:[#allocation2 + $0x30] sm:$0xff] }
  0xe5   : > { %v1071_v62 = vpop.f32.mrf.mxu2  ;;  %v1370_v63 = vpop.f32.mrf.mxu3 }
  0xe6   : > { %1449 = vst.msk [vmem:[#allocation2] sm:$0xff] %vm282_vm4, %v1425_v61  ;;  %v773_v1 = vpop.f32.mrf.mxu1 }
  0xe7   : > { %v829_v4 = vadd.f32 %v773_v1, %v610_v0  ;;  %v1313_v1 = vsel %vm989_vm2, %v1310_v15, %v1312_v54 }
  0xe8   : > { %v904_v6 = vld [vmem:[#allocation2 + $0x10] sm:$0xff] }
  0xe9   : > { %v1128_v7 = vadd.f32 %v1071_v62, %v904_v6  ;;  %853 = vst.msk [vmem:[#allocation2 + $0x18] sm:$0xff] %vm282_vm4, %v829_v4  ;;  %v4621_v12 = vpop.f32.mrf.mxu0  ;;  %v1014_v62 = vsel %vm989_vm2, %v1011_v10, %v1013_v51  ;;  %v4029_v10 = vld [vmem:[%s4310_s18 + $0x4c] sm:$0xf0] }
  0xea   : > { %v1203_v8 = vld [vmem:[#allocation2 + $0x8] sm:$0xff] }
  0xeb   : > { %v1426_v14 = vadd.f32 %v1367_v48, %v1203_v8  ;;  %1152 = vst.msk [vmem:[#allocation2 + $0x10] sm:$0xff] %vm282_vm4, %v1128_v7 }
  0xed   : > { %v1501_v16 = vld [vmem:[#allocation2] sm:$0xff]  ;;  %v1073_v17 = vpop.f32.mrf.mxu2  ;;  %1450 = vst.msk [vmem:[#allocation2 + $0x8] sm:$0xff] %vm282_vm4, %v1426_v14  ;;  %v1372_v19 = vpop.f32.mrf.mxu3 }
  0xee   : > { %v1725_v18 = vadd.f32 %v4572_v30, %v1501_v16  ;;  %v776_v11 = vpop.f32.mrf.mxu1 }
  0xef   : > { %v830_v24 = vadd.f32 %v776_v11, %v611_v20  ;;  %v3874_v20 = vld [vmem:[%s4310_s18 + $0x4c] sm:$0xc]  ;;  %v4042_v11 = vld [vmem:[%s4310_s18 + $0x4c] sm:$0xf0] }
  0xf0   : > { %1749 = vst.msk [vmem:[#allocation2] sm:$0xff] %vm282_vm4, %v1725_v18  ;;  %v905_v27 = vld [vmem:[#allocation2 + $0x18] sm:$0xff] }
  0xf1   : > { %v1129_v29 = vadd.f32 %v1073_v17, %v905_v27  ;;  %854 = vst.msk [vmem:[#allocation2 + $0x20] sm:$0xff] %vm282_vm4, %v830_v24  ;;  %3472 = vmatmul.msk.bf16.gmra.mxu1 %vm424_vm0, %v714_v21  ;;  %v4647_v32 = vpop.f32.mrf.mxu0  ;;  %v4690_v18 = vld [vmem:[%s4310_s18 + $0x54] sm:$0xff] }
  0xf2   : > { %3538 = vmatmul.msk.bf16.gmra.mxu2 %vm424_vm0, %v1012_v22  ;;  %v1204_v30 = vld [vmem:[#allocation2 + $0x10] sm:$0xff]  ;;  %3604 = vmatmul.msk.bf16.gmra.mxu3 %vm424_vm0, %v1311_v25  ;;  %v3875_v25 = vor.u32 %v4042_v11, %v3874_v20  ;;  %v2425_v28 = vrot.slane %v4690_v18, 1  ;;  %v618_v11 = vld [vmem:[#allocation2 + $0x58] sm:$0xff] }
  0xf3   : > { %v1427_v34 = vadd.f32 %v1370_v63, %v1204_v30  ;;  %1153 = vst.msk [vmem:[#allocation2 + $0x18] sm:$0xff] %vm282_vm4, %v1129_v29  ;;  %v4698_v24 = vld [vmem:[%s4310_s18 + $0x54] sm:$0xff] }
  0xf4   : > { %v1502_v37 = vld [vmem:[#allocation2 + $0x8] sm:$0xff]  ;;  %3670 = vmatmul.msk.bf16.gmra.mxu0 %vm424_vm0, %v1611_v33 }
  0xf5   : > { %v1076_v38 = vpop.f32.mrf.mxu2  ;;  %1451 = vst.msk [vmem:[#allocation2 + $0x10] sm:$0xff] %vm282_vm4, %v1427_v34  ;;  %v1726_v39 = vadd.f32 %v4588_v44, %v1502_v37  ;;  %v1375_v40 = vpop.f32.mrf.mxu3  ;;  %v1587_v44 = vpack.c.b16 %v1574_v45, %v1574_v45  ;;  %v4003_v33 = vld [vmem:[%s4310_s18 + $0x28] sm:$0xff] }
  0xf6   : > { %v778_v42 = vpop.f32.mrf.mxu1  ;;  %v4016_v34 = vld [vmem:[%s4310_s18 + $0x4c] sm:$0xff] }
  0xf7   : > { %1750 = vst.msk [vmem:[#allocation2 + $0x8] sm:$0xff] %vm282_vm4, %v1726_v39  ;;  %v831_v46 = vadd.f32 %v778_v42, %v612_v41  ;;  %v1612_v63 = vrot.slane %v1587_v44, 3  ;;  %v2722_v39 = vrot.slane %v4698_v24, 2  ;;  %v616_v44 = vld [vmem:[#allocation2 + $0x48] sm:$0xff] }
  0xf8   : > { %v906_v48 = vld [vmem:[#allocation2 + $0x20] sm:$0xff] }
  0xf9   : > { %v1130_v49 = vadd.f32 %v1076_v38, %v906_v48  ;;  %855 = vst.msk [vmem:[#allocation2 + $0x28] sm:$0xff] %vm282_vm4, %v831_v46  ;;  %v4659_v52 = vpop.f32.mrf.mxu0  ;;  %v1613_v5 = vsel %vm1588_vm3, %v1610_v23, %v1612_v63  ;;  %v2721_v38 = vrot.slane %v3875_v25, 2 }
  0xfa   : > { %v1205_v50 = vld [vmem:[#allocation2 + $0x18] sm:$0xff] }
  0xfb   : > { %v1428_v53 = vadd.f32 %v1372_v19, %v1205_v50  ;;  %1154 = vst.msk [vmem:[#allocation2 + $0x20] sm:$0xff] %vm282_vm4, %v1130_v49  ;;  %v2723_v46 = vsel %vm989_vm2, %v2721_v38, %v2722_v39 }
  0xfc   : > { %v1503_v55 = vld [vmem:[#allocation2 + $0x10] sm:$0xff] }
  0xfd   : > { %v1078_v56 = vpop.f32.mrf.mxu2  ;;  %1452 = vst.msk [vmem:[#allocation2 + $0x18] sm:$0xff] %vm282_vm4, %v1428_v53  ;;  %v1727_v57 = vadd.f32 %v4603_v59, %v1503_v55  ;;  %v1377_v58 = vpop.f32.mrf.mxu3  ;;  %v4722_v55 = vld [vmem:[%s4310_s18 + $0x5c] sm:$0xff] }
  0xfe   : > { %v781_v61 = vpop.f32.mrf.mxu1 }
  0xff   : > { %1751 = vst.msk [vmem:[#allocation2 + $0x10] sm:$0xff] %vm282_vm4, %v1727_v57  ;;  %v832_v0 = vadd.f32 %v781_v61, %v613_v60 }
 0x100   : > { %v907_v4 = vld [vmem:[#allocation2 + $0x28] sm:$0xff] }
 0x101   : > { %v1131_v6 = vadd.f32 %v1078_v56, %v907_v4  ;;  %856 = vst.msk [vmem:[#allocation2 + $0x30] sm:$0xff] %vm282_vm4, %v832_v0  ;;  %3473 = vmatmul.msk.bf16.gmra.mxu1 %vm424_vm0, %v713_v9  ;;  %v4677_v3 = vpop.f32.mrf.mxu0  ;;  %v3808_v9 = vld [vmem:[%s4310_s18 + $0x4c] sm:$0xe]  ;;  %v4004_v4 = vld [vmem:[%s4310_s18 + $0x30] sm:$0xff] }
 0x102   : > { %3539 = vmatmul.msk.bf16.gmra.mxu2 %vm424_vm0, %v1014_v62  ;;  %v1206_v59 = vld [vmem:[#allocation2 + $0x20] sm:$0xff]  ;;  %3605 = vmatmul.msk.bf16.gmra.mxu3 %vm424_vm0, %v1313_v1  ;;  %v3809_v19 = vor.u32 %v4029_v10, %v3808_v9  ;;  %v2427_v62 = vrot.slane %v4722_v55, 1  ;;  %v4782_v55 = vld [vmem:[%s4310_s18 + $0x6c] sm:$0xff] }
 0x103   : > { %v1429_v7 = vadd.f32 %v1375_v40, %v1206_v59  ;;  %1155 = vst.msk [vmem:[#allocation2 + $0x28] sm:$0xff] %vm282_vm4, %v1131_v6  ;;  %v4017_v6 = vld [vmem:[%s4310_s18 + $0x54] sm:$0xff] }
 0x104   : > { %v1504_v2 = vld [vmem:[#allocation2 + $0x18] sm:$0xff]  ;;  %3671 = vmatmul.msk.bf16.gmra.mxu0 %vm424_vm0, %v1613_v5  ;;  %v2424_v27 = vrot.slane %v3809_v19, 1  ;;  %v617_v5 = vld [vmem:[#allocation2 + $0x50] sm:$0xff]  ;;  %v2428_v9 = vsel %vm691_vm1, %v2425_v28, %v2427_v62 }
 0x105   : > { %v1081_v8 = vpop.f32.mrf.mxu2  ;;  %1453 = vst.msk [vmem:[#allocation2 + $0x20] sm:$0xff] %vm282_vm4, %v1429_v7  ;;  %v1728_v14 = vadd.f32 %v4621_v12, %v1504_v2  ;;  %v1380_v15 = vpop.f32.mrf.mxu3 }
 0x106   : > { %v783_v16 = vpop.f32.mrf.mxu1  ;;  %v2426_v41 = vsel %vm691_vm1, %v2424_v27, %v2425_v28 }
 0x107   : > { %1752 = vst.msk [vmem:[#allocation2 + $0x18] sm:$0xff] %vm282_vm4, %v1728_v14  ;;  %v833_v17 = vadd.f32 %v783_v16, %v614_v13 }
 0x108   : > { %v908_v21 = vld [vmem:[#allocation2 + $0x30] sm:$0xff] }
 0x109   : > { %v1132_v22 = vadd.f32 %v1081_v8, %v908_v21  ;;  %857 = vst.msk [vmem:[#allocation2 + $0x38] sm:$0xff] %vm282_vm4, %v833_v17  ;;  %v4695_v23 = vpop.f32.mrf.mxu0 }
 0x10a   : > { %v1207_v12 = vld [vmem:[#allocation2 + $0x28] sm:$0xff] }
 0x10b   : > { %v1430_v26 = vadd.f32 %v1377_v58, %v1207_v12  ;;  %1156 = vst.msk [vmem:[#allocation2 + $0x30] sm:$0xff] %vm282_vm4, %v1132_v22  ;;  %v4752_v12 = vld [vmem:[%s4310_s18 + $0x64] sm:$0xff] }
 0x10c   : > { %v1505_v29 = vld [vmem:[#allocation2 + $0x20] sm:$0xff] }
 0x10d   : > { %v1083_v30 = vpop.f32.mrf.mxu2  ;;  %1454 = vst.msk [vmem:[#allocation2 + $0x28] sm:$0xff] %vm282_vm4, %v1430_v26  ;;  %v1729_v31 = vadd.f32 %v4647_v32, %v1505_v29  ;;  %v1382_v35 = vpop.f32.mrf.mxu3  ;;  %v2429_v29 = vrot.slane %v4752_v12, 1  ;;  %v4812_v12 = vld [vmem:[%s4310_s18 + $0x74] sm:$0xff] }
 0x10e   : > { %v786_v37 = vpop.f32.mrf.mxu1 }
 0x10f   : > { %1753 = vst.msk [vmem:[#allocation2 + $0x20] sm:$0xff] %vm282_vm4, %v1729_v31  ;;  %v834_v40 = vadd.f32 %v786_v37, %v615_v36  ;;  %v619_v37 = vld [vmem:[#allocation2 + $0x60] sm:$0xff] }
 0x110   : > { %v909_v42 = vld [vmem:[#allocation2 + $0x38] sm:$0xff] }
 0x111   : > { %v1133_v43 = vadd.f32 %v1083_v30, %v909_v42  ;;  %858 = vst.msk [vmem:[#allocation2 + $0x40] sm:$0xff] %vm282_vm4, %v834_v40  ;;  %3726 = vmatmul.msk.bf16.vlgmr.msra.gmra.mxu1 %vm424_vm0, %v4003_v33  ;;  %v4713_v45 = vpop.f32.mrf.mxu0 }
 0x112   : > { %3792 = vmatmul.msk.bf16.vlgmr.msra.gmra.mxu2 %vm424_vm0, %v4016_v34  ;;  %v1208_v32 = vld [vmem:[#allocation2 + $0x30] sm:$0xff]  ;;  %3858 = vmatmul.msk.bf16.vlgmr.msra.gmra.mxu3 %vm424_vm0, %v2426_v41  ;;  %v4005_v34 = vld [vmem:[%s4310_s18 + $0x38] sm:$0xff]  ;;  %v2430_v41 = vsel %vm691_vm1, %v2427_v62, %v2429_v29  ;;  %v2431_v62 = vrot.slane %v4782_v55, 1 }
 0x113   : > { %v1431_v47 = vadd.f32 %v1380_v15, %v1208_v32  ;;  %1157 = vst.msk [vmem:[#allocation2 + $0x38] sm:$0xff] %vm282_vm4, %v1133_v43  ;;  %v4842_v55 = vld [vmem:[%s4310_s18 + $0x7c] sm:$0xff] }
 0x114   : > { %v1506_v48 = vld [vmem:[#allocation2 + $0x28] sm:$0xff]  ;;  %3924 = vmatmul.msk.bf16.vlgmr.msra.gmra.mxu0 %vm424_vm0, %v2723_v46 }
 0x115   : > { %v1086_v49 = vpop.f32.mrf.mxu2  ;;  %1455 = vst.msk [vmem:[#allocation2 + $0x30] sm:$0xff] %vm282_vm4, %v1431_v47  ;;  %v1730_v50 = vadd.f32 %v4659_v52, %v1506_v48  ;;  %v1385_v51 = vpop.f32.mrf.mxu3  ;;  %v4728_v52 = vld [vmem:[%s4310_s18 + $0x5c] sm:$0xff] }
 0x116   : > { %v788_v53 = vpop.f32.mrf.mxu1  ;;  %v2724_v2 = vrot.slane %v4728_v52, 2 }
 0x117   : > { %1754 = vst.msk [vmem:[#allocation2 + $0x28] sm:$0xff] %vm282_vm4, %v1730_v50  ;;  %v835_v54 = vadd.f32 %v788_v53, %v616_v44  ;;  %v620_v44 = vld [vmem:[#allocation2 + $0x68] sm:$0xff] }
 0x118   : > { %v910_v56 = vld [vmem:[#allocation2 + $0x40] sm:$0xff]  ;;  %v2725_v13 = vsel %vm989_vm2, %v2722_v39, %v2724_v2 }
 0x119   : > { %v1134_v57 = vadd.f32 %v1086_v49, %v910_v56  ;;  %859 = vst.msk [vmem:[#allocation2 + $0x48] sm:$0xff] %vm282_vm4, %v835_v54  ;;  %v4725_v60 = vpop.f32.mrf.mxu0 }
 0x11a   : > { %v1209_v58 = vld [vmem:[#allocation2 + $0x38] sm:$0xff] }
 0x11b   : > { %v1432_v61 = vadd.f32 %v1382_v35, %v1209_v58  ;;  %1158 = vst.msk [vmem:[#allocation2 + $0x40] sm:$0xff] %vm282_vm4, %v1134_v57  ;;  %v4018_v35 = vld [vmem:[%s4310_s18 + $0x5c] sm:$0xff] }
 0x11c   : > { %v1507_v63 = vld [vmem:[#allocation2 + $0x30] sm:$0xff] }
 0x11d   : > { %v1088_v0 = vpop.f32.mrf.mxu2  ;;  %1456 = vst.msk [vmem:[#allocation2 + $0x38] sm:$0xff] %vm282_vm4, %v1432_v61  ;;  %v1731_v1 = vadd.f32 %v4677_v3, %v1507_v63  ;;  %v1387_v59 = vpop.f32.mrf.mxu3 }
 0x11e   : > { %v791_v7 = vpop.f32.mrf.mxu1 }
 0x11f   : > { %1755 = vst.msk [vmem:[#allocation2 + $0x30] sm:$0xff] %vm282_vm4, %v1731_v1  ;;  %v836_v8 = vadd.f32 %v791_v7, %v617_v5  ;;  %v621_v5 = vld [vmem:[#allocation2 + $0x70] sm:$0xff] }
 0x120   : > { %v911_v10 = vld [vmem:[#allocation2 + $0x48] sm:$0xff] }
 0x121   : > { %v1135_v14 = vadd.f32 %v1088_v0, %v911_v10  ;;  %860 = vst.msk [vmem:[#allocation2 + $0x50] sm:$0xff] %vm282_vm4, %v836_v8  ;;  %3727 = vmatmul.msk.bf16.gmra.mxu1 %vm424_vm0, %v4004_v4  ;;  %v4743_v15 = vpop.f32.mrf.mxu0  ;;  %v4006_v4 = vld [vmem:[%s4310_s18 + $0x40] sm:$0xff] }
 0x122   : > { %3793 = vmatmul.msk.bf16.gmra.mxu2 %vm424_vm0, %v4017_v6  ;;  %v1210_v3 = vld [vmem:[#allocation2 + $0x40] sm:$0xff]  ;;  %3859 = vmatmul.msk.bf16.gmra.mxu3 %vm424_vm0, %v2428_v9  ;;  %v2432_v9 = vsel %vm691_vm1, %v2429_v29, %v2431_v62  ;;  %v2433_v29 = vrot.slane %v4812_v12, 1 }
 0x123   : > { %v1433_v16 = vadd.f32 %v1385_v51, %v1210_v3  ;;  %1159 = vst.msk [vmem:[#allocation2 + $0x48] sm:$0xff] %vm282_vm4, %v1135_v14  ;;  %v4019_v6 = vld [vmem:[%s4310_s18 + $0x64] sm:$0xff] }
 0x124   : > { %v1508_v17 = vld [vmem:[#allocation2 + $0x38] sm:$0xff]  ;;  %3925 = vmatmul.msk.bf16.gmra.mxu0 %vm424_vm0, %v2725_v13  ;;  %v4872_v12 = vld [vmem:[%s4310_s18 + $0x84] sm:$0xff] }
 0x125   : > { %v1091_v18 = vpop.f32.mrf.mxu2  ;;  %1457 = vst.msk [vmem:[#allocation2 + $0x40] sm:$0xff] %vm282_vm4, %v1433_v16  ;;  %v1732_v19 = vadd.f32 %v4695_v23, %v1508_v17  ;;  %v1390_v20 = vpop.f32.mrf.mxu3  ;;  %v4758_v23 = vld [vmem:[%s4310_s18 + $0x64] sm:$0xff] }
 0x126   : > { %v793_v21 = vpop.f32.mrf.mxu1  ;;  %v2726_v39 = vrot.slane %v4758_v23, 2 }
 0x127   : > { %1756 = vst.msk [vmem:[#allocation2 + $0x38] sm:$0xff] %vm282_vm4, %v1732_v19  ;;  %v837_v22 = vadd.f32 %v793_v21, %v618_v11  ;;  %v622_v11 = vld [vmem:[#allocation2 + $0x78] sm:$0xff] }
 0x128   : > { %v912_v24 = vld [vmem:[#allocation2 + $0x50] sm:$0xff]  ;;  %v2727_v46 = vsel %vm989_vm2, %v2724_v2, %v2726_v39 }
 0x129   : > { %v1136_v25 = vadd.f32 %v1091_v18, %v912_v24  ;;  %861 = vst.msk [vmem:[#allocation2 + $0x58] sm:$0xff] %vm282_vm4, %v837_v22  ;;  %v4755_v27 = vpop.f32.mrf.mxu0 }
 0x12a   : > { %v1211_v26 = vld [vmem:[#allocation2 + $0x48] sm:$0xff] }
 0x12b   : > { %v1434_v28 = vadd.f32 %v1387_v59, %v1211_v26  ;;  %1160 = vst.msk [vmem:[#allocation2 + $0x50] sm:$0xff] %vm282_vm4, %v1136_v25 }
 0x12c   : > { %v1509_v30 = vld [vmem:[#allocation2 + $0x40] sm:$0xff] }
 0x12d   : > { %v1093_v31 = vpop.f32.mrf.mxu2  ;;  %1458 = vst.msk [vmem:[#allocation2 + $0x48] sm:$0xff] %vm282_vm4, %v1434_v28  ;;  %v1733_v33 = vadd.f32 %v4713_v45, %v1509_v30  ;;  %v1392_v36 = vpop.f32.mrf.mxu3 }
 0x12e   : > { %v796_v38 = vpop.f32.mrf.mxu1 }
 0x12f   : > { %1757 = vst.msk [vmem:[#allocation2 + $0x40] sm:$0xff] %vm282_vm4, %v1733_v33  ;;  %v838_v40 = vadd.f32 %v796_v38, %v619_v37  ;;  %v623_v37 = vld [vmem:[#allocation2 + $0x80] sm:$0xff] }
 0x130   : > { %v913_v42 = vld [vmem:[#allocation2 + $0x58] sm:$0xff] }
 0x131   : > { %v1137_v43 = vadd.f32 %v1093_v31, %v913_v42  ;;  %862 = vst.msk [vmem:[#allocation2 + $0x60] sm:$0xff] %vm282_vm4, %v838_v40  ;;  %3728 = vmatmul.msk.bf16.gmra.mxu1 %vm424_vm0, %v4005_v34  ;;  %v4773_v45 = vpop.f32.mrf.mxu0  ;;  %v4007_v34 = vld [vmem:[%s4310_s18 + $0x48] sm:$0xff] }
 0x132   : > { %3794 = vmatmul.msk.bf16.gmra.mxu2 %vm424_vm0, %v4018_v35  ;;  %v1212_v32 = vld [vmem:[#allocation2 + $0x50] sm:$0xff]  ;;  %3860 = vmatmul.msk.bf16.gmra.mxu3 %vm424_vm0, %v2430_v41  ;;  %v2434_v41 = vsel %vm691_vm1, %v2431_v62, %v2433_v29  ;;  %v2435_v62 = vrot.slane %v4842_v55, 1 }
 0x133   : > { %v1435_v47 = vadd.f32 %v1390_v20, %v1212_v32  ;;  %1161 = vst.msk [vmem:[#allocation2 + $0x58] sm:$0xff] %vm282_vm4, %v1137_v43  ;;  %v4020_v35 = vld [vmem:[%s4310_s18 + $0x6c] sm:$0xff] }
 0x134   : > { %v1510_v48 = vld [vmem:[#allocation2 + $0x48] sm:$0xff]  ;;  %3926 = vmatmul.msk.bf16.gmra.mxu0 %vm424_vm0, %v2727_v46 }
 0x135   : > { %v1096_v49 = vpop.f32.mrf.mxu2  ;;  %1459 = vst.msk [vmem:[#allocation2 + $0x50] sm:$0xff] %vm282_vm4, %v1435_v47  ;;  %v1734_v50 = vadd.f32 %v4725_v60, %v1510_v48  ;;  %v1395_v51 = vpop.f32.mrf.mxu3  ;;  %v4788_v60 = vld [vmem:[%s4310_s18 + $0x6c] sm:$0xff] }
 0x136   : > { %v798_v53 = vpop.f32.mrf.mxu1  ;;  %v2728_v2 = vrot.slane %v4788_v60, 2  ;;  %v4902_v55 = vld [vmem:[%s4310_s18 + $0x8c] sm:$0xff] }
 0x137   : > { %1758 = vst.msk [vmem:[#allocation2 + $0x48] sm:$0xff] %vm282_vm4, %v1734_v50  ;;  %v839_v54 = vadd.f32 %v798_v53, %v620_v44  ;;  %v624_v44 = vld [vmem:[#allocation2 + $0x88] sm:$0xff] }
 0x138   : > { %v914_v56 = vld [vmem:[#allocation2 + $0x60] sm:$0xff]  ;;  %v2729_v13 = vsel %vm989_vm2, %v2726_v39, %v2728_v2 }
 0x139   : > { %v1138_v57 = vadd.f32 %v1096_v49, %v914_v56  ;;  %863 = vst.msk [vmem:[#allocation2 + $0x68] sm:$0xff] %vm282_vm4, %v839_v54  ;;  %v4785_v52 = vpop.f32.mrf.mxu0 }
 0x13a   : > { %v1213_v58 = vld [vmem:[#allocation2 + $0x58] sm:$0xff] }
 0x13b   : > { %v1436_v61 = vadd.f32 %v1392_v36, %v1213_v58  ;;  %1162 = vst.msk [vmem:[#allocation2 + $0x60] sm:$0xff] %vm282_vm4, %v1138_v57 }
 0x13c   : > { %v1511_v63 = vld [vmem:[#allocation2 + $0x50] sm:$0xff] }
 0x13d   : > { %v1098_v0 = vpop.f32.mrf.mxu2  ;;  %1460 = vst.msk [vmem:[#allocation2 + $0x58] sm:$0xff] %vm282_vm4, %v1436_v61  ;;  %v1735_v1 = vadd.f32 %v4743_v15, %v1511_v63  ;;  %v1397_v59 = vpop.f32.mrf.mxu3 }
 0x13e   : > { %v801_v7 = vpop.f32.mrf.mxu1 }
 0x13f   : > { %1759 = vst.msk [vmem:[#allocation2 + $0x50] sm:$0xff] %vm282_vm4, %v1735_v1  ;;  %v840_v8 = vadd.f32 %v801_v7, %v621_v5  ;;  %v625_v5 = vld [vmem:[#allocation2 + $0x90] sm:$0xff] }
 0x140   : > { %v915_v10 = vld [vmem:[#allocation2 + $0x68] sm:$0xff] }
 0x141   : > { %v1139_v14 = vadd.f32 %v1098_v0, %v915_v10  ;;  %864 = vst.msk [vmem:[#allocation2 + $0x70] sm:$0xff] %vm282_vm4, %v840_v8  ;;  %3729 = vmatmul.msk.bf16.gmra.mxu1 %vm424_vm0, %v4006_v4  ;;  %v4803_v15 = vpop.f32.mrf.mxu0  ;;  %v4008_v4 = vld [vmem:[%s4310_s18 + $0x50] sm:$0xff] }
 0x142   : > { %3795 = vmatmul.msk.bf16.gmra.mxu2 %vm424_vm0, %v4019_v6  ;;  %v1214_v3 = vld [vmem:[#allocation2 + $0x60] sm:$0xff]  ;;  %3861 = vmatmul.msk.bf16.gmra.mxu3 %vm424_vm0, %v2432_v9  ;;  %v4021_v6 = vld [vmem:[%s4310_s18 + $0x74] sm:$0xff]  ;;  %v2436_v9 = vsel %vm691_vm1, %v2433_v29, %v2435_v62  ;;  %v2437_v29 = vrot.slane %v4872_v12, 1 }
 0x143   : > { %v1437_v16 = vadd.f32 %v1395_v51, %v1214_v3  ;;  %1163 = vst.msk [vmem:[#allocation2 + $0x68] sm:$0xff] %vm282_vm4, %v1139_v14  ;;  %v4932_v12 = vld [vmem:[%s4310_s18 + $0x94] sm:$0xff] }
 0x144   : > { %v1512_v17 = vld [vmem:[#allocation2 + $0x58] sm:$0xff]  ;;  %3927 = vmatmul.msk.bf16.gmra.mxu0 %vm424_vm0, %v2729_v13 }
 0x145   : > { %v1101_v18 = vpop.f32.mrf.mxu2  ;;  %1461 = vst.msk [vmem:[#allocation2 + $0x60] sm:$0xff] %vm282_vm4, %v1437_v16  ;;  %v1736_v19 = vadd.f32 %v4755_v27, %v1512_v17  ;;  %v1400_v20 = vpop.f32.mrf.mxu3  ;;  %v4818_v27 = vld [vmem:[%s4310_s18 + $0x74] sm:$0xff] }
 0x146   : > { %v803_v21 = vpop.f32.mrf.mxu1  ;;  %v2730_v39 = vrot.slane %v4818_v27, 2 }
 0x147   : > { %1760 = vst.msk [vmem:[#allocation2 + $0x58] sm:$0xff] %vm282_vm4, %v1736_v19  ;;  %v841_v22 = vadd.f32 %v803_v21, %v622_v11  ;;  %v626_v11 = vld [vmem:[#allocation2 + $0x98] sm:$0xff] }
 0x148   : > { %v916_v24 = vld [vmem:[#allocation2 + $0x70] sm:$0xff]  ;;  %v2731_v46 = vsel %vm989_vm2, %v2728_v2, %v2730_v39 }
 0x149   : > { %v1140_v25 = vadd.f32 %v1101_v18, %v916_v24  ;;  %865 = vst.msk [vmem:[#allocation2 + $0x78] sm:$0xff] %vm282_vm4, %v841_v22  ;;  %v4815_v23 = vpop.f32.mrf.mxu0 }
 0x14a   : > { %v1215_v26 = vld [vmem:[#allocation2 + $0x68] sm:$0xff] }
 0x14b   : > { %v1438_v28 = vadd.f32 %v1397_v59, %v1215_v26  ;;  %1164 = vst.msk [vmem:[#allocation2 + $0x70] sm:$0xff] %vm282_vm4, %v1140_v25 }
 0x14c   : > { %v1513_v30 = vld [vmem:[#allocation2 + $0x60] sm:$0xff] }
 0x14d   : > { %v1103_v31 = vpop.f32.mrf.mxu2  ;;  %1462 = vst.msk [vmem:[#allocation2 + $0x68] sm:$0xff] %vm282_vm4, %v1438_v28  ;;  %v1737_v33 = vadd.f32 %v4773_v45, %v1513_v30  ;;  %v1402_v36 = vpop.f32.mrf.mxu3 }
 0x14e   : > { %v806_v38 = vpop.f32.mrf.mxu1 }
 0x14f   : > { %1761 = vst.msk [vmem:[#allocation2 + $0x60] sm:$0xff] %vm282_vm4, %v1737_v33  ;;  %v842_v40 = vadd.f32 %v806_v38, %v623_v37  ;;  %v627_v37 = vld [vmem:[#allocation2 + $0xa0] sm:$0xff] }
 0x150   : > { %v917_v42 = vld [vmem:[#allocation2 + $0x78] sm:$0xff] }
 0x151   : > { %v1141_v43 = vadd.f32 %v1103_v31, %v917_v42  ;;  %866 = vst.msk [vmem:[#allocation2 + $0x80] sm:$0xff] %vm282_vm4, %v842_v40  ;;  %3730 = vmatmul.msk.bf16.gmra.mxu1 %vm424_vm0, %v4007_v34  ;;  %v4833_v45 = vpop.f32.mrf.mxu0  ;;  %v4009_v34 = vld [vmem:[%s4310_s18 + $0x58] sm:$0xff] }
 0x152   : > { %3796 = vmatmul.msk.bf16.gmra.mxu2 %vm424_vm0, %v4020_v35  ;;  %v1216_v32 = vld [vmem:[#allocation2 + $0x70] sm:$0xff]  ;;  %3862 = vmatmul.msk.bf16.gmra.mxu3 %vm424_vm0, %v2434_v41  ;;  %v4022_v35 = vld [vmem:[%s4310_s18 + $0x7c] sm:$0xff]  ;;  %v2438_v41 = vsel %vm691_vm1, %v2435_v62, %v2437_v29  ;;  %v2439_v62 = vrot.slane %v4902_v55, 1 }
 0x153   : > { %v1439_v47 = vadd.f32 %v1400_v20, %v1216_v32  ;;  %1165 = vst.msk [vmem:[#allocation2 + $0x78] sm:$0xff] %vm282_vm4, %v1141_v43  ;;  %v4962_v55 = vld [vmem:[%s4310_s18 + $0x9c] sm:$0xff] }
 0x154   : > { %v1514_v48 = vld [vmem:[#allocation2 + $0x68] sm:$0xff]  ;;  %3928 = vmatmul.msk.bf16.gmra.mxu0 %vm424_vm0, %v2731_v46 }
 0x155   : > { %v1106_v49 = vpop.f32.mrf.mxu2  ;;  %1463 = vst.msk [vmem:[#allocation2 + $0x70] sm:$0xff] %vm282_vm4, %v1439_v47  ;;  %v1738_v50 = vadd.f32 %v4785_v52, %v1514_v48  ;;  %v1405_v51 = vpop.f32.mrf.mxu3  ;;  %v4848_v52 = vld [vmem:[%s4310_s18 + $0x7c] sm:$0xff] }
 0x156   : > { %v808_v53 = vpop.f32.mrf.mxu1  ;;  %v2732_v2 = vrot.slane %v4848_v52, 2 }
 0x157   : > { %1762 = vst.msk [vmem:[#allocation2 + $0x68] sm:$0xff] %vm282_vm4, %v1738_v50  ;;  %v843_v54 = vadd.f32 %v808_v53, %v624_v44  ;;  %v628_v44 = vld [vmem:[#allocation2 + $0xa8] sm:$0xff] }
 0x158   : > { %v918_v56 = vld [vmem:[#allocation2 + $0x80] sm:$0xff]  ;;  %v2733_v13 = vsel %vm989_vm2, %v2730_v39, %v2732_v2 }
 0x159   : > { %v1142_v57 = vadd.f32 %v1106_v49, %v918_v56  ;;  %867 = vst.msk [vmem:[#allocation2 + $0x88] sm:$0xff] %vm282_vm4, %v843_v54  ;;  %v4845_v60 = vpop.f32.mrf.mxu0 }
 0x15a   : > { %v1217_v58 = vld [vmem:[#allocation2 + $0x78] sm:$0xff] }
 0x15b   : > { %v1440_v61 = vadd.f32 %v1402_v36, %v1217_v58  ;;  %1166 = vst.msk [vmem:[#allocation2 + $0x80] sm:$0xff] %vm282_vm4, %v1142_v57 }
 0x15c   : > { %v1515_v63 = vld [vmem:[#allocation2 + $0x70] sm:$0xff] }
 0x15d   : > { %v1108_v0 = vpop.f32.mrf.mxu2  ;;  %1464 = vst.msk [vmem:[#allocation2 + $0x78] sm:$0xff] %vm282_vm4, %v1440_v61  ;;  %v1739_v1 = vadd.f32 %v4803_v15, %v1515_v63  ;;  %v1407_v59 = vpop.f32.mrf.mxu3 }
 0x15e   : > { %v811_v7 = vpop.f32.mrf.mxu1 }
 0x15f   : > { %1763 = vst.msk [vmem:[#allocation2 + $0x70] sm:$0xff] %vm282_vm4, %v1739_v1  ;;  %v844_v8 = vadd.f32 %v811_v7, %v625_v5  ;;  %v629_v5 = vld [vmem:[#allocation2 + $0xb0] sm:$0xff] }
 0x160   : > { %v919_v10 = vld [vmem:[#allocation2 + $0x88] sm:$0xff] }
 0x161   : > { %v1143_v14 = vadd.f32 %v1108_v0, %v919_v10  ;;  %868 = vst.msk [vmem:[#allocation2 + $0x90] sm:$0xff] %vm282_vm4, %v844_v8  ;;  %3731 = vmatmul.msk.bf16.gmra.mxu1 %vm424_vm0, %v4008_v4  ;;  %v4863_v15 = vpop.f32.mrf.mxu0  ;;  %v4010_v4 = vld [vmem:[%s4310_s18 + $0x60] sm:$0xff] }
 0x162   : > { %3797 = vmatmul.msk.bf16.gmra.mxu2 %vm424_vm0, %v4021_v6  ;;  %v1218_v3 = vld [vmem:[#allocation2 + $0x80] sm:$0xff]  ;;  %3863 = vmatmul.msk.bf16.gmra.mxu3 %vm424_vm0, %v2436_v9  ;;  %v2440_v9 = vsel %vm691_vm1, %v2437_v29, %v2439_v62  ;;  %v2441_v29 = vrot.slane %v4932_v12, 1 }
 0x163   : > { %v1441_v16 = vadd.f32 %v1405_v51, %v1218_v3  ;;  %1167 = vst.msk [vmem:[#allocation2 + $0x88] sm:$0xff] %vm282_vm4, %v1143_v14  ;;  %v4023_v6 = vld [vmem:[%s4310_s18 + $0x84] sm:$0xff] }
 0x164   : > { %v1516_v17 = vld [vmem:[#allocation2 + $0x78] sm:$0xff]  ;;  %3929 = vmatmul.msk.bf16.gmra.mxu0 %vm424_vm0, %v2733_v13  ;;  %v4992_v12 = vld [vmem:[%s4310_s18 + $0xa4] sm:$0xff] }
 0x165   : > { %v1111_v18 = vpop.f32.mrf.mxu2  ;;  %1465 = vst.msk [vmem:[#allocation2 + $0x80] sm:$0xff] %vm282_vm4, %v1441_v16  ;;  %v1740_v19 = vadd.f32 %v4815_v23, %v1516_v17  ;;  %v1410_v20 = vpop.f32.mrf.mxu3  ;;  %v4878_v23 = vld [vmem:[%s4310_s18 + $0x84] sm:$0xff] }
 0x166   : > { %v813_v21 = vpop.f32.mrf.mxu1  ;;  %v2734_v39 = vrot.slane %v4878_v23, 2 }
 0x167   : > { %1764 = vst.msk [vmem:[#allocation2 + $0x78] sm:$0xff] %vm282_vm4, %v1740_v19  ;;  %v845_v22 = vadd.f32 %v813_v21, %v626_v11  ;;  %v630_v11 = vld [vmem:[#allocation2 + $0xb8] sm:$0x3f] }
 0x168   : > { %v920_v24 = vld [vmem:[#allocation2 + $0x90] sm:$0xff]  ;;  %v2735_v46 = vsel %vm989_vm2, %v2732_v2, %v2734_v39 }
 0x169   : > { %v1144_v25 = vadd.f32 %v1111_v18, %v920_v24  ;;  %869 = vst.msk [vmem:[#allocation2 + $0x98] sm:$0xff] %vm282_vm4, %v845_v22  ;;  %v4875_v27 = vpop.f32.mrf.mxu0 }
 0x16a   : > { %v1219_v26 = vld [vmem:[#allocation2 + $0x88] sm:$0xff] }
 0x16b   : > { %v1442_v28 = vadd.f32 %v1407_v59, %v1219_v26  ;;  %1168 = vst.msk [vmem:[#allocation2 + $0x90] sm:$0xff] %vm282_vm4, %v1144_v25 }
 0x16c   : > { %v1517_v30 = vld [vmem:[#allocation2 + $0x80] sm:$0xff] }
 0x16d   : > { %v1113_v31 = vpop.f32.mrf.mxu2  ;;  %1466 = vst.msk [vmem:[#allocation2 + $0x88] sm:$0xff] %vm282_vm4, %v1442_v28  ;;  %v1741_v33 = vadd.f32 %v4833_v45, %v1517_v30  ;;  %v1412_v36 = vpop.f32.mrf.mxu3 }
 0x16e   : > { %v816_v38 = vpop.f32.mrf.mxu1 }
 0x16f   : > { %1765 = vst.msk [vmem:[#allocation2 + $0x80] sm:$0xff] %vm282_vm4, %v1741_v33  ;;  %v846_v40 = vadd.f32 %v816_v38, %v627_v37  ;;  %v1800_v37 = vld [vmem:[#allocation2] sm:$0xff] }
 0x170   : > { %v921_v42 = vld [vmem:[#allocation2 + $0x98] sm:$0xff] }
 0x171   : > { %v1145_v43 = vadd.f32 %v1113_v31, %v921_v42  ;;  %870 = vst.msk [vmem:[#allocation2 + $0xa0] sm:$0xff] %vm282_vm4, %v846_v40  ;;  %3732 = vmatmul.msk.bf16.gmra.mxu1 %vm424_vm0, %v4009_v34  ;;  %v4893_v45 = vpop.f32.mrf.mxu0  ;;  %v4011_v34 = vld [vmem:[%s4310_s18 + $0x68] sm:$0xff] }
 0x172   : > { %3798 = vmatmul.msk.bf16.gmra.mxu2 %vm424_vm0, %v4022_v35  ;;  %v1220_v32 = vld [vmem:[#allocation2 + $0x90] sm:$0xff]  ;;  %3864 = vmatmul.msk.bf16.gmra.mxu3 %vm424_vm0, %v2438_v41  ;;  %v2442_v41 = vsel %vm691_vm1, %v2439_v62, %v2441_v29  ;;  %v2443_v62 = vrot.slane %v4962_v55, 1  ;;  %v1805_v55 = vld [vmem:[#allocation2 + $0x28] sm:$0xff] }
 0x173   : > { %v1443_v47 = vadd.f32 %v1410_v20, %v1220_v32  ;;  %1169 = vst.msk [vmem:[#allocation2 + $0x98] sm:$0xff] %vm282_vm4, %v1145_v43  ;;  %v4024_v35 = vld [vmem:[%s4310_s18 + $0x8c] sm:$0xff] }
 0x174   : > { %v1518_v48 = vld [vmem:[#allocation2 + $0x88] sm:$0xff]  ;;  %3930 = vmatmul.msk.bf16.gmra.mxu0 %vm424_vm0, %v2735_v46 }
 0x175   : > { %v1116_v49 = vpop.f32.mrf.mxu2  ;;  %1467 = vst.msk [vmem:[#allocation2 + $0x90] sm:$0xff] %vm282_vm4, %v1443_v47  ;;  %v1742_v50 = vadd.f32 %v4845_v60, %v1518_v48  ;;  %v1415_v51 = vpop.f32.mrf.mxu3  ;;  %v4908_v60 = vld [vmem:[%s4310_s18 + $0x8c] sm:$0xff] }
 0x176   : > { %v818_v53 = vpop.f32.mrf.mxu1  ;;  %v2736_v2 = vrot.slane %v4908_v60, 2 }
 0x177   : > { %1766 = vst.msk [vmem:[#allocation2 + $0x88] sm:$0xff] %vm282_vm4, %v1742_v50  ;;  %v847_v54 = vadd.f32 %v818_v53, %v628_v44  ;;  %v1801_v44 = vld [vmem:[#allocation2 + $0x8] sm:$0xff] }
 0x178   : > { %v922_v56 = vld [vmem:[#allocation2 + $0xa0] sm:$0xff]  ;;  %v2737_v13 = vsel %vm989_vm2, %v2734_v39, %v2736_v2 }
 0x179   : > { %v1146_v57 = vadd.f32 %v1116_v49, %v922_v56  ;;  %871 = vst.msk [vmem:[#allocation2 + $0xa8] sm:$0xff] %vm282_vm4, %v847_v54  ;;  %v4905_v52 = vpop.f32.mrf.mxu0 }
 0x17a   : > { %v1221_v58 = vld [vmem:[#allocation2 + $0x98] sm:$0xff] }
 0x17b   : > { %v1444_v61 = vadd.f32 %v1412_v36, %v1221_v58  ;;  %1170 = vst.msk [vmem:[#allocation2 + $0xa0] sm:$0xff] %vm282_vm4, %v1146_v57 }
 0x17c   : > { %v1519_v63 = vld [vmem:[#allocation2 + $0x90] sm:$0xff] }
 0x17d   : > { %v1118_v0 = vpop.f32.mrf.mxu2  ;;  %1468 = vst.msk [vmem:[#allocation2 + $0x98] sm:$0xff] %vm282_vm4, %v1444_v61  ;;  %v1743_v1 = vadd.f32 %v4863_v15, %v1519_v63  ;;  %v1417_v59 = vpop.f32.mrf.mxu3 }
 0x17e   : > { %v821_v7 = vpop.f32.mrf.mxu1 }
 0x17f   : > { %1767 = vst.msk [vmem:[#allocation2 + $0x90] sm:$0xff] %vm282_vm4, %v1743_v1  ;;  %v848_v8 = vadd.f32 %v821_v7, %v629_v5  ;;  %v1802_v5 = vld [vmem:[#allocation2 + $0x10] sm:$0xff] }
 0x180   : > { %v923_v10 = vld [vmem:[#allocation2 + $0xa8] sm:$0xff] }
 0x181   : > { %v1147_v14 = vadd.f32 %v1118_v0, %v923_v10  ;;  %872 = vst.msk [vmem:[#allocation2 + $0xb0] sm:$0xff] %vm282_vm4, %v848_v8  ;;  %3733 = vmatmul.msk.bf16.gmra.mxu1 %vm424_vm0, %v4010_v4  ;;  %v4923_v15 = vpop.f32.mrf.mxu0  ;;  %v4012_v4 = vld [vmem:[%s4310_s18 + $0x70] sm:$0xff] }
 0x182   : > { %3799 = vmatmul.msk.bf16.gmra.mxu2 %vm424_vm0, %v4023_v6  ;;  %v1222_v3 = vld [vmem:[#allocation2 + $0xa0] sm:$0xff]  ;;  %3865 = vmatmul.msk.bf16.gmra.mxu3 %vm424_vm0, %v2440_v9  ;;  %v4025_v6 = vld [vmem:[%s4310_s18 + $0x94] sm:$0xff]  ;;  %v2444_v9 = vsel %vm691_vm1, %v2441_v29, %v2443_v62  ;;  %v2445_v29 = vrot.slane %v4992_v12, 1 }
 0x183   : > { %v1445_v16 = vadd.f32 %v1415_v51, %v1222_v3  ;;  %1171 = vst.msk [vmem:[#allocation2 + $0xa8] sm:$0xff] %vm282_vm4, %v1147_v14 }
 0x184   : > { %v1520_v17 = vld [vmem:[#allocation2 + $0x98] sm:$0xff]  ;;  %3931 = vmatmul.msk.bf16.gmra.mxu0 %vm424_vm0, %v2737_v13 }
 0x185   : > { %v1121_v18 = vpop.f32.mrf.mxu2  ;;  %1469 = vst.msk [vmem:[#allocation2 + $0xa0] sm:$0xff] %vm282_vm4, %v1445_v16  ;;  %v1744_v19 = vadd.f32 %v4875_v27, %v1520_v17  ;;  %v1420_v20 = vpop.f32.mrf.mxu3  ;;  %v4938_v27 = vld [vmem:[%s4310_s18 + $0x94] sm:$0xff] }
 0x186   : > { %v823_v21 = vpop.f32.mrf.mxu1  ;;  %v2738_v39 = vrot.slane %v4938_v27, 2 }
 0x187   : > { %1768 = vst.msk [vmem:[#allocation2 + $0x98] sm:$0xff] %vm282_vm4, %v1744_v19  ;;  %v849_v22 = vadd.f32 %v823_v21, %v630_v11  ;;  %v1803_v11 = vld [vmem:[#allocation2 + $0x18] sm:$0xff] }
 0x188   : > { %v924_v24 = vld [vmem:[#allocation2 + $0xb0] sm:$0xff]  ;;  %v2739_v46 = vsel %vm989_vm2, %v2736_v2, %v2738_v39 }
 0x189   : > { %v1148_v25 = vadd.f32 %v1121_v18, %v924_v24  ;;  %873 = vst.msk [vmem:[#allocation2 + $0xb8] sm:$0x3f] %vm306_vm5, %v849_v22  ;;  %v4935_v23 = vpop.f32.mrf.mxu0 }
 0x18a   : > { %v1223_v26 = vld [vmem:[#allocation2 + $0xa8] sm:$0xff] }
 0x18b   : > { %v1446_v28 = vadd.f32 %v1417_v59, %v1223_v26  ;;  %1172 = vst.msk [vmem:[#allocation2 + $0xb0] sm:$0xff] %vm282_vm4, %v1148_v25 }
 0x18c   : > { %v1521_v30 = vld [vmem:[#allocation2 + $0xa0] sm:$0xff] }
 0x18d   : > { %v1123_v31 = vpop.f32.mrf.mxu2  ;;  %1470 = vst.msk [vmem:[#allocation2 + $0xa8] sm:$0xff] %vm282_vm4, %v1446_v28  ;;  %v1745_v33 = vadd.f32 %v4893_v45, %v1521_v30  ;;  %v1422_v36 = vpop.f32.mrf.mxu3 }
 0x18e   : > { %v1935_v38 = vpop.f32.mrf.mxu1 }
 0x18f   : > { %1769 = vst.msk [vmem:[#allocation2 + $0xa0] sm:$0xff] %vm282_vm4, %v1745_v33  ;;  %v1995_v40 = vadd.f32 %v1935_v38, %v1800_v37  ;;  %v1804_v37 = vld [vmem:[#allocation2 + $0x20] sm:$0xff] }
 0x190   : > { %v925_v42 = vld [vmem:[#allocation2 + $0xb8] sm:$0x3f] }
 0x191   : > { %v1149_v43 = vadd.f32 %v1123_v31, %v925_v42  ;;  %2019 = vst.msk [vmem:[#allocation2] sm:$0xff] %vm282_vm4, %v1995_v40  ;;  %3734 = vmatmul.msk.bf16.gmra.mxu1 %vm424_vm0, %v4011_v34  ;;  %v4953_v45 = vpop.f32.mrf.mxu0  ;;  %v4013_v34 = vld [vmem:[%s4310_s18 + $0x78] sm:$0xff] }
 0x192   : > { %3800 = vmatmul.msk.bf16.gmra.mxu2 %vm424_vm0, %v4024_v35  ;;  %v1224_v32 = vld [vmem:[#allocation2 + $0xb0] sm:$0xff]  ;;  %3866 = vmatmul.msk.bf16.gmra.mxu3 %vm424_vm0, %v2442_v41  ;;  %v4026_v35 = vld [vmem:[%s4310_s18 + $0x9c] sm:$0xff]  ;;  %v2446_v41 = vsel %vm691_vm1, %v2443_v62, %v2445_v29 }
 0x193   : > { %v1447_v47 = vadd.f32 %v1420_v20, %v1224_v32  ;;  %1173 = vst.msk [vmem:[#allocation2 + $0xb8] sm:$0x3f] %vm306_vm5, %v1149_v43 }
 0x194   : > { %v1522_v48 = vld [vmem:[#allocation2 + $0xa8] sm:$0xff]  ;;  %3932 = vmatmul.msk.bf16.gmra.mxu0 %vm424_vm0, %v2739_v46 }
 0x195   : > { %v2205_v49 = vpop.f32.mrf.mxu2  ;;  %1471 = vst.msk [vmem:[#allocation2 + $0xb0] sm:$0xff] %vm282_vm4, %v1447_v47  ;;  %v1746_v50 = vadd.f32 %v4905_v52, %v1522_v48  ;;  %v2498_v51 = vpop.f32.mrf.mxu3  ;;  %v4968_v52 = vld [vmem:[%s4310_s18 + $0x9c] sm:$0xff] }
 0x196   : > { %v1937_v53 = vpop.f32.mrf.mxu1  ;;  %v2740_v2 = vrot.slane %v4968_v52, 2  ;;  %v5023_v47 = vld [vmem:[%s5395_s4] ss:$0 sm:$0xff] }
 0x197   : > { %1770 = vst.msk [vmem:[#allocation2 + $0xa8] sm:$0xff] %vm282_vm4, %v1746_v50  ;;  %v1996_v54 = vadd.f32 %v1937_v53, %v1801_v44 }
 0x198   : > { %v2070_v56 = vld [vmem:[#allocation2] sm:$0xff]  ;;  %v2741_v13 = vsel %vm989_vm2, %v2738_v39, %v2740_v2 }
 0x199   : > { %v2265_v57 = vadd.f32 %v2205_v49, %v2070_v56  ;;  %2020 = vst.msk [vmem:[#allocation2 + $0x8] sm:$0xff] %vm282_vm4, %v1996_v54  ;;  %v4965_v60 = vpop.f32.mrf.mxu0  ;;  %v2630_v49 = vld [vmem:[%s4310_s18 + $0xac] sm:$0x1] }
 0x19a   : > { %v1225_v58 = vld [vmem:[#allocation2 + $0xb8] sm:$0x3f] }
 0x19b   : > { %v1448_v61 = vadd.f32 %v1422_v36, %v1225_v58  ;;  %2289 = vst.msk [vmem:[#allocation2] sm:$0xff] %vm282_vm4, %v2265_v57  ;;  %v2707_v57 = vunpack.c.l.b16 %v2630_v49 }
 0x19c   : > { %v1523_v63 = vld [vmem:[#allocation2 + $0xb0] sm:$0xff] }
 0x19d   : > { %v2207_v0 = vpop.f32.mrf.mxu2  ;;  %1472 = vst.msk [vmem:[#allocation2 + $0xb8] sm:$0x3f] %vm306_vm5, %v1448_v61  ;;  %v1747_v1 = vadd.f32 %v4923_v15, %v1523_v63  ;;  %v2500_v59 = vpop.f32.mrf.mxu3  ;;  %v3720_v63 = vld [vmem:[%s4310_s18 + $0x80] sm:$0xf] }
 0x19e   : > { %v1940_v7 = vpop.f32.mrf.mxu1 }
 0x19f   : > { %1771 = vst.msk [vmem:[#allocation2 + $0xb0] sm:$0xff] %vm282_vm4, %v1747_v1  ;;  %v1997_v8 = vadd.f32 %v1940_v7, %v1802_v5  ;;  %v2720_v5 = vpack.c.b16 %v2707_v57, %v2707_v57 }
 0x1a0   : > { %v2071_v10 = vld [vmem:[#allocation2 + $0x8] sm:$0xff] }
 0x1a1   : > { %v2266_v14 = vadd.f32 %v2207_v0, %v2071_v10  ;;  %2021 = vst.msk [vmem:[#allocation2 + $0x10] sm:$0xff] %vm282_vm4, %v1997_v8  ;;  %3735 = vmatmul.msk.bf16.gmra.mxu1 %vm424_vm0, %v4012_v4  ;;  %v4983_v15 = vpop.f32.mrf.mxu0  ;;  %v4014_v0 = vld [vmem:[%s4310_s18 + $0x80] sm:$0x70] }
 0x1a2   : > { %3801 = vmatmul.msk.bf16.gmra.mxu2 %vm424_vm0, %v4025_v6  ;;  %v2340_v3 = vld [vmem:[#allocation2] sm:$0xff]  ;;  %3867 = vmatmul.msk.bf16.gmra.mxu3 %vm424_vm0, %v2444_v9  ;;  %v4027_v6 = vld [vmem:[%s4310_s18 + $0xa4] sm:$0x70] }
 0x1a3   : > { %v2558_v16 = vadd.f32 %v2498_v51, %v2340_v3  ;;  %2290 = vst.msk [vmem:[#allocation2 + $0x8] sm:$0xff] %vm282_vm4, %v2266_v14  ;;  %v3786_v4 = vld [vmem:[%s4310_s18 + $0xa4] sm:$0xf]  ;;  %v3721_v3 = vor.u32 %v4014_v0, %v3720_v63 }
 0x1a4   : > { %v1524_v17 = vld [vmem:[#allocation2 + $0xb8] sm:$0x3f]  ;;  %3933 = vmatmul.msk.bf16.gmra.mxu0 %vm424_vm0, %v2741_v13  ;;  %v3787_v13 = vor.u32 %v4027_v6, %v3786_v4  ;;  %v1808_v63 = vld [vmem:[#allocation2 + $0x40] sm:$0xff] }
 0x1a5   : > { %v2210_v18 = vpop.f32.mrf.mxu2  ;;  %2582 = vst.msk [vmem:[#allocation2] sm:$0xff] %vm282_vm4, %v2558_v16  ;;  %v1748_v19 = vadd.f32 %v4935_v23, %v1524_v17  ;;  %v2503_v20 = vpop.f32.mrf.mxu3  ;;  %v4998_v23 = vld [vmem:[%s4310_s18 + $0xa4] sm:$0xff] }
 0x1a6   : > { %v1942_v21 = vpop.f32.mrf.mxu1  ;;  %v2742_v39 = vrot.slane %v4998_v23, 2 }
 0x1a7   : > { %1772 = vst.msk [vmem:[#allocation2 + $0xb8] sm:$0x3f] %vm306_vm5, %v1748_v19  ;;  %v1998_v22 = vadd.f32 %v1942_v21, %v1803_v11 }
 0x1a8   : > { %v2072_v24 = vld [vmem:[#allocation2 + $0x10] sm:$0xff]  ;;  %v2743_v46 = vsel %vm989_vm2, %v2740_v2, %v2742_v39 }
 0x1a9   : > { %v2267_v25 = vadd.f32 %v2210_v18, %v2072_v24  ;;  %2022 = vst.msk [vmem:[#allocation2 + $0x18] sm:$0xff] %vm282_vm4, %v1998_v22  ;;  %v4995_v27 = vpop.f32.mrf.mxu0  ;;  %v1806_v18 = vld [vmem:[#allocation2 + $0x30] sm:$0xff] }
 0x1aa   : > { %v2341_v26 = vld [vmem:[#allocation2 + $0x8] sm:$0xff] }
 0x1ab   : > { %v2559_v28 = vadd.f32 %v2500_v59, %v2341_v26  ;;  %2291 = vst.msk [vmem:[#allocation2 + $0x10] sm:$0xff] %vm282_vm4, %v2267_v25 }
 0x1ac   : > { %v2634_v30 = vld [vmem:[#allocation2] sm:$0xff] }
 0x1ad   : > { %v2212_v31 = vpop.f32.mrf.mxu2  ;;  %2583 = vst.msk [vmem:[#allocation2 + $0x8] sm:$0xff] %vm282_vm4, %v2559_v28  ;;  %v2857_v33 = vadd.f32 %v4953_v45, %v2634_v30  ;;  %v2505_v36 = vpop.f32.mrf.mxu3 }
 0x1ae   : > { %v1945_v38 = vpop.f32.mrf.mxu1 }
 0x1af   : > { %2881 = vst.msk [vmem:[#allocation2] sm:$0xff] %vm282_vm4, %v2857_v33  ;;  %v1999_v40 = vadd.f32 %v1945_v38, %v1804_v37  ;;  %v1807_v38 = vld [vmem:[#allocation2 + $0x38] sm:$0xff] }
 0x1b0   : > { %v2073_v42 = vld [vmem:[#allocation2 + $0x18] sm:$0xff] }
 0x1b1   : > { %v2268_v43 = vadd.f32 %v2212_v31, %v2073_v42  ;;  %2023 = vst.msk [vmem:[#allocation2 + $0x20] sm:$0xff] %vm282_vm4, %v1999_v40  ;;  %3736 = vmatmul.msk.bf16.gmra.mxu1 %vm424_vm0, %v4013_v34  ;;  %v5015_v45 = vpop.f32.mrf.mxu0 }
 0x1b2   : > { %3802 = vmatmul.msk.bf16.gmra.mxu2 %vm424_vm0, %v4026_v35  ;;  %v2342_v32 = vld [vmem:[#allocation2 + $0x10] sm:$0xff]  ;;  %3868 = vmatmul.msk.bf16.gmra.mxu3 %vm424_vm0, %v2446_v41 }
 0x1b3   : > { %v2560_v48 = vadd.f32 %v2503_v20, %v2342_v32  ;;  %2292 = vst.msk [vmem:[#allocation2 + $0x18] sm:$0xff] %vm282_vm4, %v2268_v43  ;;  %v2744_v20 = vrot.slane %v2720_v5, 2 }
 0x1b4   : > { %v2635_v50 = vld [vmem:[#allocation2 + $0x8] sm:$0xff]  ;;  %3934 = vmatmul.msk.bf16.gmra.mxu0 %vm424_vm0, %v2743_v46 }
 0x1b5   : > { %v2215_v51 = vpop.f32.mrf.mxu2  ;;  %2584 = vst.msk [vmem:[#allocation2 + $0x10] sm:$0xff] %vm282_vm4, %v2560_v48  ;;  %v2858_v44 = vadd.f32 %v4965_v60, %v2635_v50  ;;  %v2508_v53 = vpop.f32.mrf.mxu3  ;;  %v2745_v31 = vsel %vm989_vm2, %v2742_v39, %v2744_v20 }
 0x1b6   : > { %v2908_v54 = vld [vmem:[#allocation2] sm:$0xff]  ;;  %v1947_v56 = vpop.f32.mrf.mxu1 }
 0x1b7   : > { %v5031_v58 = vadd.f32 %v5023_v47, %v2908_v54  ;;  %2882 = vst.msk [vmem:[#allocation2 + $0x8] sm:$0xff] %vm282_vm4, %v2858_v44  ;;  %v2000_v52 = vadd.f32 %v1947_v56, %v1805_v55 }
 0x1b8   : > { %v2074_v61 = vld [vmem:[#allocation2 + $0x20] sm:$0xff] }
 0x1b9   : > { %v2984_v60 = vmul.f32 %v5031_v58, %v5031_v58  ;;  %v2269_v62 = vadd.f32 %v2215_v51, %v2074_v61  ;;  %2024 = vst.msk [vmem:[#allocation2 + $0x28] sm:$0xff] %vm282_vm4, %v2000_v52  ;;  %v5041_v59 = vpop.f32.mrf.mxu0  ;;  %v2960_v49 = vmul.f32 0.5, %v5031_v58 }
 0x1ba   : > { %v2343_v1 = vld [vmem:[#allocation2 + $0x18] sm:$0xff] }
 0x1bb   : > { %v3008_v7 = vmul.f32 %v2984_v60, %v5031_v58  ;;  %v2561_v2 = vadd.f32 %v2505_v36, %v2343_v1  ;;  %2293 = vst.msk [vmem:[#allocation2 + $0x20] sm:$0xff] %vm282_vm4, %v2269_v62 }
 0x1bc   : > { %v2636_v8 = vld [vmem:[#allocation2 + $0x10] sm:$0xff] }
 0x1bd   : > { %v2217_v9 = vpop.f32.mrf.mxu2  ;;  %v3032_v10 = vmul.f32 0.044715, %v3008_v7  ;;  %2585 = vst.msk [vmem:[#allocation2 + $0x18] sm:$0xff] %vm282_vm4, %v2561_v2  ;;  %v2859_v14 = vadd.f32 %v4983_v15, %v2636_v8  ;;  %v2510_v16 = vpop.f32.mrf.mxu3 }
 0x1be   : > { %v2909_v17 = vld [vmem:[#allocation2 + $0x8] sm:$0xff]  ;;  %v1950_v19 = vpop.f32.mrf.mxu1 }
 0x1bf   : > { %v3056_v11 = vadd.f32 %v3032_v10, %v5031_v58  ;;  %v5055_v21 = vadd.f32 %v5023_v47, %v2909_v17  ;;  %2883 = vst.msk [vmem:[#allocation2 + $0x10] sm:$0xff] %vm282_vm4, %v2859_v14  ;;  %v2001_v15 = vadd.f32 %v1950_v19, %v1806_v18 }
 0x1c0   : > { %v2075_v22 = vld [vmem:[#allocation2 + $0x28] sm:$0xff] }
 0x1c1   : > { %v3080_v24 = vmul.f32 0.7978846, %v3056_v11  ;;  %v2985_v25 = vmul.f32 %v5055_v21, %v5055_v21  ;;  %v2270_v26 = vadd.f32 %v2217_v9, %v2075_v22  ;;  %2025 = vst.msk [vmem:[#allocation2 + $0x30] sm:$0xff] %vm282_vm4, %v2001_v15  ;;  %3737 = vmatmul.msk.bf16.gmra.mxu1 %vm424_vm0, %v3721_v3  ;;  %v5067_v30 = vpop.f32.mrf.mxu0  ;;  %v2961_v9 = vmul.f32 0.5, %v5055_v21 }
 0x1c2   : > { %3803 = vmatmul.msk.bf16.gmra.mxu2 %vm424_vm0, %v3787_v13  ;;  %v2344_v28 = vld [vmem:[#allocation2 + $0x20] sm:$0xff]  ;;  %3869 = vmatmul.msk.bf16.gmra.mxu3 %vm424_vm0, %v2445_v29 }
 0x1c3   : > { %4107 = vtanh.f32 %v3080_v24  ;;  %v3009_v33 = vmul.f32 %v2985_v25, %v5055_v21  ;;  %v2562_v34 = vadd.f32 %v2508_v53, %v2344_v28  ;;  %2294 = vst.msk [vmem:[#allocation2 + $0x28] sm:$0xff] %vm282_vm4, %v2270_v26  ;;  %v1809_v24 = vld [vmem:[#allocation2 + $0x48] sm:$0xff] }
 0x1c4   : > { %v2637_v35 = vld [vmem:[#allocation2 + $0x18] sm:$0xff]  ;;  %3935 = vmatmul.msk.bf16.gmra.mxu0 %vm424_vm0, %v2745_v31 }
 0x1c5   : > { %v2220_v36 = vpop.f32.mrf.mxu2  ;;  %v3033_v37 = vmul.f32 0.044715, %v3009_v33  ;;  %2586 = vst.msk [vmem:[#allocation2 + $0x20] sm:$0xff] %vm282_vm4, %v2562_v34  ;;  %v2860_v12 = vadd.f32 %v4995_v27, %v2637_v35  ;;  %v2513_v29 = vpop.f32.mrf.mxu3 }
 0x1c6   : > { %v2910_v23 = vld [vmem:[#allocation2 + $0x10] sm:$0xff]  ;;  %v1952_v39 = vpop.f32.mrf.mxu1 }
 0x1c7   : > { %v3057_v40 = vadd.f32 %v3033_v37, %v5055_v21  ;;  %v5080_v41 = vadd.f32 %v5023_v47, %v2910_v23  ;;  %2884 = vst.msk [vmem:[#allocation2 + $0x18] sm:$0xff] %vm282_vm4, %v2860_v12  ;;  %v2002_v42 = vadd.f32 %v1952_v39, %v1807_v38 }
 0x1c8   : > { %v2076_v43 = vld [vmem:[#allocation2 + $0x30] sm:$0xff] }
 0x1c9   : > { %v4108_v32 = vpop.eup %4107  ;;  %v3081_v46 = vmul.f32 0.7978846, %v3057_v40  ;;  %v2986_v27 = vmul.f32 %v5080_v41, %v5080_v41  ;;  %v2271_v48 = vadd.f32 %v2220_v36, %v2076_v43  ;;  %2026 = vst.msk [vmem:[#allocation2 + $0x38] sm:$0xff] %vm282_vm4, %v2002_v42  ;;  %v5087_v44 = vpop.f32.mrf.mxu0  ;;  %v2962_v37 = vmul.f32 0.5, %v5080_v41 }
 0x1ca   : > { %v3128_v50 = vadd.f32 1.0, %v4108_v32  ;;  %v2345_v51 = vld [vmem:[#allocation2 + $0x28] sm:$0xff] }
 0x1cb   : > { %4109 = vtanh.f32 %v3081_v46  ;;  %v3010_v53 = vmul.f32 %v2986_v27, %v5080_v41  ;;  %v2563_v54 = vadd.f32 %v2510_v16, %v2345_v51  ;;  %2295 = vst.msk [vmem:[#allocation2 + $0x30] sm:$0xff] %vm282_vm4, %v2271_v48 }
 0x1cc   : > { %v3152_v55 = vmul.f32 %v3128_v50, %v2960_v49  ;;  %v2638_v56 = vld [vmem:[#allocation2 + $0x20] sm:$0xff]  ;;  %v1810_v49 = vld [vmem:[#allocation2 + $0x50] sm:$0xff] }
 0x1cd   : > { %v2222_v57 = vpop.f32.mrf.mxu2  ;;  %v3034_v58 = vmul.f32 0.044715, %v3010_v53  ;;  %2587 = vst.msk [vmem:[#allocation2 + $0x28] sm:$0xff] %vm282_vm4, %v2563_v54  ;;  %v2861_v52 = vadd.f32 %v5015_v45, %v2638_v56  ;;  %v2515_v61 = vpop.f32.mrf.mxu3 }
 0x1ce   : > { %v3176_v60 = vpack.c.bf16 %v3152_v55, %v3152_v55  ;;  %v2911_v62 = vld [vmem:[#allocation2 + $0x18] sm:$0xff]  ;;  %v1955_v0 = vpop.f32.mrf.mxu1 }
 0x1cf   : > { %v3058_v1 = vadd.f32 %v3034_v58, %v5080_v41  ;;  %v5100_v4 = vadd.f32 %v5023_v47, %v2911_v62  ;;  %2885 = vst.msk [vmem:[#allocation2 + $0x20] sm:$0xff] %vm282_vm4, %v2861_v52  ;;  %v2003_v6 = vadd.f32 %v1955_v0, %v1808_v63 }
 0x1d0   : > { %3201 = vst.msk [vmem:[%s5094_s27] sm:$0xf] %vm3200_vm6, %v3176_v60  ;;  %v2077_v5 = vld [vmem:[#allocation2 + $0x38] sm:$0xff] }
 0x1d1   : > { %v4110_v7 = vpop.eup %4109  ;;  %v3082_v2 = vmul.f32 0.7978846, %v3058_v1  ;;  %v2987_v45 = vmul.f32 %v5100_v4, %v5100_v4  ;;  %v2272_v8 = vadd.f32 %v2222_v57, %v2077_v5  ;;  %2027 = vst.msk [vmem:[#allocation2 + $0x40] sm:$0xff] %vm282_vm4, %v2003_v6  ;;  %v5109_v3 = vpop.f32.mrf.mxu0  ;;  %v2963_v52 = vmul.f32 0.5, %v5100_v4 }
 0x1d2   : > { %v3129_v10 = vadd.f32 1.0, %v4110_v7  ;;  %v2346_v14 = vld [vmem:[#allocation2 + $0x30] sm:$0xff] }
 0x1d3   : > { %4111 = vtanh.f32 %v3082_v2  ;;  %v3011_v13 = vmul.f32 %v2987_v45, %v5100_v4  ;;  %v2564_v16 = vadd.f32 %v2513_v29, %v2346_v14  ;;  %2296 = vst.msk [vmem:[#allocation2 + $0x38] sm:$0xff] %vm282_vm4, %v2272_v8 }
 0x1d4   : > { %v3153_v17 = vmul.f32 %v3129_v10, %v2961_v9  ;;  %v2639_v18 = vld [vmem:[#allocation2 + $0x28] sm:$0xff]  ;;  %v1811_v9 = vld [vmem:[#allocation2 + $0x58] sm:$0xff] }
 0x1d5   : > { %v2225_v19 = vpop.f32.mrf.mxu2  ;;  %v3035_v20 = vmul.f32 0.044715, %v3011_v13  ;;  %2588 = vst.msk [vmem:[#allocation2 + $0x30] sm:$0xff] %vm282_vm4, %v2564_v16  ;;  %v2862_v11 = vadd.f32 %v5041_v59, %v2639_v18  ;;  %v2518_v21 = vpop.f32.mrf.mxu3 }
 0x1d6   : > { %v3177_v15 = vpack.c.bf16 %v3153_v17, %v3153_v17  ;;  %v2912_v22 = vld [vmem:[#allocation2 + $0x20] sm:$0xff]  ;;  %v1957_v25 = vpop.f32.mrf.mxu1 }
 0x1d7   : > { %v3059_v26 = vadd.f32 %v3035_v20, %v5100_v4  ;;  %v5117_v28 = vadd.f32 %v5023_v47, %v2912_v22  ;;  %2886 = vst.msk [vmem:[#allocation2 + $0x28] sm:$0xff] %vm282_vm4, %v2862_v11  ;;  %v2004_v31 = vadd.f32 %v1957_v25, %v1809_v24 }
 0x1d8   : > { %3202 = vst.msk [vmem:[%s5094_s27 + $0x4] sm:$0xf] %vm3200_vm6, %v3177_v15  ;;  %v2078_v33 = vld [vmem:[#allocation2 + $0x40] sm:$0xff] }
 0x1d9   : > { %v4112_v34 = vpop.eup %4111  ;;  %v3083_v35 = vmul.f32 0.7978846, %v3059_v26  ;;  %v2988_v59 = vmul.f32 %v5117_v28, %v5117_v28  ;;  %v2273_v36 = vadd.f32 %v2225_v19, %v2078_v33  ;;  %2028 = vst.msk [vmem:[#allocation2 + $0x48] sm:$0xff] %vm282_vm4, %v2004_v31  ;;  %v5126_v23 = vpop.f32.mrf.mxu0  ;;  %v2964_v11 = vmul.f32 0.5, %v5117_v28 }
 0x1da   : > { %v3130_v12 = vadd.f32 1.0, %v4112_v34  ;;  %v2347_v29 = vld [vmem:[#allocation2 + $0x38] sm:$0xff] }
 0x1db   : > { %4113 = vtanh.f32 %v3083_v35  ;;  %v3012_v38 = vmul.f32 %v2988_v59, %v5117_v28  ;;  %v2565_v39 = vadd.f32 %v2515_v61, %v2347_v29  ;;  %2297 = vst.msk [vmem:[#allocation2 + $0x40] sm:$0xff] %vm282_vm4, %v2273_v36 }
 0x1dc   : > { %v3154_v40 = vmul.f32 %v3130_v12, %v2962_v37  ;;  %v2640_v42 = vld [vmem:[#allocation2 + $0x30] sm:$0xff]  ;;  %v1812_v37 = vld [vmem:[#allocation2 + $0x60] sm:$0xff] }
 0x1dd   : > { %v2227_v43 = vpop.f32.mrf.mxu2  ;;  %v3036_v32 = vmul.f32 0.044715, %v3012_v38  ;;  %2589 = vst.msk [vmem:[#allocation2 + $0x38] sm:$0xff] %vm282_vm4, %v2565_v39  ;;  %v2863_v46 = vadd.f32 %v5067_v30, %v2640_v42  ;;  %v2520_v41 = vpop.f32.mrf.mxu3 }
 0x1de   : > { %v3178_v27 = vpack.c.bf16 %v3154_v40, %v3154_v40  ;;  %v2913_v48 = vld [vmem:[#allocation2 + $0x28] sm:$0xff]  ;;  %v1960_v50 = vpop.f32.mrf.mxu1 }
 0x1df   : > { %v3060_v51 = vadd.f32 %v3036_v32, %v5117_v28  ;;  %v5134_v53 = vadd.f32 %v5023_v47, %v2913_v48  ;;  %2887 = vst.msk [vmem:[#allocation2 + $0x30] sm:$0xff] %vm282_vm4, %v2863_v46  ;;  %v2005_v54 = vadd.f32 %v1960_v50, %v1810_v49 }
 0x1e0   : > { %3203 = vst.msk [vmem:[%s5094_s27 + $0x8] sm:$0xf] %vm3200_vm6, %v3178_v27  ;;  %v2079_v55 = vld [vmem:[#allocation2 + $0x48] sm:$0xff] }
 0x1e1   : > { %v4114_v56 = vpop.eup %4113  ;;  %v3084_v57 = vmul.f32 0.7978846, %v3060_v51  ;;  %v2989_v30 = vmul.f32 %v5134_v53, %v5134_v53  ;;  %v2274_v58 = vadd.f32 %v2227_v43, %v2079_v55  ;;  %2029 = vst.msk [vmem:[#allocation2 + $0x50] sm:$0xff] %vm282_vm4, %v2005_v54  ;;  %v5143_v62 = vpop.f32.mrf.mxu0  ;;  %v2965_v46 = vmul.f32 0.5, %v5134_v53 }
 0x1e2   : > { %v3131_v61 = vadd.f32 1.0, %v4114_v56  ;;  %v2348_v60 = vld [vmem:[#allocation2 + $0x40] sm:$0xff] }
 0x1e3   : > { %4115 = vtanh.f32 %v3084_v57  ;;  %v3013_v63 = vmul.f32 %v2989_v30, %v5134_v53  ;;  %v2566_v0 = vadd.f32 %v2518_v21, %v2348_v60  ;;  %2298 = vst.msk [vmem:[#allocation2 + $0x48] sm:$0xff] %vm282_vm4, %v2274_v58 }
 0x1e4   : > { %v3155_v1 = vmul.f32 %v3131_v61, %v2963_v52  ;;  %v2641_v6 = vld [vmem:[#allocation2 + $0x38] sm:$0xff]  ;;  %v1813_v52 = vld [vmem:[#allocation2 + $0x68] sm:$0xff] }
 0x1e5   : > { %v2230_v5 = vpop.f32.mrf.mxu2  ;;  %v3037_v7 = vmul.f32 0.044715, %v3013_v63  ;;  %2590 = vst.msk [vmem:[#allocation2 + $0x40] sm:$0xff] %vm282_vm4, %v2566_v0  ;;  %v2864_v2 = vadd.f32 %v5087_v44, %v2641_v6  ;;  %v2523_v4 = vpop.f32.mrf.mxu3 }
 0x1e6   : > { %v3179_v45 = vpack.c.bf16 %v3155_v1, %v3155_v1  ;;  %v2914_v8 = vld [vmem:[#allocation2 + $0x30] sm:$0xff]  ;;  %v1962_v10 = vpop.f32.mrf.mxu1 }
 0x1e7   : > { %v3061_v14 = vadd.f32 %v3037_v7, %v5134_v53  ;;  %v5151_v13 = vadd.f32 %v5023_v47, %v2914_v8  ;;  %2888 = vst.msk [vmem:[#allocation2 + $0x38] sm:$0xff] %vm282_vm4, %v2864_v2  ;;  %v2006_v16 = vadd.f32 %v1962_v10, %v1811_v9 }
 0x1e8   : > { %3204 = vst.msk [vmem:[%s5094_s27 + $0xc] sm:$0xf] %vm3200_vm6, %v3179_v45  ;;  %v2080_v17 = vld [vmem:[#allocation2 + $0x50] sm:$0xff] }
 0x1e9   : > { %v4116_v18 = vpop.eup %4115  ;;  %v3085_v19 = vmul.f32 0.7978846, %v3061_v14  ;;  %v2990_v44 = vmul.f32 %v5151_v13, %v5151_v13  ;;  %v2275_v20 = vadd.f32 %v2230_v5, %v2080_v17  ;;  %2030 = vst.msk [vmem:[#allocation2 + $0x58] sm:$0xff] %vm282_vm4, %v2006_v16  ;;  %v5162_v25 = vpop.f32.mrf.mxu0  ;;  %v2966_v2 = vmul.f32 0.5, %v5151_v13 }
 0x1ea   : > { %v3132_v21 = vadd.f32 1.0, %v4116_v18  ;;  %v2349_v15 = vld [vmem:[#allocation2 + $0x48] sm:$0xff] }
 0x1eb   : > { %4117 = vtanh.f32 %v3085_v19  ;;  %v3014_v22 = vmul.f32 %v2990_v44, %v5151_v13  ;;  %v2567_v24 = vadd.f32 %v2520_v41, %v2349_v15  ;;  %2299 = vst.msk [vmem:[#allocation2 + $0x50] sm:$0xff] %vm282_vm4, %v2275_v20  ;;  %v1814_v20 = vld [vmem:[#allocation2 + $0x70] sm:$0xff] }
 0x1ec   : > { %v3156_v26 = vmul.f32 %v3132_v21, %v2964_v11  ;;  %v2642_v31 = vld [vmem:[#allocation2 + $0x40] sm:$0xff] }
 0x1ed   : > { %v2232_v33 = vpop.f32.mrf.mxu2  ;;  %v3038_v34 = vmul.f32 0.044715, %v3014_v22  ;;  %2591 = vst.msk [vmem:[#allocation2 + $0x48] sm:$0xff] %vm282_vm4, %v2567_v24  ;;  %v2865_v35 = vadd.f32 %v5109_v3, %v2642_v31  ;;  %v2525_v28 = vpop.f32.mrf.mxu3 }
 0x1ee   : > { %v3180_v59 = vpack.c.bf16 %v3156_v26, %v3156_v26  ;;  %v2915_v36 = vld [vmem:[#allocation2 + $0x38] sm:$0xff]  ;;  %v1965_v12 = vpop.f32.mrf.mxu1 }
 0x1ef   : > { %v3062_v29 = vadd.f32 %v3038_v34, %v5151_v13  ;;  %v5168_v38 = vadd.f32 %v5023_v47, %v2915_v36  ;;  %2889 = vst.msk [vmem:[#allocation2 + $0x40] sm:$0xff] %vm282_vm4, %v2865_v35  ;;  %v2007_v39 = vadd.f32 %v1965_v12, %v1812_v37 }
 0x1f0   : > { %3205 = vst.msk [vmem:[%s5094_s27 + $0x10] sm:$0xf] %vm3200_vm6, %v3180_v59  ;;  %v2081_v40 = vld [vmem:[#allocation2 + $0x58] sm:$0xff] }
 0x1f1   : > { %v4118_v42 = vpop.eup %4117  ;;  %v3086_v43 = vmul.f32 0.7978846, %v3062_v29  ;;  %v2991_v3 = vmul.f32 %v5168_v38, %v5168_v38  ;;  %v2276_v32 = vadd.f32 %v2232_v33, %v2081_v40  ;;  %2031 = vst.msk [vmem:[#allocation2 + $0x60] sm:$0xff] %vm282_vm4, %v2007_v39  ;;  %v5181_v30 = vpop.f32.mrf.mxu0  ;;  %v2967_v35 = vmul.f32 0.5, %v5168_v38 }
 0x1f2   : > { %v3133_v41 = vadd.f32 1.0, %v4118_v42  ;;  %v2350_v27 = vld [vmem:[#allocation2 + $0x50] sm:$0xff] }
 0x1f3   : > { %4119 = vtanh.f32 %v3086_v43  ;;  %v3015_v48 = vmul.f32 %v2991_v3, %v5168_v38  ;;  %v2568_v49 = vadd.f32 %v2523_v4, %v2350_v27  ;;  %2300 = vst.msk [vmem:[#allocation2 + $0x58] sm:$0xff] %vm282_vm4, %v2276_v32  ;;  %v1815_v32 = vld [vmem:[#allocation2 + $0x78] sm:$0xff] }
 0x1f4   : > { %v3157_v50 = vmul.f32 %v3133_v41, %v2965_v46  ;;  %v2643_v51 = vld [vmem:[#allocation2 + $0x48] sm:$0xff] }
 0x1f5   : > { %v2235_v54 = vpop.f32.mrf.mxu2  ;;  %v3039_v55 = vmul.f32 0.044715, %v3015_v48  ;;  %2592 = vst.msk [vmem:[#allocation2 + $0x50] sm:$0xff] %vm282_vm4, %v2568_v49  ;;  %v2866_v56 = vadd.f32 %v5126_v23, %v2643_v51  ;;  %v2528_v57 = vpop.f32.mrf.mxu3 }
 0x1f6   : > { %v3181_v53 = vpack.c.bf16 %v3157_v50, %v3157_v50  ;;  %v2916_v58 = vld [vmem:[#allocation2 + $0x40] sm:$0xff]  ;;  %v1967_v61 = vpop.f32.mrf.mxu1 }
 0x1f7   : > { %v3063_v60 = vadd.f32 %v3039_v55, %v5168_v38  ;;  %v5185_v63 = vadd.f32 %v5023_v47, %v2916_v58  ;;  %2890 = vst.msk [vmem:[#allocation2 + $0x48] sm:$0xff] %vm282_vm4, %v2866_v56  ;;  %v2008_v0 = vadd.f32 %v1967_v61, %v1813_v52 }
 0x1f8   : > { %3206 = vst.msk [vmem:[%s5094_s27 + $0x14] sm:$0xf] %vm3200_vm6, %v3181_v53  ;;  %v2082_v1 = vld [vmem:[#allocation2 + $0x60] sm:$0xff] }
 0x1f9   : > { %v4120_v6 = vpop.eup %4119  ;;  %v3087_v23 = vmul.f32 0.7978846, %v3063_v60  ;;  %v2992_v5 = vmul.f32 %v5185_v63, %v5185_v63  ;;  %v2277_v7 = vadd.f32 %v2235_v54, %v2082_v1  ;;  %2032 = vst.msk [vmem:[#allocation2 + $0x68] sm:$0xff] %vm282_vm4, %v2008_v0  ;;  %v5203_v24 = vpop.f32.mrf.mxu0  ;;  %v2968_v56 = vmul.f32 0.5, %v5185_v63 }
 0x1fa   : > { %v3134_v4 = vadd.f32 1.0, %v4120_v6  ;;  %v2351_v45 = vld [vmem:[#allocation2 + $0x58] sm:$0xff] }
 0x1fb   : > { %4121 = vtanh.f32 %v3087_v23  ;;  %v3016_v8 = vmul.f32 %v2992_v5, %v5185_v63  ;;  %v2569_v9 = vadd.f32 %v2525_v28, %v2351_v45  ;;  %2301 = vst.msk [vmem:[#allocation2 + $0x60] sm:$0xff] %vm282_vm4, %v2277_v7  ;;  %v1816_v7 = vld [vmem:[#allocation2 + $0x80] sm:$0xff] }
 0x1fc   : > { %v3158_v10 = vmul.f32 %v3134_v4, %v2966_v2  ;;  %v2644_v14 = vld [vmem:[#allocation2 + $0x50] sm:$0xff] }
 0x1fd   : > { %v2237_v16 = vpop.f32.mrf.mxu2  ;;  %v3040_v17 = vmul.f32 0.044715, %v3016_v8  ;;  %2593 = vst.msk [vmem:[#allocation2 + $0x58] sm:$0xff] %vm282_vm4, %v2569_v9  ;;  %v2867_v18 = vadd.f32 %v5143_v62, %v2644_v14  ;;  %v2530_v19 = vpop.f32.mrf.mxu3 }
 0x1fe   : > { %v3182_v44 = vpack.c.bf16 %v3158_v10, %v3158_v10  ;;  %v2917_v13 = vld [vmem:[#allocation2 + $0x48] sm:$0xff]  ;;  %v1970_v11 = vpop.f32.mrf.mxu1 }
 0x1ff   : > { %v3064_v21 = vadd.f32 %v3040_v17, %v5185_v63  ;;  %v5200_v15 = vadd.f32 %v5023_v47, %v2917_v13  ;;  %2891 = vst.msk [vmem:[#allocation2 + $0x50] sm:$0xff] %vm282_vm4, %v2867_v18  ;;  %v2009_v22 = vadd.f32 %v1970_v11, %v1814_v20 }
 0x200   : > { %3207 = vst.msk [vmem:[%s5094_s27 + $0x18] sm:$0xf] %vm3200_vm6, %v3182_v44  ;;  %v2083_v26 = vld [vmem:[#allocation2 + $0x68] sm:$0xff] }
 0x201   : > { %v4122_v31 = vpop.eup %4121  ;;  %v3088_v62 = vmul.f32 0.7978846, %v3064_v21  ;;  %v2993_v33 = vmul.f32 %v5200_v15, %v5200_v15  ;;  %v2278_v34 = vadd.f32 %v2237_v16, %v2083_v26  ;;  %2033 = vst.msk [vmem:[#allocation2 + $0x70] sm:$0xff] %vm282_vm4, %v2009_v22  ;;  %v5225_v55 = vpop.f32.mrf.mxu0  ;;  %v2969_v17 = vmul.f32 0.5, %v5200_v15 }
 0x202   : > { %v3135_v28 = vadd.f32 1.0, %v4122_v31  ;;  %v2352_v59 = vld [vmem:[#allocation2 + $0x60] sm:$0xff] }
 0x203   : > { %4123 = vtanh.f32 %v3088_v62  ;;  %v3017_v36 = vmul.f32 %v2993_v33, %v5200_v15  ;;  %v2570_v37 = vadd.f32 %v2528_v57, %v2352_v59  ;;  %2302 = vst.msk [vmem:[#allocation2 + $0x68] sm:$0xff] %vm282_vm4, %v2278_v34  ;;  %v1817_v34 = vld [vmem:[#allocation2 + $0x88] sm:$0xff] }
 0x204   : > { %v3159_v12 = vmul.f32 %v3135_v28, %v2967_v35  ;;  %v2645_v29 = vld [vmem:[#allocation2 + $0x58] sm:$0xff] }
 0x205   : > { %v2240_v39 = vpop.f32.mrf.mxu2  ;;  %v3041_v40 = vmul.f32 0.044715, %v3017_v36  ;;  %2594 = vst.msk [vmem:[#allocation2 + $0x60] sm:$0xff] %vm282_vm4, %v2570_v37  ;;  %v2868_v42 = vadd.f32 %v5162_v25, %v2645_v29  ;;  %v2533_v43 = vpop.f32.mrf.mxu3 }
 0x206   : > { %v3183_v3 = vpack.c.bf16 %v3159_v12, %v3159_v12  ;;  %v2918_v38 = vld [vmem:[#allocation2 + $0x50] sm:$0xff]  ;;  %v1972_v46 = vpop.f32.mrf.mxu1 }
 0x207   : > { %v3065_v41 = vadd.f32 %v3041_v40, %v5200_v15  ;;  %v5217_v27 = vadd.f32 %v5023_v47, %v2918_v38  ;;  %2892 = vst.msk [vmem:[#allocation2 + $0x58] sm:$0xff] %vm282_vm4, %v2868_v42  ;;  %v2010_v48 = vadd.f32 %v1972_v46, %v1815_v32 }
 0x208   : > { %3208 = vst.msk [vmem:[%s5094_s27 + $0x1c] sm:$0xf] %vm3200_vm6, %v3183_v3  ;;  %v2084_v49 = vld [vmem:[#allocation2 + $0x70] sm:$0xff] }
 0x209   : > { %v4124_v50 = vpop.eup %4123  ;;  %v3089_v51 = vmul.f32 0.7978846, %v3065_v41  ;;  %v2994_v25 = vmul.f32 %v5217_v27, %v5217_v27  ;;  %v2279_v54 = vadd.f32 %v2240_v39, %v2084_v49  ;;  %2034 = vst.msk [vmem:[#allocation2 + $0x78] sm:$0xff] %vm282_vm4, %v2010_v48  ;;  %v5245_v20 = vpop.f32.mrf.mxu0  ;;  %v2970_v40 = vmul.f32 0.5, %v5217_v27 }
 0x20a   : > { %v3136_v57 = vadd.f32 1.0, %v4124_v50  ;;  %v2353_v53 = vld [vmem:[#allocation2 + $0x68] sm:$0xff] }
 0x20b   : > { %4125 = vtanh.f32 %v3089_v51  ;;  %v3018_v58 = vmul.f32 %v2994_v25, %v5217_v27  ;;  %v2571_v52 = vadd.f32 %v2530_v19, %v2353_v53  ;;  %2303 = vst.msk [vmem:[#allocation2 + $0x70] sm:$0xff] %vm282_vm4, %v2279_v54  ;;  %v1818_v54 = vld [vmem:[#allocation2 + $0x90] sm:$0xff] }
 0x20c   : > { %v3160_v61 = vmul.f32 %v3136_v57, %v2968_v56  ;;  %v2646_v60 = vld [vmem:[#allocation2 + $0x60] sm:$0xff] }
 0x20d   : > { %v2242_v0 = vpop.f32.mrf.mxu2  ;;  %v3042_v1 = vmul.f32 0.044715, %v3018_v58  ;;  %2595 = vst.msk [vmem:[#allocation2 + $0x68] sm:$0xff] %vm282_vm4, %v2571_v52  ;;  %v2869_v6 = vadd.f32 %v5181_v30, %v2646_v60  ;;  %v2535_v23 = vpop.f32.mrf.mxu3 }
 0x20e   : > { %v3184_v5 = vpack.c.bf16 %v3160_v61, %v3160_v61  ;;  %v2919_v63 = vld [vmem:[#allocation2 + $0x58] sm:$0xff]  ;;  %v1975_v2 = vpop.f32.mrf.mxu1 }
 0x20f   : > { %v3066_v4 = vadd.f32 %v3042_v1, %v5217_v27  ;;  %v5234_v45 = vadd.f32 %v5023_v47, %v2919_v63  ;;  %2893 = vst.msk [vmem:[#allocation2 + $0x60] sm:$0xff] %vm282_vm4, %v2869_v6  ;;  %v2011_v8 = vadd.f32 %v1975_v2, %v1816_v7 }
 0x210   : > { %3209 = vst.msk [vmem:[%s5094_s27 + $0x20] sm:$0xf] %vm3200_vm6, %v3184_v5  ;;  %v2085_v9 = vld [vmem:[#allocation2 + $0x78] sm:$0xff] }
 0x211   : > { %v4126_v10 = vpop.eup %4125  ;;  %v3090_v14 = vmul.f32 0.7978846, %v3066_v4  ;;  %v2995_v30 = vmul.f32 %v5234_v45, %v5234_v45  ;;  %v2280_v16 = vadd.f32 %v2242_v0, %v2085_v9  ;;  %2035 = vst.msk [vmem:[#allocation2 + $0x80] sm:$0xff] %vm282_vm4, %v2011_v8  ;;  %v2837_v51 = vpop.f32.mrf.mxu0  ;;  %v2971_v1 = vmul.f32 0.5, %v5234_v45 }
 0x212   : > { %v3137_v18 = vadd.f32 1.0, %v4126_v10  ;;  %v2354_v19 = vld [vmem:[#allocation2 + $0x70] sm:$0xff] }
 0x213   : > { %4127 = vtanh.f32 %v3090_v14  ;;  %v3019_v44 = vmul.f32 %v2995_v30, %v5234_v45  ;;  %v2572_v13 = vadd.f32 %v2533_v43, %v2354_v19  ;;  %2304 = vst.msk [vmem:[#allocation2 + $0x78] sm:$0xff] %vm282_vm4, %v2280_v16 }
 0x214   : > { %v3161_v11 = vmul.f32 %v3137_v18, %v2969_v17  ;;  %v2647_v21 = vld [vmem:[#allocation2 + $0x68] sm:$0xff] }
 0x215   : > { %v2245_v22 = vpop.f32.mrf.mxu2  ;;  %v3043_v26 = vmul.f32 0.044715, %v3019_v44  ;;  %2596 = vst.msk [vmem:[#allocation2 + $0x70] sm:$0xff] %vm282_vm4, %v2572_v13  ;;  %v2870_v31 = vadd.f32 %v5203_v24, %v2647_v21  ;;  %v2538_v15 = vpop.f32.mrf.mxu3 }
 0x216   : > { %v3185_v62 = vpack.c.bf16 %v3161_v11, %v3161_v11  ;;  %v2920_v33 = vld [vmem:[#allocation2 + $0x60] sm:$0xff]  ;;  %v1977_v35 = vpop.f32.mrf.mxu1 }
 0x217   : > { %v3067_v28 = vadd.f32 %v3043_v26, %v5234_v45  ;;  %v5251_v59 = vadd.f32 %v5023_v47, %v2920_v33  ;;  %2894 = vst.msk [vmem:[#allocation2 + $0x68] sm:$0xff] %vm282_vm4, %v2870_v31  ;;  %v2012_v36 = vadd.f32 %v1977_v35, %v1817_v34  ;;  %v1819_v45 = vld [vmem:[#allocation2 + $0x98] sm:$0xff] }
 0x218   : > { %3210 = vst.msk [vmem:[%s5094_s27 + $0x24] sm:$0xf] %vm3200_vm6, %v3185_v62  ;;  %v2086_v37 = vld [vmem:[#allocation2 + $0x80] sm:$0xff] }
 0x219   : > { %v4128_v12 = vpop.eup %4127  ;;  %v3091_v29 = vmul.f32 0.7978846, %v3067_v28  ;;  %v2996_v24 = vmul.f32 %v5251_v59, %v5251_v59  ;;  %v2281_v39 = vadd.f32 %v2245_v22, %v2086_v37  ;;  %2036 = vst.msk [vmem:[#allocation2 + $0x88] sm:$0xff] %vm282_vm4, %v2012_v36  ;;  %v2839_v44 = vpop.f32.mrf.mxu0  ;;  %v2972_v26 = vmul.f32 0.5, %v5251_v59 }
 0x21a   : > { %v3138_v42 = vadd.f32 1.0, %v4128_v12  ;;  %v2355_v43 = vld [vmem:[#allocation2 + $0x78] sm:$0xff] }
 0x21b   : > { %4129 = vtanh.f32 %v3091_v29  ;;  %v3020_v3 = vmul.f32 %v2996_v24, %v5251_v59  ;;  %v2573_v38 = vadd.f32 %v2535_v23, %v2355_v43  ;;  %2305 = vst.msk [vmem:[#allocation2 + $0x80] sm:$0xff] %vm282_vm4, %v2281_v39  ;;  %v1820_v24 = vld [vmem:[#allocation2 + $0xa0] sm:$0xff] }
 0x21c   : > { %v3162_v32 = vmul.f32 %v3138_v42, %v2970_v40  ;;  %v2648_v46 = vld [vmem:[#allocation2 + $0x70] sm:$0xff] }
 0x21d   : > { %v2247_v41 = vpop.f32.mrf.mxu2  ;;  %v3044_v48 = vmul.f32 0.044715, %v3020_v3  ;;  %2597 = vst.msk [vmem:[#allocation2 + $0x78] sm:$0xff] %vm282_vm4, %v2573_v38  ;;  %v2871_v49 = vadd.f32 %v5225_v55, %v2648_v46  ;;  %v2540_v50 = vpop.f32.mrf.mxu3 }
 0x21e   : > { %v3186_v27 = vpack.c.bf16 %v3162_v32, %v3162_v32  ;;  %v2921_v25 = vld [vmem:[#allocation2 + $0x68] sm:$0xff]  ;;  %v1980_v56 = vpop.f32.mrf.mxu1 }
 0x21f   : > { %v3068_v57 = vadd.f32 %v3044_v48, %v5251_v59  ;;  %v5266_v53 = vadd.f32 %v5023_v47, %v2921_v25  ;;  %2895 = vst.msk [vmem:[#allocation2 + $0x70] sm:$0xff] %vm282_vm4, %v2871_v49  ;;  %v2013_v58 = vadd.f32 %v1980_v56, %v1818_v54 }
 0x220   : > { %3211 = vst.msk [vmem:[%s5094_s27 + $0x28] sm:$0xf] %vm3200_vm6, %v3186_v27  ;;  %v2087_v52 = vld [vmem:[#allocation2 + $0x88] sm:$0xff] }
 0x221   : > { %v4130_v61 = vpop.eup %4129  ;;  %v3092_v60 = vmul.f32 0.7978846, %v3068_v57  ;;  %v2997_v55 = vmul.f32 %v5266_v53, %v5266_v53  ;;  %v2282_v0 = vadd.f32 %v2247_v41, %v2087_v52  ;;  %2037 = vst.msk [vmem:[#allocation2 + $0x90] sm:$0xff] %vm282_vm4, %v2013_v58  ;;  %v2842_v48 = vpop.f32.mrf.mxu0  ;;  %v2973_v49 = vmul.f32 0.5, %v5266_v53 }
 0x222   : > { %v3139_v6 = vadd.f32 1.0, %v4130_v61  ;;  %v2356_v23 = vld [vmem:[#allocation2 + $0x80] sm:$0xff] }
 0x223   : > { %4131 = vtanh.f32 %v3092_v60  ;;  %v3021_v5 = vmul.f32 %v2997_v55, %v5266_v53  ;;  %v2574_v63 = vadd.f32 %v2538_v15, %v2356_v23  ;;  %2306 = vst.msk [vmem:[#allocation2 + $0x88] sm:$0xff] %vm282_vm4, %v2282_v0  ;;  %v1821_v55 = vld [vmem:[#allocation2 + $0xa8] sm:$0xff] }
 0x224   : > { %v3163_v7 = vmul.f32 %v3139_v6, %v2971_v1  ;;  %v2649_v2 = vld [vmem:[#allocation2 + $0x78] sm:$0xff] }
 0x225   : > { %v2250_v4 = vpop.f32.mrf.mxu2  ;;  %v3045_v8 = vmul.f32 0.044715, %v3021_v5  ;;  %2598 = vst.msk [vmem:[#allocation2 + $0x80] sm:$0xff] %vm282_vm4, %v2574_v63  ;;  %v2872_v9 = vadd.f32 %v5245_v20, %v2649_v2  ;;  %v2543_v19 = vpop.f32.mrf.mxu3 }
 0x226   : > { %v3187_v10 = vpack.c.bf16 %v3163_v7, %v3163_v7  ;;  %v2922_v14 = vld [vmem:[#allocation2 + $0x70] sm:$0xff]  ;;  %v1982_v30 = vpop.f32.mrf.mxu1 }
 0x227   : > { %v3069_v16 = vadd.f32 %v3045_v8, %v5266_v53  ;;  %v5281_v17 = vadd.f32 %v5023_v47, %v2922_v14  ;;  %2896 = vst.msk [vmem:[#allocation2 + $0x78] sm:$0xff] %vm282_vm4, %v2872_v9  ;;  %v2014_v18 = vadd.f32 %v1982_v30, %v1819_v45 }
 0x228   : > { %3212 = vst.msk [vmem:[%s5094_s27 + $0x2c] sm:$0xf] %vm3200_vm6, %v3187_v10  ;;  %v2088_v13 = vld [vmem:[#allocation2 + $0x90] sm:$0xff] }
 0x229   : > { %v4132_v11 = vpop.eup %4131  ;;  %v3093_v21 = vmul.f32 0.7978846, %v3069_v16  ;;  %v2998_v20 = vmul.f32 %v5281_v17, %v5281_v17  ;;  %v2283_v22 = vadd.f32 %v2250_v4, %v2088_v13  ;;  %2038 = vst.msk [vmem:[#allocation2 + $0x98] sm:$0xff] %vm282_vm4, %v2014_v18  ;;  %v2974_v4 = vmul.f32 0.5, %v5281_v17  ;;  %v2844_v45 = vpop.f32.mrf.mxu0 }
 0x22a   : > { %v3140_v31 = vadd.f32 1.0, %v4132_v11  ;;  %v2357_v15 = vld [vmem:[#allocation2 + $0x88] sm:$0xff]  ;;  %v1822_v11 = vld [vmem:[#allocation2 + $0xb0] sm:$0xff] }
 0x22b   : > { %4133 = vtanh.f32 %v3093_v21  ;;  %v3022_v62 = vmul.f32 %v2998_v20, %v5281_v17  ;;  %v2575_v33 = vadd.f32 %v2540_v50, %v2357_v15  ;;  %2307 = vst.msk [vmem:[#allocation2 + $0x90] sm:$0xff] %vm282_vm4, %v2283_v22  ;;  %v5325_v22 = vld [vmem:[%s5395_s4] ss:$0 sm:$0xff] }
 0x22c   : > { %v3164_v34 = vmul.f32 %v3140_v31, %v2972_v26  ;;  %v2650_v35 = vld [vmem:[#allocation2 + $0x80] sm:$0xff] }
 0x22d   : > { %v2252_v28 = vpop.f32.mrf.mxu2  ;;  %v3046_v36 = vmul.f32 0.044715, %v3022_v62  ;;  %2599 = vst.msk [vmem:[#allocation2 + $0x88] sm:$0xff] %vm282_vm4, %v2575_v33  ;;  %v2873_v37 = vadd.f32 %v2837_v51, %v2650_v35  ;;  %v2545_v41 = vpop.f32.mrf.mxu3 }
 0x22e   : > { %v3188_v12 = vpack.c.bf16 %v3164_v34, %v3164_v34  ;;  %v2923_v29 = vld [vmem:[#allocation2 + $0x78] sm:$0xff]  ;;  %v1985_v59 = vpop.f32.mrf.mxu1 }
 0x22f   : > { %v3070_v39 = vadd.f32 %v3046_v36, %v5281_v17  ;;  %v5295_v40 = vadd.f32 %v5023_v47, %v2923_v29  ;;  %2897 = vst.msk [vmem:[#allocation2 + $0x80] sm:$0xff] %vm282_vm4, %v2873_v37  ;;  %v2015_v42 = vadd.f32 %v1985_v59, %v1820_v24 }
 0x230   : > { %3213 = vst.msk [vmem:[%s5094_s27 + $0x30] sm:$0xf] %vm3200_vm6, %v3188_v12  ;;  %v2089_v43 = vld [vmem:[#allocation2 + $0x98] sm:$0xff] }
 0x231   : > { %v4134_v3 = vpop.eup %4133  ;;  %v3094_v38 = vmul.f32 0.7978846, %v3070_v39  ;;  %v2999_v32 = vmul.f32 %v5295_v40, %v5295_v40  ;;  %v2284_v46 = vadd.f32 %v2252_v28, %v2089_v43  ;;  %2039 = vst.msk [vmem:[#allocation2 + $0xa0] sm:$0xff] %vm282_vm4, %v2015_v42  ;;  %v2975_v28 = vmul.f32 0.5, %v5295_v40 }
 0x232   : > { %v3141_v50 = vadd.f32 1.0, %v4134_v3  ;;  %v2358_v51 = vld [vmem:[#allocation2 + $0x90] sm:$0xff]  ;;  %v2847_v3 = vpop.f32.mrf.mxu0 }
 0x233   : > { %4135 = vtanh.f32 %v3094_v38  ;;  %v3023_v27 = vmul.f32 %v2999_v32, %v5295_v40  ;;  %v2576_v25 = vadd.f32 %v2543_v19, %v2358_v51  ;;  %2308 = vst.msk [vmem:[#allocation2 + $0x98] sm:$0xff] %vm282_vm4, %v2284_v46  ;;  %v1823_v46 = vld [vmem:[#allocation2 + $0xb8] sm:$0x3f] }
 0x234   : > { %v3165_v54 = vmul.f32 %v3141_v50, %v2973_v49  ;;  %v2651_v56 = vld [vmem:[#allocation2 + $0x88] sm:$0xff] }
 0x235   : > { %v2255_v57 = vpop.f32.mrf.mxu2  ;;  %v3047_v58 = vmul.f32 0.044715, %v3023_v27  ;;  %2600 = vst.msk [vmem:[#allocation2 + $0x90] sm:$0xff] %vm282_vm4, %v2576_v25  ;;  %v2874_v52 = vadd.f32 %v2839_v44, %v2651_v56  ;;  %v2548_v14 = vpop.f32.mrf.mxu3 }
 0x236   : > { %v3189_v61 = vpack.c.bf16 %v3165_v54, %v3165_v54  ;;  %v2924_v60 = vld [vmem:[#allocation2 + $0x80] sm:$0xff]  ;;  %v1987_v53 = vpop.f32.mrf.mxu1 }
 0x237   : > { %v3071_v0 = vadd.f32 %v3047_v58, %v5295_v40  ;;  %v5309_v1 = vadd.f32 %v5023_v47, %v2924_v60  ;;  %2898 = vst.msk [vmem:[#allocation2 + $0x88] sm:$0xff] %vm282_vm4, %v2874_v52  ;;  %v2016_v6 = vadd.f32 %v1987_v53, %v1821_v55 }
 0x238   : > { %3214 = vst.msk [vmem:[%s5094_s27 + $0x34] sm:$0xf] %vm3200_vm6, %v3189_v61  ;;  %v2090_v23 = vld [vmem:[#allocation2 + $0xa0] sm:$0xff] }
 0x239   : > { %v4136_v5 = vpop.eup %4135  ;;  %v3095_v63 = vmul.f32 0.7978846, %v3071_v0  ;;  %v3000_v7 = vmul.f32 %v5309_v1, %v5309_v1  ;;  %v2285_v2 = vadd.f32 %v2255_v57, %v2090_v23  ;;  %2040 = vst.msk [vmem:[#allocation2 + $0xa8] sm:$0xff] %vm282_vm4, %v2016_v6  ;;  %v2976_v57 = vmul.f32 0.5, %v5309_v1 }
 0x23a   : > { %v3142_v8 = vadd.f32 1.0, %v4136_v5  ;;  %v2359_v9 = vld [vmem:[#allocation2 + $0x98] sm:$0xff] }
 0x23b   : > { %4137 = vtanh.f32 %v3095_v63  ;;  %v3024_v47 = vmul.f32 %v3000_v7, %v5309_v1  ;;  %v2577_v10 = vadd.f32 %v2545_v41, %v2359_v9  ;;  %2309 = vst.msk [vmem:[#allocation2 + $0xa0] sm:$0xff] %vm282_vm4, %v2285_v2 }
 0x23c   : > { %v3166_v30 = vmul.f32 %v3142_v8, %v2974_v4  ;;  %v2652_v16 = vld [vmem:[#allocation2 + $0x90] sm:$0xff] }
 0x23d   : > { %v2257_v18 = vpop.f32.mrf.mxu2  ;;  %v3048_v19 = vmul.f32 0.044715, %v3024_v47  ;;  %2601 = vst.msk [vmem:[#allocation2 + $0x98] sm:$0xff] %vm282_vm4, %v2577_v10  ;;  %v2875_v44 = vadd.f32 %v2842_v48, %v2652_v16  ;;  %v2550_v43 = vpop.f32.mrf.mxu3 }
 0x23e   : > { %v3190_v13 = vpack.c.bf16 %v3166_v30, %v3166_v30  ;;  %v2925_v17 = vld [vmem:[#allocation2 + $0x88] sm:$0xff]  ;;  %v1990_v21 = vpop.f32.mrf.mxu1 }
 0x23f   : > { %v3072_v20 = vadd.f32 %v3048_v19, %v5309_v1  ;;  %v5328_v26 = vadd.f32 %v5325_v22, %v2925_v17  ;;  %2899 = vst.msk [vmem:[#allocation2 + $0x90] sm:$0xff] %vm282_vm4, %v2875_v44  ;;  %v2017_v31 = vadd.f32 %v1990_v21, %v1822_v11  ;;  %v2849_v1 = vpop.f32.mrf.mxu0 }
 0x240   : > { %3215 = vst.msk [vmem:[%s5094_s27 + $0x38] sm:$0xf] %vm3200_vm6, %v3190_v13  ;;  %v2091_v15 = vld [vmem:[#allocation2 + $0xa8] sm:$0xff] }
 0x241   : > { %v4138_v62 = vpop.eup %4137  ;;  %v3096_v33 = vmul.f32 0.7978846, %v3072_v20  ;;  %v3001_v34 = vmul.f32 %v5328_v26, %v5328_v26  ;;  %v2286_v35 = vadd.f32 %v2257_v18, %v2091_v15  ;;  %2041 = vst.msk [vmem:[#allocation2 + $0xb0] sm:$0xff] %vm282_vm4, %v2017_v31 }
 0x242   : > { %v3143_v36 = vadd.f32 1.0, %v4138_v62  ;;  %v2360_v37 = vld [vmem:[#allocation2 + $0xa0] sm:$0xff] }
 0x243   : > { %4139 = vtanh.f32 %v3096_v33  ;;  %v3025_v12 = vmul.f32 %v3001_v34, %v5328_v26  ;;  %v2578_v29 = vadd.f32 %v2548_v14, %v2360_v37  ;;  %2310 = vst.msk [vmem:[#allocation2 + $0xa8] sm:$0xff] %vm282_vm4, %v2286_v35 }
 0x244   : > { %v3167_v24 = vmul.f32 %v3143_v36, %v2975_v28  ;;  %v2653_v59 = vld [vmem:[#allocation2 + $0x98] sm:$0xff] }
 0x245   : > { %v3049_v39 = vmul.f32 0.044715, %v3025_v12  ;;  %2602 = vst.msk [vmem:[#allocation2 + $0xa0] sm:$0xff] %vm282_vm4, %v2578_v29  ;;  %v2876_v42 = vadd.f32 %v2844_v45, %v2653_v59  ;;  %v2260_v40 = vpop.f32.mrf.mxu2  ;;  %v2553_v2 = vpop.f32.mrf.mxu3  ;;  %v2977_v45 = vmul.f32 0.5, %v5328_v26 }
 0x246   : > { %v3191_v38 = vpack.c.bf16 %v3167_v24, %v3167_v24  ;;  %v2926_v32 = vld [vmem:[#allocation2 + $0x90] sm:$0xff]  ;;  %v1992_v41 = vpop.f32.mrf.mxu1 }
 0x247   : > { %v3073_v48 = vadd.f32 %v3049_v39, %v5328_v26  ;;  %v2954_v49 = vadd.f32 %v5325_v22, %v2926_v32  ;;  %2900 = vst.msk [vmem:[#allocation2 + $0x98] sm:$0xff] %vm282_vm4, %v2876_v42  ;;  %v2018_v50 = vadd.f32 %v1992_v41, %v1823_v46  ;;  %v2852_v37 = vpop.f32.mrf.mxu0 }
 0x248   : > { %3216 = vst.msk [vmem:[%s5094_s27 + $0x3c] sm:$0xf] %vm3200_vm6, %v3191_v38  ;;  %v2092_v51 = vld [vmem:[#allocation2 + $0xb0] sm:$0xff] }
 0x249   : > { %v4140_v27 = vpop.eup %4139  ;;  %v3097_v25 = vmul.f32 0.7978846, %v3073_v48  ;;  %v3002_v54 = vmul.f32 %v2954_v49, %v2954_v49  ;;  %v2287_v56 = vadd.f32 %v2260_v40, %v2092_v51  ;;  %2042 = vst.msk [vmem:[#allocation2 + $0xb8] sm:$0x3f] %vm306_vm5, %v2018_v50  ;;  %v2978_v34 = vmul.f32 0.5, %v2954_v49 }
 0x24a   : > { %v3144_v58 = vadd.f32 1.0, %v4140_v27  ;;  %v2361_v52 = vld [vmem:[#allocation2 + $0xa8] sm:$0xff] }
 0x24b   : > { %4141 = vtanh.f32 %v3097_v25  ;;  %v3026_v61 = vmul.f32 %v3002_v54, %v2954_v49  ;;  %v2579_v60 = vadd.f32 %v2550_v43, %v2361_v52  ;;  %2311 = vst.msk [vmem:[#allocation2 + $0xb0] sm:$0xff] %vm282_vm4, %v2287_v56 }
 0x24c   : > { %v3168_v55 = vmul.f32 %v3144_v58, %v2976_v57  ;;  %v2654_v53 = vld [vmem:[#allocation2 + $0xa0] sm:$0xff] }
 0x24d   : > { %v3050_v0 = vmul.f32 0.044715, %v3026_v61  ;;  %2603 = vst.msk [vmem:[#allocation2 + $0xa8] sm:$0xff] %vm282_vm4, %v2579_v60  ;;  %v2877_v6 = vadd.f32 %v2847_v3, %v2654_v53  ;;  %v2262_v8 = vpop.f32.mrf.mxu2  ;;  %v2555_v36 = vpop.f32.mrf.mxu3 }
 0x24e   : > { %v3192_v23 = vpack.c.bf16 %v3168_v55, %v3168_v55  ;;  %v2927_v5 = vld [vmem:[#allocation2 + $0x98] sm:$0xff] }
 0x24f   : > { %v3074_v63 = vadd.f32 %v3050_v0, %v2954_v49  ;;  %v2955_v7 = vadd.f32 %v5325_v22, %v2927_v5  ;;  %2901 = vst.msk [vmem:[#allocation2 + $0xa0] sm:$0xff] %vm282_vm4, %v2877_v6  ;;  %v2854_v25 = vpop.f32.mrf.mxu0 }
 0x250   : > { %3217 = vst.msk [vmem:[%s5094_s27 + $0x40] sm:$0xf] %vm3200_vm6, %v3192_v23  ;;  %v2093_v4 = vld [vmem:[#allocation2 + $0xb8] sm:$0x3f] }
 0x251   : > { %v4142_v9 = vpop.eup %4141  ;;  %v3098_v47 = vmul.f32 0.7978846, %v3074_v63  ;;  %v3003_v10 = vmul.f32 %v2955_v7, %v2955_v7  ;;  %v2288_v14 = vadd.f32 %v2262_v8, %v2093_v4  ;;  %v2979_v48 = vmul.f32 0.5, %v2955_v7 }
 0x252   : > { %v3145_v30 = vadd.f32 1.0, %v4142_v9  ;;  %v2362_v16 = vld [vmem:[#allocation2 + $0xb0] sm:$0xff] }
 0x253   : > { %4143 = vtanh.f32 %v3098_v47  ;;  %v3027_v18 = vmul.f32 %v3003_v10, %v2955_v7  ;;  %v2580_v19 = vadd.f32 %v2553_v2, %v2362_v16  ;;  %2312 = vst.msk [vmem:[#allocation2 + $0xb8] sm:$0x3f] %vm306_vm5, %v2288_v14 }
 0x254   : > { %v3169_v44 = vmul.f32 %v3145_v30, %v2977_v45  ;;  %v2655_v13 = vld [vmem:[#allocation2 + $0xa8] sm:$0xff] }
 0x255   : > { %v3051_v17 = vmul.f32 0.044715, %v3027_v18  ;;  %2604 = vst.msk [vmem:[#allocation2 + $0xb0] sm:$0xff] %vm282_vm4, %v2580_v19  ;;  %v2878_v11 = vadd.f32 %v2849_v1, %v2655_v13 }
 0x256   : > { %v3193_v21 = vpack.c.bf16 %v3169_v44, %v3169_v44  ;;  %v2928_v20 = vld [vmem:[#allocation2 + $0xa0] sm:$0xff] }
 0x257   : > { %v3075_v31 = vadd.f32 %v3051_v17, %v2955_v7  ;;  %v2956_v15 = vadd.f32 %v5325_v22, %v2928_v20  ;;  %2902 = vst.msk [vmem:[#allocation2 + $0xa8] sm:$0xff] %vm282_vm4, %v2878_v11 }
 0x258   : > { %3218 = vst.msk [vmem:[%s5094_s27 + $0x44] sm:$0xf] %vm3200_vm6, %v3193_v21 }
 0x259   : > { %v4144_v26 = vpop.eup %4143  ;;  %v3099_v62 = vmul.f32 0.7978846, %v3075_v31  ;;  %v3004_v33 = vmul.f32 %v2956_v15, %v2956_v15  ;;  %v2980_v0 = vmul.f32 0.5, %v2956_v15 }
 0x25a   : > { %v3146_v35 = vadd.f32 1.0, %v4144_v26  ;;  %v2363_v28 = vld [vmem:[#allocation2 + $0xb8] sm:$0x3f] }
 0x25b   : > { %4145 = vtanh.f32 %v3099_v62  ;;  %v3028_v12 = vmul.f32 %v3004_v33, %v2956_v15  ;;  %v2581_v29 = vadd.f32 %v2555_v36, %v2363_v28 }
 0x25c   : > { %v3170_v24 = vmul.f32 %v3146_v35, %v2978_v34  ;;  %v2656_v59 = vld [vmem:[#allocation2 + $0xb0] sm:$0xff] }
 0x25d   : > { %v3052_v39 = vmul.f32 0.044715, %v3028_v12  ;;  %2605 = vst.msk [vmem:[#allocation2 + $0xb8] sm:$0x3f] %vm306_vm5, %v2581_v29  ;;  %v2879_v42 = vadd.f32 %v2852_v37, %v2656_v59 }
 0x25e   : > { %v3194_v43 = vpack.c.bf16 %v3170_v24, %v3170_v24  ;;  %v2929_v3 = vld [vmem:[#allocation2 + $0xa8] sm:$0xff] }
 0x25f   : > { %v3076_v38 = vadd.f32 %v3052_v39, %v2956_v15  ;;  %v2957_v32 = vadd.f32 %v5325_v22, %v2929_v3  ;;  %2903 = vst.msk [vmem:[#allocation2 + $0xb0] sm:$0xff] %vm282_vm4, %v2879_v42 }
 0x260   : > { %3219 = vst.msk [vmem:[%s5094_s27 + $0x48] sm:$0xf] %vm3200_vm6, %v3194_v43 }
 0x261   : > { %v4146_v40 = vpop.eup %4145  ;;  %v3100_v46 = vmul.f32 0.7978846, %v3076_v38  ;;  %v3005_v41 = vmul.f32 %v2957_v32, %v2957_v32  ;;  %v2981_v10 = vmul.f32 0.5, %v2957_v32 }
 0x262   : > { %v3147_v49 = vadd.f32 1.0, %v4146_v40 }
 0x263   : > { %4147 = vtanh.f32 %v3100_v46  ;;  %v3029_v50 = vmul.f32 %v3005_v41, %v2957_v32 }
 0x264   : > { %v3171_v51 = vmul.f32 %v3147_v49, %v2979_v48  ;;  %v2657_v27 = vld [vmem:[#allocation2 + $0xb8] sm:$0x3f] }
 0x265   : > { %v3053_v54 = vmul.f32 0.044715, %v3029_v50  ;;  %v2880_v56 = vadd.f32 %v2854_v25, %v2657_v27 }
 0x266   : > { %v3195_v57 = vpack.c.bf16 %v3171_v51, %v3171_v51  ;;  %v2930_v58 = vld [vmem:[#allocation2 + $0xb0] sm:$0xff] }
 0x267   : > { %v3077_v52 = vadd.f32 %v3053_v54, %v2957_v32  ;;  %v2958_v61 = vadd.f32 %v5325_v22, %v2930_v58  ;;  %2904 = vst.msk [vmem:[#allocation2 + $0xb8] sm:$0x3f] %vm306_vm5, %v2880_v56 }
 0x268   : > { %3220 = vst.msk [vmem:[%s5094_s27 + $0x4c] sm:$0xf] %vm3200_vm6, %v3195_v57 }
 0x269   : > { %v4148_v60 = vpop.eup %4147  ;;  %v3101_v55 = vmul.f32 0.7978846, %v3077_v52  ;;  %v3006_v53 = vmul.f32 %v2958_v61, %v2958_v61 }
 0x26a   : > { %v3148_v6 = vadd.f32 1.0, %v4148_v60 }
 0x26b   : > { %4149 = vtanh.f32 %v3101_v55  ;;  %v3030_v23 = vmul.f32 %v3006_v53, %v2958_v61 }
 0x26c   : > { %v3172_v5 = vmul.f32 %v3148_v6, %v2980_v0 }
 0x26d   : > { %v3054_v63 = vmul.f32 0.044715, %v3030_v23 }
 0x26e   : > { %v3196_v7 = vpack.c.bf16 %v3172_v5, %v3172_v5  ;;  %v2931_v1 = vld [vmem:[#allocation2 + $0xb8] sm:$0x3f] }
 0x26f   : > { %v3078_v2 = vadd.f32 %v3054_v63, %v2958_v61  ;;  %v2959_v4 = vadd.f32 %v5325_v22, %v2931_v1  ;;  %v2982_v22 = vmul.f32 0.5, %v2958_v61 }
 0x270   : > { %3221 = vst.msk [vmem:[%s5094_s27 + $0x50] sm:$0xf] %vm3200_vm6, %v3196_v7 }
 0x271   : > { %v4150_v8 = vpop.eup %4149  ;;  %v3102_v9 = vmul.f32 0.7978846, %v3078_v2  ;;  %v3007_v47 = vmul.f32 %v2959_v4, %v2959_v4  ;;  %v2983_v31 = vmul.f32 0.5, %v2959_v4 }
 0x272   : > { %v3149_v14 = vadd.f32 1.0, %v4150_v8 }
 0x273   : > { %4151 = vtanh.f32 %v3102_v9  ;;  %v3031_v45 = vmul.f32 %v3007_v47, %v2959_v4 }
 0x274   : > { %v3173_v30 = vmul.f32 %v3149_v14, %v2981_v10 }
 0x275   : > { %v3055_v16 = vmul.f32 0.044715, %v3031_v45 }
 0x276   : > { %v3197_v18 = vpack.c.bf16 %v3173_v30, %v3173_v30 }
 0x277   : > { %v3079_v19 = vadd.f32 %v3055_v16, %v2959_v4 }
 0x278   : > { %3222 = vst.msk [vmem:[%s5094_s27 + $0x54] sm:$0xf] %vm3200_vm6, %v3197_v18 }
 0x279   : > { %v4152_v44 = vpop.eup %4151  ;;  %v3103_v13 = vmul.f32 0.7978846, %v3079_v19 }
 0x27a   : > { %v3150_v17 = vadd.f32 1.0, %v4152_v44 }
 0x27b   : > { %4153 = vtanh.f32 %v3103_v13 }
 0x27c   : > { %v3174_v11 = vmul.f32 %v3150_v17, %v2982_v22 }
 0x27e   : > { %v3198_v21 = vpack.c.bf16 %v3174_v11, %v3174_v11 }
 0x280   : > { %3223 = vst.msk [vmem:[%s5094_s27 + $0x58] sm:$0xf] %vm3200_vm6, %v3198_v21 }
 0x281   : > { %v4154_v20 = vpop.eup %4153 }
 0x282   : > { %v3151_v15 = vadd.f32 1.0, %v4154_v20 }
 0x284   : > { %v3175_v26 = vmul.f32 %v3151_v15, %v2983_v31 }
 0x286   : > { %v3199_v62 = vpack.c.bf16 %v3175_v26, %v3175_v26 }
 0x288   : > { %3225 = vst.msk [vmem:[%s5094_s27 + $0x5c] sm:$0x7] %vm3224_vm7, %v3199_v62 }
 0x289 PF: > { %s28_s29 = sadd.s32 1, %s4220_s29   ;;  %s5398_s26 = smov %s4212_s28 }
 0x28a   : > { %p25_p9 = scmp.ge.s32.totalorder %s28_s29, 26   ;;  %s5399_s27 = smov %s4216_s0 }
 0x28b   : > { %s5400_s28 = smov %s5403_s1  ;;  %s5401_s0 = smov %s5407_s30 }
 0x28c   :  { %27 = sbr.rel (!%p25_p9) target bundleno = 10 (0xa), region = 81 }

</bundles_post_ra>
